<compile_context>
chip_gen: v7x
topology: tpu7x:2x2x1
jax: 0.10.0
libtpu: 0.0.40
codegen_flags: <defaults>
</compile_context>

<pallas_src>
import jax
import jax.numpy as jnp
from jax.experimental import pallas as pl
from jax.experimental.pallas import tpu as pltpu

FEATURES = 38
# (fan_in, fan_out) for every Linear in forward order (5 hidden + regressor).
LAYER_DIMS = [(38, 608), (608, 304), (304, 152), (152, 76), (76, 38), (38, 1)]


def mlp_kernel(x_ref,
               w1_ref, b1_ref, w2_ref, b2_ref, w3_ref, b3_ref,
               w4_ref, b4_ref, w5_ref, b5_ref, wr_ref, br_ref,
               o_ref):
    """One batch tile of the whole MLP.

    x_ref  : (TB, 38)    input activations tile (VMEM, pipelined)
    wK_ref : (in, out)   hidden weights, resident in VMEM
    bK_ref : (1, out)    hidden biases, resident in VMEM
    wr_ref : (38, 1)     regressor weight
    br_ref : (1, 1)      regressor bias
    o_ref  : (TB, 1)     output tile
    """
    h = x_ref[...]

    # 5 x (Linear + ReLU) — static unroll; every matmul hits the MXU with
    # f32 accumulation.  Bias refs are already (1, out) so the add broadcasts
    # over sublanes with no in-kernel reshape.
    h = jnp.maximum(
        jnp.dot(h, w1_ref[...], preferred_element_type=jnp.float32) + b1_ref[...], 0.0)
    h = jnp.maximum(
        jnp.dot(h, w2_ref[...], preferred_element_type=jnp.float32) + b2_ref[...], 0.0)
    h = jnp.maximum(
        jnp.dot(h, w3_ref[...], preferred_element_type=jnp.float32) + b3_ref[...], 0.0)
    h = jnp.maximum(
        jnp.dot(h, w4_ref[...], preferred_element_type=jnp.float32) + b4_ref[...], 0.0)
    h = jnp.maximum(
        jnp.dot(h, w5_ref[...], preferred_element_type=jnp.float32) + b5_ref[...], 0.0)

    # Regressor: (TB, 38) @ (38, 1) + (1, 1)
    out = jnp.dot(h, wr_ref[...], preferred_element_type=jnp.float32) + br_ref[...]
    o_ref[...] = out.astype(o_ref.dtype)


def mlp_arc1_ps(x, params, *, tb=512):
    """Pallas wrapper. x: (B, 38) f32 -> (B, 1) f32.

    params: flat tuple (w1, b1, ..., w5, b5, w_reg, b_reg) with weights in
    (in, out) layout and biases shaped (1, out).
    """
    B = x.shape[0]
    num_tiles = -(-B // tb)          # ceil-div
    b_pad = num_tiles * tb
    if b_pad != B:
        x = jnp.pad(x, ((0, b_pad - B), (0, 0)))

    def const_spec(arr):
        # Full-array block, same block every grid step -> DMA'd once,
        # stays VMEM-resident across the whole grid.
        return pl.BlockSpec(arr.shape, lambda i, nd=arr.ndim: (0,) * nd)

    out = pl.pallas_call(
        mlp_kernel,
        out_shape=jax.ShapeDtypeStruct((b_pad, 1), jnp.float32),
        grid=(num_tiles,),
        in_specs=[pl.BlockSpec((tb, FEATURES), lambda i: (i, 0))]
                 + [const_spec(p) for p in params],
        out_specs=pl.BlockSpec((tb, 1), lambda i: (i, 0)),
        compiler_params=pltpu.CompilerParams(
            dimension_semantics=("parallel",),   # megacore on v7x
            vmem_limit_bytes=32 * 1024 * 1024,
        ),
    )(x, *params)
    return out[:B]


def init_params(key):
    """Deterministic PyTorch-style uniform(+-1/sqrt(fan_in)) init."""
    keys = jax.random.split(key, 2 * len(LAYER_DIMS))
    params = []
    for i, (fan_in, fan_out) in enumerate(LAYER_DIMS):
        bound = 1.0 / jnp.sqrt(jnp.float32(fan_in))
        # PyTorch Linear weight is (out, in); store transposed (in, out).
        w = jax.random.uniform(keys[2 * i], (fan_in, fan_out),
                               jnp.float32, -bound, bound)
        b = jax.random.uniform(keys[2 * i + 1], (1, fan_out),
                               jnp.float32, -bound, bound)
        params += [w, b]
    return tuple(params)


def reference(x, params):
    """Pure-JAX reference matching the PyTorch forward."""
    h = x
    for i in range(5):
        w, b = params[2 * i], params[2 * i + 1]
        h = jnp.maximum(h @ w + b, 0.0)
    w_reg, b_reg = params[10], params[11]
    return h @ w_reg + b_reg


if __name__ == "__main__":
    key = jax.random.PRNGKey(0)
    k_x, k_p = jax.random.split(key)

    B = 200                          # not a multiple of TB -> exercises padding
    x = jax.random.normal(k_x, (B, FEATURES), jnp.float32)
    params = init_params(k_p)

    out = mlp_arc1_ps(x, params, tb=128)   # small tile for the small test
    out = jax.block_until_ready(out)

    ref = reference(x, params)
    assert out.shape == (B, 1)
    assert jnp.allclose(out, ref, atol=1e-3, rtol=1e-4)
    print("KERNEL_OK")
</pallas_src>

<mosaic_0001>
module attributes {stable_mosaic.version = 11 : i64} {
  func.func @mlp_kernel(%arg0: i32, %arg1: memref<128x38xf32, #tpu.memory_space<vmem>>, %arg2: memref<38x608xf32, #tpu.memory_space<vmem>>, %arg3: memref<1x608xf32, #tpu.memory_space<vmem>>, %arg4: memref<608x304xf32, #tpu.memory_space<vmem>>, %arg5: memref<1x304xf32, #tpu.memory_space<vmem>>, %arg6: memref<304x152xf32, #tpu.memory_space<vmem>>, %arg7: memref<1x152xf32, #tpu.memory_space<vmem>>, %arg8: memref<152x76xf32, #tpu.memory_space<vmem>>, %arg9: memref<1x76xf32, #tpu.memory_space<vmem>>, %arg10: memref<76x38xf32, #tpu.memory_space<vmem>>, %arg11: memref<1x38xf32, #tpu.memory_space<vmem>>, %arg12: memref<38x1xf32, #tpu.memory_space<vmem>>, %arg13: memref<1x1xf32, #tpu.memory_space<vmem>>, %arg14: memref<128x1xf32, #tpu.memory_space<vmem>>) attributes {dimension_semantics = [#tpu.dimension_semantics<parallel>], iteration_bounds = array<i64: 2>, scalar_prefetch = 0 : i64, scratch_operands = 0 : i64, tpu.core_type = #tpu.core_type<tc>, window_params = [{transform_indices = @transform_0, window_bounds = array<i64: 128, 38>}, {pipeline_mode = #tpu.pipeline_mode<synchronous>, transform_indices = @transform_1, window_bounds = array<i64: 38, 608>}, {pipeline_mode = #tpu.pipeline_mode<synchronous>, transform_indices = @transform_2, window_bounds = array<i64: 1, 608>}, {pipeline_mode = #tpu.pipeline_mode<synchronous>, transform_indices = @transform_3, window_bounds = array<i64: 608, 304>}, {pipeline_mode = #tpu.pipeline_mode<synchronous>, transform_indices = @transform_4, window_bounds = array<i64: 1, 304>}, {pipeline_mode = #tpu.pipeline_mode<synchronous>, transform_indices = @transform_5, window_bounds = array<i64: 304, 152>}, {pipeline_mode = #tpu.pipeline_mode<synchronous>, transform_indices = @transform_6, window_bounds = array<i64: 1, 152>}, {pipeline_mode = #tpu.pipeline_mode<synchronous>, transform_indices = @transform_7, window_bounds = array<i64: 152, 76>}, {pipeline_mode = #tpu.pipeline_mode<synchronous>, transform_indices = @transform_8, window_bounds = array<i64: 1, 76>}, {pipeline_mode = #tpu.pipeline_mode<synchronous>, transform_indices = @transform_9, window_bounds = array<i64: 76, 38>}, {pipeline_mode = #tpu.pipeline_mode<synchronous>, transform_indices = @transform_10, window_bounds = array<i64: 1, 38>}, {pipeline_mode = #tpu.pipeline_mode<synchronous>, transform_indices = @transform_11, window_bounds = array<i64: 38, 1>}, {pipeline_mode = #tpu.pipeline_mode<synchronous>, transform_indices = @transform_12, window_bounds = array<i64: 1, 1>}, {transform_indices = @transform_13, window_bounds = array<i64: 128, 1>}]} {
    %c0 = arith.constant 0 : index
    %c0_0 = arith.constant 0 : index
    %0 = vector.load %arg1[%c0, %c0_0] : memref<128x38xf32, #tpu.memory_space<vmem>>, vector<128x38xf32>
    %c0_1 = arith.constant 0 : index
    %c0_2 = arith.constant 0 : index
    %1 = vector.load %arg2[%c0_1, %c0_2] : memref<38x608xf32, #tpu.memory_space<vmem>>, vector<38x608xf32>
    %cst = arith.constant dense<0.000000e+00> : vector<128x608xf32>
    %2 = tpu.matmul %0, %1, %cst {dimension_numbers = #tpu.dot_dimension_numbers<[1], [0], [0], [1], [0, 0, 1, 1], [], []>} : vector<128x38xf32>, vector<38x608xf32>, vector<128x608xf32> -> vector<128x608xf32>
    %c0_3 = arith.constant 0 : index
    %c0_4 = arith.constant 0 : index
    %3 = vector.load %arg3[%c0_3, %c0_4] : memref<1x608xf32, #tpu.memory_space<vmem>>, vector<1x608xf32>
    %4 = vector.broadcast %3 : vector<1x608xf32> to vector<128x608xf32>
    %5 = arith.addf %2, %4 : vector<128x608xf32>
    %cst_5 = arith.constant 0.000000e+00 : f32
    %6 = vector.broadcast %cst_5 : f32 to vector<128x608xf32>
    %7 = arith.maximumf %5, %6 : vector<128x608xf32>
    %c0_6 = arith.constant 0 : index
    %c0_7 = arith.constant 0 : index
    %8 = vector.load %arg4[%c0_6, %c0_7] : memref<608x304xf32, #tpu.memory_space<vmem>>, vector<608x304xf32>
    %cst_8 = arith.constant dense<0.000000e+00> : vector<128x304xf32>
    %9 = tpu.matmul %7, %8, %cst_8 {dimension_numbers = #tpu.dot_dimension_numbers<[1], [0], [0], [1], [0, 0, 1, 1], [], []>} : vector<128x608xf32>, vector<608x304xf32>, vector<128x304xf32> -> vector<128x304xf32>
    %c0_9 = arith.constant 0 : index
    %c0_10 = arith.constant 0 : index
    %10 = vector.load %arg5[%c0_9, %c0_10] : memref<1x304xf32, #tpu.memory_space<vmem>>, vector<1x304xf32>
    %11 = vector.broadcast %10 : vector<1x304xf32> to vector<128x304xf32>
    %12 = arith.addf %9, %11 : vector<128x304xf32>
    %cst_11 = arith.constant 0.000000e+00 : f32
    %13 = vector.broadcast %cst_11 : f32 to vector<128x304xf32>
    %14 = arith.maximumf %12, %13 : vector<128x304xf32>
    %c0_12 = arith.constant 0 : index
    %c0_13 = arith.constant 0 : index
    %15 = vector.load %arg6[%c0_12, %c0_13] : memref<304x152xf32, #tpu.memory_space<vmem>>, vector<304x152xf32>
    %cst_14 = arith.constant dense<0.000000e+00> : vector<128x152xf32>
    %16 = tpu.matmul %14, %15, %cst_14 {dimension_numbers = #tpu.dot_dimension_numbers<[1], [0], [0], [1], [0, 0, 1, 1], [], []>} : vector<128x304xf32>, vector<304x152xf32>, vector<128x152xf32> -> vector<128x152xf32>
    %c0_15 = arith.constant 0 : index
    %c0_16 = arith.constant 0 : index
    %17 = vector.load %arg7[%c0_15, %c0_16] : memref<1x152xf32, #tpu.memory_space<vmem>>, vector<1x152xf32>
    %18 = vector.broadcast %17 : vector<1x152xf32> to vector<128x152xf32>
    %19 = arith.addf %16, %18 : vector<128x152xf32>
    %cst_17 = arith.constant 0.000000e+00 : f32
    %20 = vector.broadcast %cst_17 : f32 to vector<128x152xf32>
    %21 = arith.maximumf %19, %20 : vector<128x152xf32>
    %c0_18 = arith.constant 0 : index
    %c0_19 = arith.constant 0 : index
    %22 = vector.load %arg8[%c0_18, %c0_19] : memref<152x76xf32, #tpu.memory_space<vmem>>, vector<152x76xf32>
    %cst_20 = arith.constant dense<0.000000e+00> : vector<128x76xf32>
    %23 = tpu.matmul %21, %22, %cst_20 {dimension_numbers = #tpu.dot_dimension_numbers<[1], [0], [0], [1], [0, 0, 1, 1], [], []>} : vector<128x152xf32>, vector<152x76xf32>, vector<128x76xf32> -> vector<128x76xf32>
    %c0_21 = arith.constant 0 : index
    %c0_22 = arith.constant 0 : index
    %24 = vector.load %arg9[%c0_21, %c0_22] : memref<1x76xf32, #tpu.memory_space<vmem>>, vector<1x76xf32>
    %25 = vector.broadcast %24 : vector<1x76xf32> to vector<128x76xf32>
    %26 = arith.addf %23, %25 : vector<128x76xf32>
    %cst_23 = arith.constant 0.000000e+00 : f32
    %27 = vector.broadcast %cst_23 : f32 to vector<128x76xf32>
    %28 = arith.maximumf %26, %27 : vector<128x76xf32>
    %c0_24 = arith.constant 0 : index
    %c0_25 = arith.constant 0 : index
    %29 = vector.load %arg10[%c0_24, %c0_25] : memref<76x38xf32, #tpu.memory_space<vmem>>, vector<76x38xf32>
    %cst_26 = arith.constant dense<0.000000e+00> : vector<128x38xf32>
    %30 = tpu.matmul %28, %29, %cst_26 {dimension_numbers = #tpu.dot_dimension_numbers<[1], [0], [0], [1], [0, 0, 1, 1], [], []>} : vector<128x76xf32>, vector<76x38xf32>, vector<128x38xf32> -> vector<128x38xf32>
    %c0_27 = arith.constant 0 : index
    %c0_28 = arith.constant 0 : index
    %31 = vector.load %arg11[%c0_27, %c0_28] : memref<1x38xf32, #tpu.memory_space<vmem>>, vector<1x38xf32>
    %32 = vector.broadcast %31 : vector<1x38xf32> to vector<128x38xf32>
    %33 = arith.addf %30, %32 : vector<128x38xf32>
    %cst_29 = arith.constant 0.000000e+00 : f32
    %34 = vector.broadcast %cst_29 : f32 to vector<128x38xf32>
    %35 = arith.maximumf %33, %34 : vector<128x38xf32>
    %c0_30 = arith.constant 0 : index
    %c0_31 = arith.constant 0 : index
    %36 = vector.load %arg12[%c0_30, %c0_31] : memref<38x1xf32, #tpu.memory_space<vmem>>, vector<38x1xf32>
    %cst_32 = arith.constant dense<0.000000e+00> : vector<128x1xf32>
    %37 = tpu.matmul %35, %36, %cst_32 {dimension_numbers = #tpu.dot_dimension_numbers<[1], [0], [0], [1], [0, 0, 1, 1], [], []>} : vector<128x38xf32>, vector<38x1xf32>, vector<128x1xf32> -> vector<128x1xf32>
    %c0_33 = arith.constant 0 : index
    %c0_34 = arith.constant 0 : index
    %38 = vector.load %arg13[%c0_33, %c0_34] : memref<1x1xf32, #tpu.memory_space<vmem>>, vector<1x1xf32>
    %39 = vector.broadcast %38 : vector<1x1xf32> to vector<128x1xf32>
    %40 = arith.addf %37, %39 : vector<128x1xf32>
    %c0_35 = arith.constant 0 : index
    %c0_36 = arith.constant 0 : index
    %41 = vector.load %arg14[%c0_35, %c0_36] : memref<128x1xf32, #tpu.memory_space<vmem>>, vector<128x1xf32>
    tpu.vector_store %arg14[%c0_35, %c0_36], %40 {strides = array<i32>} : memref<128x1xf32, #tpu.memory_space<vmem>>, vector<128x1xf32>,
    return
  }
  func.func @transform_0(%arg0: i32) -> (i32, i32) {
    %c0_i32 = arith.constant 0 : i32
    %c0_i32_0 = arith.constant 0 : i32
    return %arg0, %c0_i32 : i32, i32
  }
  func.func @transform_1(%arg0: i32) -> (i32, i32) {
    %c0_i32 = arith.constant 0 : i32
    %c0_i32_0 = arith.constant 0 : i32
    %c0_i32_1 = arith.constant 0 : i32
    return %c0_i32, %c0_i32_0 : i32, i32
  }
  func.func @transform_2(%arg0: i32) -> (i32, i32) {
    %c0_i32 = arith.constant 0 : i32
    %c0_i32_0 = arith.constant 0 : i32
    %c0_i32_1 = arith.constant 0 : i32
    return %c0_i32, %c0_i32_0 : i32, i32
  }
  func.func @transform_3(%arg0: i32) -> (i32, i32) {
    %c0_i32 = arith.constant 0 : i32
    %c0_i32_0 = arith.constant 0 : i32
    %c0_i32_1 = arith.constant 0 : i32
    return %c0_i32, %c0_i32_0 : i32, i32
  }
  func.func @transform_4(%arg0: i32) -> (i32, i32) {
    %c0_i32 = arith.constant 0 : i32
    %c0_i32_0 = arith.constant 0 : i32
    %c0_i32_1 = arith.constant 0 : i32
    return %c0_i32, %c0_i32_0 : i32, i32
  }
  func.func @transform_5(%arg0: i32) -> (i32, i32) {
    %c0_i32 = arith.constant 0 : i32
    %c0_i32_0 = arith.constant 0 : i32
    %c0_i32_1 = arith.constant 0 : i32
    return %c0_i32, %c0_i32_0 : i32, i32
  }
  func.func @transform_6(%arg0: i32) -> (i32, i32) {
    %c0_i32 = arith.constant 0 : i32
    %c0_i32_0 = arith.constant 0 : i32
    %c0_i32_1 = arith.constant 0 : i32
    return %c0_i32, %c0_i32_0 : i32, i32
  }
  func.func @transform_7(%arg0: i32) -> (i32, i32) {
    %c0_i32 = arith.constant 0 : i32
    %c0_i32_0 = arith.constant 0 : i32
    %c0_i32_1 = arith.constant 0 : i32
    return %c0_i32, %c0_i32_0 : i32, i32
  }
  func.func @transform_8(%arg0: i32) -> (i32, i32) {
    %c0_i32 = arith.constant 0 : i32
    %c0_i32_0 = arith.constant 0 : i32
    %c0_i32_1 = arith.constant 0 : i32
    return %c0_i32, %c0_i32_0 : i32, i32
  }
  func.func @transform_9(%arg0: i32) -> (i32, i32) {
    %c0_i32 = arith.constant 0 : i32
    %c0_i32_0 = arith.constant 0 : i32
    %c0_i32_1 = arith.constant 0 : i32
    return %c0_i32, %c0_i32_0 : i32, i32
  }
  func.func @transform_10(%arg0: i32) -> (i32, i32) {
    %c0_i32 = arith.constant 0 : i32
    %c0_i32_0 = arith.constant 0 : i32
    %c0_i32_1 = arith.constant 0 : i32
    return %c0_i32, %c0_i32_0 : i32, i32
  }
  func.func @transform_11(%arg0: i32) -> (i32, i32) {
    %c0_i32 = arith.constant 0 : i32
    %c0_i32_0 = arith.constant 0 : i32
    %c0_i32_1 = arith.constant 0 : i32
    return %c0_i32, %c0_i32_0 : i32, i32
  }
  func.func @transform_12(%arg0: i32) -> (i32, i32) {
    %c0_i32 = arith.constant 0 : i32
    %c0_i32_0 = arith.constant 0 : i32
    %c0_i32_1 = arith.constant 0 : i32
    return %c0_i32, %c0_i32_0 : i32, i32
  }
  func.func @transform_13(%arg0: i32) -> (i32, i32) {
    %c0_i32 = arith.constant 0 : i32
    %c0_i32_0 = arith.constant 0 : i32
    return %arg0, %c0_i32 : i32, i32
  }
}

</mosaic_0001>

<bundles_post_ra>
// kernel: tpu_custom_call.1
= control target key start
LH: loop header
LB: loop body
LE: loop exit
PB: predicated region body
PF: predicated region fallthrough
CT: control target
= control target key end

     0   :  { %s4859_s27 = smov 0   ;;  %s6894_s0 = inlined_call_operand.vmem [shape: f32[256,38], index: 0, kind: input, shape index: {}]   ;;  %s6895_s1 = inlined_call_operand.vmem [shape: f32[38,608], index: 1, kind: input, shape index: {}]   ;;  %s6896_s2 = inlined_call_operand.vmem [shape: f32[1,608], index: 2, kind: input, shape index: {}]   ;;  %s6897_s3 = inlined_call_operand.vmem [shape: f32[608,304], index: 3, kind: input, shape index: {}]   ;;  %s6898_s4 = inlined_call_operand.vmem [shape: f32[1,304], index: 4, kind: input, shape index: {}]   ;;  %s6899_s5 = inlined_call_operand.vmem [shape: f32[304,152], index: 5, kind: input, shape index: {}]   ;;  %s6900_s6 = inlined_call_operand.vmem [shape: f32[1,152], index: 6, kind: input, shape index: {}]   ;;  %s6901_s7 = inlined_call_operand.vmem [shape: f32[152,76], index: 7, kind: input, shape index: {}]   ;;  %s6902_s8 = inlined_call_operand.vmem [shape: f32[1,76], index: 8, kind: input, shape index: {}]   ;;  %s6903_s9 = inlined_call_operand.vmem [shape: f32[76,38], index: 9, kind: input, shape index: {}]   ;;  %s6904_s10 = inlined_call_operand.vmem [shape: f32[1,38], index: 10, kind: input, shape index: {}]   ;;  %s6905_s11 = inlined_call_operand.vmem [shape: f32[38,1], index: 11, kind: input, shape index: {}]   ;;  %s6906_s12 = inlined_call_operand.<no memory space> [shape: f32[1,1], index: 12, kind: input, shape index: {}]   ;;  %s6907_s13 = inlined_call_operand.vmem [shape: f32[256,1], index: 13, kind: output, shape index: {}]  }
   0x1   :  { %v18_v0 = vstv %s6906_s12 }
   0x2   :  { %19 = vst [vmem:[#allocation2] sm:$0x1] %v18_v0 }
   0x3 LB: > { %s3625_s28 = sadd.s32 4294967295, %s4781_s27   ;;  %p3629_p0 = scmp.ge.s32.totalorder %s4781_s27, 1  ;;  %s4781_s27 = sphi %s4859_s27, %s25_s27  }
   0x4   : > { %p390_p1 = scmp.lt.s32.totalorder %s4781_s27, 3 }
   0x6   : > { %p391_p2 = pnand %p3629_p0, %p390_p1 }
   0x7   : > { %v463_v1 = vld [vmem:[%s6895_s1 + $0x8] sm:$0xff] (!%p391_p2)  ;;  %v468_v2 = vld [vmem:[%s6895_s1 + $0x30] sm:$0xff] (!%p391_p2)  ;;  %v462_v3 = vld [vmem:[%s6895_s1] sm:$0xff] (!%p391_p2)  ;;  %s3630_s17 = sshll.u32 (!%p391_p2), %s3625_s28, 4  ;;  %v4783_v8 = vmov (!%p391_p2), 0.0   ;;  %vm563_vm0 = vcmask (!%p391_p2), 1045504  }
   0x8   : > { %394 = sbr.rel (%p391_p2) target bundleno = 1576 (0x628), region = 72  ;;  %v4206_v4 = vpack.c.bf16 (!%p391_p2), %v468_v2, %v463_v1  ;;  %v467_v5 = vld [vmem:[%s6895_s1 + $0x28] sm:$0xff] (!%p391_p2)  ;;  %v473_v6 = vld [vmem:[%s6895_s1 + $0x58] sm:$0xff] (!%p391_p2)  ;;  %v478_v7 = vld [vmem:[%s6895_s1 + $0x80] sm:$0xff] (!%p391_p2)  ;;  %643 = vmatprep.mubr.f32.mxu0 (!%p391_p2), %v4783_v8  ;;  %p435_p3 = scmp.lt.s32.totalorder (!%p391_p2), %s3630_s17, 31  ;;  %804 = vmatprep.mubr.f32.mxu1 (!%p391_p2), %v4783_v8  ;;  %vm514_vm1 = vcmask (!%p391_p2), 310272  }
   0x9   : > { %v4208_v9 = vpack.c.bf16 (!%p391_p2), %v467_v5, %v462_v3  ;;  %v4210_v10 = vpack.c.bf16 (!%p391_p2), %v478_v7, %v473_v6  ;;  %v472_v11 = vld [vmem:[%s6895_s1 + $0x50] sm:$0xff] (!%p391_p2)  ;;  %v477_v12 = vld [vmem:[%s6895_s1 + $0x78] sm:$0xff] (!%p391_p2)  ;;  %v470_v14 = vld [vmem:[%s6895_s1 + $0x40] sm:$0xff] (!%p391_p2)  ;;  %vm1371_vm2 = vcmask (!%p391_p2), 785408   ;;  %vm2474_vm3 = vcmask (!%p391_p2), 392192  }
   0xa   : > { %4207 = vmatprep.subr.bf16.mxu0 (!%p391_p2), %v4206_v4  ;;  %v465_v13 = vld [vmem:[%s6895_s1 + $0x18] sm:$0xff] (!%p391_p2)  ;;  %v4212_v15 = vpack.c.bf16 (!%p391_p2), %v477_v12, %v472_v11  ;;  %v464_v17 = vld [vmem:[%s6895_s1 + $0x10] sm:$0xff] (!%p391_p2)  ;;  %v475_v19 = vld [vmem:[%s6895_s1 + $0x68] sm:$0xff] (!%p391_p2)  ;;  %vm2903_vm4 = vcmask (!%p391_p2), 195584   ;;  %vm3179_vm5 = vcmask (!%p391_p2), 1043456   ;;  %vm4785_vm6 = vmmov (!%p391_p2), 1  }
   0xb   : > { %4209 = vmatpush1.bf16.msra.mxu0 (!%p391_p2), %v4208_v9  ;;  %v4214_v16 = vpack.c.bf16 (!%p391_p2), %v470_v14, %v465_v13  ;;  %v469_v18 = vld [vmem:[%s6895_s1 + $0x38] sm:$0xff] (!%p391_p2)  ;;  %v480_v21 = vld [vmem:[%s6895_s1 + $0x90] sm:$0xff] (!%p391_p2)  ;;  %v474_v22 = vld [vmem:[%s6895_s1 + $0x60] sm:$0xff] (!%p391_p2)  ;;  %vm3130_vm8 = vcmask (!%p391_p2), 621568   ;;  %vm3552_vm9 = vcmask (!%p391_p2), 7168  }
   0xc   : > { %4211 = vmatprep.subr.bf16.mxu0 (!%p391_p2), %v4210_v10  ;;  %v4216_v20 = vpack.c.bf16 (!%p391_p2), %v469_v18, %v464_v17  ;;  %v479_v23 = vld [vmem:[%s6895_s1 + $0x88] sm:$0xff] (!%p391_p2)  ;;  %v4218_v25 = vpack.c.bf16 (!%p391_p2), %v480_v21, %v475_v19  ;;  %v482_v27 = vld [vmem:[%s6895_s1 + $0xa0] sm:$0x3f] (!%p391_p2)  ;;  %v485_v28 = vld [vmem:[%s6895_s1 + $0xb8] sm:$0x3f] (!%p391_p2) }
   0xd   : > { %v483_v24 = vld [vmem:[%s6895_s1 + $0xa8] sm:$0x3f] (!%p391_p2)  ;;  %4215 = vmatprep.subr.bf16.mxu1 (!%p391_p2), %v4214_v16  ;;  %v4220_v26 = vpack.c.bf16 (!%p391_p2), %v479_v23, %v474_v22  ;;  %v466_v30 = vld [vmem:[%s6895_s1 + $0x20] sm:$0xff] (!%p391_p2)  ;;  %v484_v31 = vld [vmem:[%s6895_s1 + $0xb0] sm:$0x3f] (!%p391_p2) }
   0xe   : > { %4217 = vmatpush1.bf16.msra.mxu1 (!%p391_p2), %v4216_v20  ;;  %v471_v32 = vld [vmem:[%s6895_s1 + $0x48] sm:$0xff] (!%p391_p2)  ;;  %v476_v33 = vld [vmem:[%s6895_s1 + $0x70] sm:$0xff] (!%p391_p2)  ;;  %v481_v35 = vld [vmem:[%s6895_s1 + $0x98] sm:$0xff] (!%p391_p2) }
   0xf   : > { %s6909_s17 = smov (!%p435_p3, %s3630_s17), 31  ;;  %4213 = vmatpush1.bf16.msra.mxu0 %v4212_v15  ;;  %4219 = vmatprep.subr.bf16.mxu1 %v4218_v25  ;;  %v4222_v34 = vpack.c.bf16 %v471_v32, %v466_v30  ;;  %v1127_v36 = vld [vmem:[%s6897_s3 + $0x8] sm:$0xff]  ;;  %v4226_v38 = vpack.c.bf16 %v481_v35, %v476_v33  ;;  %v1130_v39 = vld [vmem:[%s6897_s3 + $0x20] sm:$0xff]  ;;  %v1129_v42 = vld [vmem:[%s6897_s3 + $0x18] sm:$0xff] }
  0x10   : > { %s3631_s22 = sshll.u32 %s6909_s17, 3  ;;  %3634 = vmatprep.subr.msk.mxu0 %vm563_vm0, %v483_v24  ;;  %v4230_v40 = vpack.c.bf16 %v1130_v39, %v1127_v36  ;;  %v1126_v41 = vld [vmem:[%s6897_s3] sm:$0xff]  ;;  %v1133_v46 = vld [vmem:[%s6897_s3 + $0x38] sm:$0xff]  ;;  %v1136_v47 = vld [vmem:[%s6897_s3 + $0x50] sm:$0xff] }
  0x11   : > { %s4928_s16 = scalar_lea.vmem %s6894_s0, %s3631_s22  ;;  %v486_v44 = vld [vmem:[%s6895_s1 + $0xc0] sm:$0x3f]  ;;  %v4232_v45 = vpack.c.bf16 %v1129_v42, %v1126_v41  ;;  %v1132_v48 = vld [vmem:[%s6897_s3 + $0x30] sm:$0xff]  ;;  %v1135_v49 = vld [vmem:[%s6897_s3 + $0x48] sm:$0xff]  ;;  %v4234_v53 = vpack.c.bf16 %v1136_v47, %v1133_v46  ;;  %s6857_s30 = scalar_lea.vmem %s6907_s13, %s3631_s22 }
  0x12   : > { %v4938_v29 = vld [vmem:[%s4928_s16] sm:$0xff]  ;;  %4221 = vmatpush1.bf16.msra.mxu1 %v4220_v26  ;;  %v4964_v37 = vld [vmem:[%s4928_s16 + $0x8] sm:$0xff]  ;;  %v4983_v43 = vld [vmem:[%s4928_s16 + $0x10] sm:$0xff]  ;;  %v4236_v54 = vpack.c.bf16 %v1135_v49, %v1132_v48 }
  0x13   : > { %3635 = vmatpush1.msk.msra.mxu0 %vm563_vm0, %v482_v27  ;;  %3652 = vmatprep.subr.msk.mxu1 %vm563_vm0, %v485_v28  ;;  %v1139_v50 = vld [vmem:[%s6897_s3 + $0x68] sm:$0xff]  ;;  %v1142_v51 = vld [vmem:[%s6897_s3 + $0x80] sm:$0xff]  ;;  %v5013_v52 = vld [vmem:[%s4928_s16 + $0x18] sm:$0xff] }
  0x14   : > { %3636 = vmatmul.mubr.msk.f32.vlgmr.msra.gmra.mrb[0].mxu0 %vm514_vm1, %v4938_v29  ;;  %4223 = vmatprep.subr.bf16.mxu0 %v4222_v34  ;;  %v4238_v55 = vpack.c.bf16 %v1142_v51, %v1139_v50  ;;  %v1138_v56 = vld [vmem:[%s6897_s3 + $0x60] sm:$0xff]  ;;  %v1141_v57 = vld [vmem:[%s6897_s3 + $0x78] sm:$0xff]  ;;  %v1148_v59 = vld [vmem:[%s6897_s3 + $0xb0] sm:$0xff] }
  0x15   : > { %649 = vmatprep.mubr.f32.mxu0 %v4783_v8  ;;  %4225 = vmatpush3.bf16.msra.mxu0 %v4222_v34  ;;  %v1145_v58 = vld [vmem:[%s6897_s3 + $0x98] sm:$0xff]  ;;  %v1176_v60 = vld [vmem:[%s6897_s3 + $0x190] sm:$0xff]  ;;  %v5039_v61 = vld [vmem:[%s4928_s16 + $0x20] sm:$0xff]  ;;  %v4240_v63 = vpack.c.bf16 %v1141_v57, %v1138_v56 }
  0x16   : > { %3653 = vmatpush1.msk.msra.mxu1 %vm563_vm0, %v484_v31  ;;  %4227 = vmatprep.subr.bf16.mxu0 %v4226_v38  ;;  %v1179_v62 = vld [vmem:[%s6897_s3 + $0x1a8] sm:$0xff]  ;;  %v4242_v1 = vpack.c.bf16 %v1148_v59, %v1145_v58  ;;  %v1144_v2 = vld [vmem:[%s6897_s3 + $0x90] sm:$0xff]  ;;  %v1154_v5 = vld [vmem:[%s6897_s3 + $0xe0] sm:$0xff] }
  0x17   : > { %3654 = vmatmul.mubr.msk.f32.vlgmr.msra.gmra.mrb[0].mxu1 %vm514_vm1, %v4938_v29  ;;  %4231 = vmatprep.subr.bf16.mxu1 %v4230_v40  ;;  %v4382_v0 = vpack.c.bf16 %v1179_v62, %v1176_v60  ;;  %v1147_v3 = vld [vmem:[%s6897_s3 + $0xa8] sm:$0xff]  ;;  %v1150_v10 = vld [vmem:[%s6897_s3 + $0xc0] sm:$0xff]  ;;  %v1153_v11 = vld [vmem:[%s6897_s3 + $0xd8] sm:$0xff] }
  0x18   : > { %3637 = vmatmul.mubr.msk.f32.gmra.mrb[2].mxu0 %vm514_vm1, %v4964_v37  ;;  %810 = vmatprep.mubr.f32.mxu1 %v4783_v8  ;;  %v1151_v4 = vld [vmem:[%s6897_s3 + $0xc8] sm:$0xff]  ;;  %v4244_v7 = vpack.c.bf16 %v1147_v3, %v1144_v2  ;;  %v1157_v12 = vld [vmem:[%s6897_s3 + $0xf8] sm:$0xff]  ;;  %v1160_v13 = vld [vmem:[%s6897_s3 + $0x110] sm:$0xff]  ;;  %v4248_v15 = vpack.c.bf16 %v1153_v11, %v1150_v10 }
  0x19   : > { %655 = vmatprep.mubr.f32.mxu0 %v4783_v8  ;;  %4229 = vmatpush3.bf16.msra.mxu0 %v4226_v38  ;;  %v5063_v6 = vld [vmem:[%s4928_s16 + $0x28] sm:$0xff]  ;;  %v4246_v9 = vpack.c.bf16 %v1154_v5, %v1151_v4  ;;  %v5084_v14 = vld [vmem:[%s4928_s16 + $0x30] sm:$0xff]  ;;  %v4250_v16 = vpack.c.bf16 %v1160_v13, %v1157_v12  ;;  %v1166_v20 = vld [vmem:[%s6897_s3 + $0x140] sm:$0xff] }
  0x1a   : > { %4054 = vmatprep.subr.msk.mxu0 %vm563_vm0, %v486_v44  ;;  %4233 = vmatpush1.bf16.msra.mxu1 %v4232_v45  ;;  %v1156_v17 = vld [vmem:[%s6897_s3 + $0xf0] sm:$0xff]  ;;  %v1159_v18 = vld [vmem:[%s6897_s3 + $0x108] sm:$0xff]  ;;  %v5105_v21 = vld [vmem:[%s4928_s16 + $0x38] sm:$0xff] }
  0x1b   : > { %3655 = vmatmul.mubr.msk.f32.gmra.mrb[2].mxu1 %vm514_vm1, %v4964_v37  ;;  %4235 = vmatprep.subr.bf16.mxu1 %v4234_v53  ;;  %v1163_v19 = vld [vmem:[%s6897_s3 + $0x128] sm:$0xff]  ;;  %v4252_v22 = vpack.c.bf16 %v1159_v18, %v1156_v17  ;;  %v1162_v24 = vld [vmem:[%s6897_s3 + $0x120] sm:$0xff]  ;;  %v1165_v25 = vld [vmem:[%s6897_s3 + $0x138] sm:$0xff] }
  0x1c   : > { %3638 = vmatmul.mubr.msk.f32.gmra.mrb[4].mxu0 %vm514_vm1, %v4983_v43  ;;  %816 = vmatprep.mubr.f32.mxu1 %v4783_v8  ;;  %v4254_v23 = vpack.c.bf16 %v1166_v20, %v1163_v19  ;;  %v1169_v26 = vld [vmem:[%s6897_s3 + $0x158] sm:$0xff]  ;;  %v1172_v27 = vld [vmem:[%s6897_s3 + $0x170] sm:$0xff]  ;;  %v5126_v28 = vld [vmem:[%s4928_s16 + $0x40] sm:$0xff]  ;;  %v4256_v30 = vpack.c.bf16 %v1165_v25, %v1162_v24 }
  0x1d   : > { %661 = vmatprep.mubr.f32.mxu0 %v4783_v8  ;;  %4055 = vmatpush3.msk.msra.mxu0 %vm563_vm0, %v486_v44  ;;  %v4258_v31 = vpack.c.bf16 %v1172_v27, %v1169_v26  ;;  %v1168_v32 = vld [vmem:[%s6897_s3 + $0x150] sm:$0xff]  ;;  %v1171_v33 = vld [vmem:[%s6897_s3 + $0x168] sm:$0xff]  ;;  %v1178_v35 = vld [vmem:[%s6897_s3 + $0x1a0] sm:$0xff] }
  0x1e   : > { %4237 = vmatpush1.bf16.msra.mxu1 %v4236_v54  ;;  %4383 = vmatprep.subr.bf16.mxu0 %v4382_v0  ;;  %v1175_v34 = vld [vmem:[%s6897_s3 + $0x188] sm:$0xff]  ;;  %v4260_v38 = vpack.c.bf16 %v1171_v33, %v1168_v32  ;;  %v1174_v40 = vld [vmem:[%s6897_s3 + $0x180] sm:$0xff]  ;;  %v1177_v41 = vld [vmem:[%s6897_s3 + $0x198] sm:$0xff] }
  0x1f   : > { %3656 = vmatmul.mubr.msk.f32.gmra.mrb[4].mxu1 %vm514_vm1, %v4983_v43  ;;  %4239 = vmatprep.subr.bf16.mxu1 %v4238_v55  ;;  %v5147_v36 = vld [vmem:[%s4928_s16 + $0x48] sm:$0xff]  ;;  %v4262_v39 = vpack.c.bf16 %v1178_v35, %v1175_v34  ;;  %v1181_v42 = vld [vmem:[%s6897_s3 + $0x1b8] sm:$0xff]  ;;  %v1184_v44 = vld [vmem:[%s6897_s3 + $0x1d0] sm:$0xff]  ;;  %v4264_v46 = vpack.c.bf16 %v1177_v41, %v1174_v40 }
  0x20   : > { %3639 = vmatmul.mubr.msk.f32.gmra.mrb[6].mxu0 %vm514_vm1, %v5013_v52  ;;  %822 = vmatprep.mubr.f32.mxu1 %v4783_v8  ;;  %v5168_v45 = vld [vmem:[%s4928_s16 + $0x50] sm:$0xff]  ;;  %v4266_v47 = vpack.c.bf16 %v1184_v44, %v1181_v42  ;;  %v1183_v49 = vld [vmem:[%s6897_s3 + $0x1c8] sm:$0xff]  ;;  %v1190_v51 = vld [vmem:[%s6897_s3 + $0x200] sm:$0xff] }
  0x21   : > { %667 = vmatprep.mubr.f32.mxu0 %v4783_v8  ;;  %v1180_v48 = vld [vmem:[%s6897_s3 + $0x1b0] sm:$0xff]  ;;  %v1187_v50 = vld [vmem:[%s6897_s3 + $0x1e8] sm:$0xff]  ;;  %v5189_v53 = vld [vmem:[%s4928_s16 + $0x58] sm:$0xff] }
  0x22   : > { %4241 = vmatpush1.bf16.msra.mxu1 %v4240_v63  ;;  %v4268_v54 = vpack.c.bf16 %v1183_v49, %v1180_v48  ;;  %v4270_v55 = vpack.c.bf16 %v1190_v51, %v1187_v50  ;;  %v1186_v56 = vld [vmem:[%s6897_s3 + $0x1e0] sm:$0xff]  ;;  %v1189_v57 = vld [vmem:[%s6897_s3 + $0x1f8] sm:$0xff]  ;;  %v1196_v59 = vld [vmem:[%s6897_s3 + $0x230] sm:$0xff] }
  0x23   : > { %3657 = vmatmul.mubr.msk.f32.gmra.mrb[6].mxu1 %vm514_vm1, %v5013_v52  ;;  %4243 = vmatprep.subr.bf16.mxu1 %v4242_v1  ;;  %v1193_v58 = vld [vmem:[%s6897_s3 + $0x218] sm:$0xff]  ;;  %v5210_v60 = vld [vmem:[%s4928_s16 + $0x60] sm:$0xff]  ;;  %v4272_v62 = vpack.c.bf16 %v1189_v57, %v1186_v56  ;;  %v1192_v0 = vld [vmem:[%s6897_s3 + $0x210] sm:$0xff] }
  0x24   : > { %3640 = vmatmul.mubr.msk.f32.gmra.mrb[8].mxu0 %vm514_vm1, %v5039_v61  ;;  %828 = vmatprep.mubr.f32.mxu1 %v4783_v8  ;;  %v4274_v63 = vpack.c.bf16 %v1196_v59, %v1193_v58  ;;  %v1195_v1 = vld [vmem:[%s6897_s3 + $0x228] sm:$0xff]  ;;  %v1202_v3 = vld [vmem:[%s6897_s3 + $0x260] sm:$0xff]  ;;  %v1201_v10 = vld [vmem:[%s6897_s3 + $0x258] sm:$0xff] }
  0x25   : > { %673 = vmatprep.mubr.f32.mxu0 %v4783_v8  ;;  %v1199_v2 = vld [vmem:[%s6897_s3 + $0x248] sm:$0xff]  ;;  %v4276_v5 = vpack.c.bf16 %v1195_v1, %v1192_v0  ;;  %v1205_v11 = vld [vmem:[%s6897_s3 + $0x278] sm:$0xff]  ;;  %v1208_v12 = vld [vmem:[%s6897_s3 + $0x290] sm:$0xff] }
  0x26   : > { %4245 = vmatpush1.bf16.msra.mxu1 %v4244_v7  ;;  %v5231_v4 = vld [vmem:[%s4928_s16 + $0x68] sm:$0xff]  ;;  %v4278_v7 = vpack.c.bf16 %v1202_v3, %v1199_v2  ;;  %v5252_v13 = vld [vmem:[%s4928_s16 + $0x70] sm:$0xff]  ;;  %v1214_v20 = vld [vmem:[%s6897_s3 + $0x2c0] sm:$0xff] }
  0x27   : > { %3658 = vmatmul.mubr.msk.f32.gmra.mrb[8].mxu1 %vm514_vm1, %v5039_v61  ;;  %4247 = vmatprep.subr.bf16.mxu1 %v4246_v9  ;;  %v1198_v9 = vld [vmem:[%s6897_s3 + $0x240] sm:$0xff]  ;;  %v1204_v17 = vld [vmem:[%s6897_s3 + $0x270] sm:$0xff]  ;;  %v1207_v18 = vld [vmem:[%s6897_s3 + $0x288] sm:$0xff] }
  0x28   : > { %3641 = vmatmul.mubr.msk.f32.gmra.mrb[10].mxu0 %vm514_vm1, %v5063_v6  ;;  %834 = vmatprep.mubr.f32.mxu1 %v4783_v8  ;;  %v1211_v19 = vld [vmem:[%s6897_s3 + $0x2a8] sm:$0xff]  ;;  %v1182_v25 = vld [vmem:[%s6897_s3 + $0x1c0] sm:$0xff]  ;;  %v4284_v26 = vpack.c.bf16 %v1207_v18, %v1204_v17  ;;  %v1185_v27 = vld [vmem:[%s6897_s3 + $0x1d8] sm:$0xff] }
  0x29   : > { %679 = vmatprep.mubr.f32.mxu0 %v4783_v8  ;;  %v1131_v24 = vld [vmem:[%s6897_s3 + $0x28] sm:$0xff]  ;;  %v1213_v32 = vld [vmem:[%s6897_s3 + $0x2b8] sm:$0xff]  ;;  %v4386_v34 = vpack.c.bf16 %v1185_v27, %v1182_v25  ;;  %v1134_v35 = vld [vmem:[%s6897_s3 + $0x40] sm:$0xff] }
  0x2a   : > { %4249 = vmatpush1.bf16.msra.mxu1 %v4248_v15  ;;  %v4280_v15 = vpack.c.bf16 %v1201_v10, %v1198_v9  ;;  %v1188_v40 = vld [vmem:[%s6897_s3 + $0x1f0] sm:$0xff]  ;;  %v1146_v49 = vld [vmem:[%s6897_s3 + $0xa0] sm:$0xff]  ;;  %v1149_v50 = vld [vmem:[%s6897_s3 + $0xb8] sm:$0xff] }
  0x2b   : > { %3659 = vmatmul.mubr.msk.f32.gmra.mrb[10].mxu1 %vm514_vm1, %v5063_v6  ;;  %4251 = vmatprep.subr.bf16.mxu1 %v4250_v16  ;;  %v4282_v16 = vpack.c.bf16 %v1208_v12, %v1205_v11  ;;  %v1140_v44 = vld [vmem:[%s6897_s3 + $0x70] sm:$0xff]  ;;  %v1155_v56 = vld [vmem:[%s6897_s3 + $0xe8] sm:$0xff]  ;;  %v1206_v57 = vld [vmem:[%s6897_s3 + $0x280] sm:$0xff] }
  0x2c   : > { %3642 = vmatmul.mubr.msk.f32.gmra.mrb[12].mxu0 %vm514_vm1, %v5084_v14  ;;  %840 = vmatprep.mubr.f32.mxu1 %v4783_v8  ;;  %v1200_v51 = vld [vmem:[%s6897_s3 + $0x250] sm:$0xff]  ;;  %v1158_v59 = vld [vmem:[%s6897_s3 + $0x100] sm:$0xff]  ;;  %v1167_v2 = vld [vmem:[%s6897_s3 + $0x148] sm:$0xff] }
  0x2d   : > { %685 = vmatprep.mubr.f32.mxu0 %v4783_v8  ;;  %v1164_v1 = vld [vmem:[%s6897_s3 + $0x130] sm:$0xff]  ;;  %v1217_v3 = vld [vmem:[%s6897_s3 + $0x2d8] sm:$0xff]  ;;  %v1219_v9 = vld [vmem:[%s6897_s3 + $0x2e8] sm:$0xff] }
  0x2e   : > { %4253 = vmatpush1.bf16.msra.mxu1 %v4252_v22  ;;  %v5273_v22 = vld [vmem:[%s4928_s16 + $0x78] sm:$0xff]  ;;  %v4408_v11 = vpack.c.bf16 %v1167_v2, %v1164_v1  ;;  %v1223_v17 = vld [vmem:[%s6897_s3 + $0x308] sm:$0xff]  ;;  %v1234_v2 = vld [vmem:[%s6897_s3 + $0x360] sm:$0xff] }
  0x2f   : > { %3660 = vmatmul.mubr.msk.f32.gmra.mrb[12].mxu1 %vm514_vm1, %v5084_v14  ;;  %4255 = vmatprep.subr.bf16.mxu1 %v4254_v23  ;;  %v1128_v23 = vld [vmem:[%s6897_s3 + $0x10] sm:$0xff]  ;;  %v1221_v10 = vld [vmem:[%s6897_s3 + $0x2f8] sm:$0xff]  ;;  %vm4590_vm7 = vmpackc.low %vm3179_vm5, %vm4785_vm6 }
  0x30   : > { %3643 = vmatmul.mubr.msk.f32.gmra.mrb[14].mxu0 %vm514_vm1, %v5105_v21  ;;  %846 = vmatprep.mubr.f32.mxu1 %v4783_v8  ;;  %v4384_v33 = vpack.c.bf16 %v1131_v24, %v1128_v23  ;;  %v489_v24 = vlaneseq }
  0x31   : > { %691 = vmatprep.mubr.f32.mxu0 %v4783_v8 }
  0x32   : > { %4257 = vmatpush1.bf16.msra.mxu1 %v4256_v30  ;;  %v4286_v30 = vpack.c.bf16 %v1214_v20, %v1211_v19  ;;  %v1272_v20 = vld [vmem:[%s6897_s3 + $0x490] sm:$0xff] }
  0x33   : > { %3661 = vmatmul.mubr.msk.f32.gmra.mrb[14].mxu1 %vm514_vm1, %v5105_v21  ;;  %4259 = vmatprep.subr.bf16.mxu1 %v4258_v31  ;;  %v1210_v31 = vld [vmem:[%s6897_s3 + $0x2a0] sm:$0xff] }
  0x34   : > { %3644 = vmatmul.mubr.msk.f32.gmra.mrb[16].mxu0 %vm514_vm1, %v5126_v28  ;;  %852 = vmatprep.mubr.f32.mxu1 %v4783_v8 }
  0x35   : > { %697 = vmatprep.mubr.f32.mxu0 %v4783_v8 }
  0x36   : > { %4261 = vmatpush1.bf16.msra.mxu1 %v4260_v38  ;;  %v1137_v38 = vld [vmem:[%s6897_s3 + $0x58] sm:$0xff] }
  0x37   : > { %3662 = vmatmul.mubr.msk.f32.gmra.mrb[16].mxu1 %vm514_vm1, %v5126_v28  ;;  %4263 = vmatprep.subr.bf16.mxu1 %v4262_v39  ;;  %v4288_v39 = vpack.c.bf16 %v1213_v32, %v1210_v31  ;;  %v4388_v41 = vpack.c.bf16 %v1137_v38, %v1134_v35  ;;  %v1222_v32 = vld [vmem:[%s6897_s3 + $0x300] sm:$0xff]  ;;  %v1229_v38 = vld [vmem:[%s6897_s3 + $0x338] sm:$0xff] }
  0x38   : > { %3645 = vmatmul.mubr.msk.f32.gmra.mrb[18].mxu0 %vm514_vm1, %v5147_v36  ;;  %858 = vmatprep.mubr.f32.mxu1 %v4783_v8 }
  0x39   : > { %703 = vmatprep.mubr.f32.mxu0 %v4783_v8 }
  0x3a   : > { %4265 = vmatpush1.bf16.msra.mxu1 %v4264_v46  ;;  %v1143_v46 = vld [vmem:[%s6897_s3 + $0x88] sm:$0xff] }
  0x3b   : > { %3663 = vmatmul.mubr.msk.f32.gmra.mrb[18].mxu1 %vm514_vm1, %v5147_v36  ;;  %4267 = vmatprep.subr.bf16.mxu1 %v4266_v47  ;;  %v4392_v47 = vpack.c.bf16 %v1143_v46, %v1140_v44  ;;  %v1281_v44 = vld [vmem:[%s6897_s3 + $0x4d8] sm:$0xff] }
  0x3c   : > { %3646 = vmatmul.mubr.msk.f32.gmra.mrb[20].mxu0 %vm514_vm1, %v5168_v45  ;;  %864 = vmatprep.mubr.f32.mxu1 %v4783_v8 }
  0x3d   : > { %709 = vmatprep.mubr.f32.mxu0 %v4783_v8 }
  0x3e   : > { %4269 = vmatpush1.bf16.msra.mxu1 %v4268_v54 }
  0x3f   : > { %3664 = vmatmul.mubr.msk.f32.gmra.mrb[20].mxu1 %vm514_vm1, %v5168_v45  ;;  %4271 = vmatprep.subr.bf16.mxu1 %v4270_v55  ;;  %v1152_v55 = vld [vmem:[%s6897_s3 + $0xd0] sm:$0xff] }
  0x40   : > { %3647 = vmatmul.mubr.msk.f32.gmra.mrb[22].mxu0 %vm514_vm1, %v5189_v53  ;;  %870 = vmatprep.mubr.f32.mxu1 %v4783_v8 }
  0x41   : > { %715 = vmatprep.mubr.f32.mxu0 %v4783_v8 }
  0x42   : > { %4273 = vmatpush1.bf16.msra.mxu1 %v4272_v62  ;;  %v1161_v62 = vld [vmem:[%s6897_s3 + $0x118] sm:$0xff] }
  0x43   : > { %3665 = vmatmul.mubr.msk.f32.gmra.mrb[22].mxu1 %vm514_vm1, %v5189_v53  ;;  %4275 = vmatprep.subr.bf16.mxu1 %v4274_v63  ;;  %v1212_v63 = vld [vmem:[%s6897_s3 + $0x2b0] sm:$0xff] }
  0x44   : > { %3648 = vmatmul.mubr.msk.f32.gmra.mrb[24].mxu0 %vm514_vm1, %v5210_v60  ;;  %876 = vmatprep.mubr.f32.mxu1 %v4783_v8 }
  0x45   : > { %721 = vmatprep.mubr.f32.mxu0 %v4783_v8 }
  0x46   : > { %4277 = vmatpush1.bf16.msra.mxu1 %v4276_v5 }
  0x47   : > { %3666 = vmatmul.mubr.msk.f32.gmra.mrb[24].mxu1 %vm514_vm1, %v5210_v60  ;;  %4279 = vmatprep.subr.bf16.mxu1 %v4278_v7  ;;  %v1216_v7 = vld [vmem:[%s6897_s3 + $0x2d0] sm:$0xff] }
  0x48   : > { %3649 = vmatmul.mubr.msk.f32.gmra.mrb[26].mxu0 %vm514_vm1, %v5231_v4  ;;  %882 = vmatprep.mubr.f32.mxu1 %v4783_v8  ;;  %v4292_v12 = vpack.c.bf16 %v1219_v9, %v1216_v7 }
  0x49   : > { %727 = vmatprep.mubr.f32.mxu0 %v4783_v8 }
  0x4a   : > { %4281 = vmatpush1.bf16.msra.mxu1 %v4280_v15  ;;  %v1170_v15 = vld [vmem:[%s6897_s3 + $0x160] sm:$0xff] }
  0x4b   : > { %3667 = vmatmul.mubr.msk.f32.gmra.mrb[26].mxu1 %vm514_vm1, %v5231_v4  ;;  %4283 = vmatprep.subr.bf16.mxu1 %v4282_v16  ;;  %v1173_v16 = vld [vmem:[%s6897_s3 + $0x178] sm:$0xff] }
  0x4c   : > { %3650 = vmatmul.mubr.msk.f32.gmra.mrb[28].mxu0 %vm514_vm1, %v5252_v13  ;;  %888 = vmatprep.mubr.f32.mxu1 %v4783_v8  ;;  %v4412_v19 = vpack.c.bf16 %v1173_v16, %v1170_v15  ;;  %v1239_v15 = vld [vmem:[%s6897_s3 + $0x388] sm:$0xff] }
  0x4d   : > { %733 = vmatprep.mubr.f32.mxu0 %v4783_v8 }
  0x4e   : > { %4285 = vmatpush1.bf16.msra.mxu1 %v4284_v26 }
  0x4f   : > { %3668 = vmatmul.mubr.msk.f32.gmra.mrb[28].mxu1 %vm514_vm1, %v5252_v13  ;;  %4287 = vmatprep.subr.bf16.mxu1 %v4286_v30 }
  0x50   : > { %3651 = vmatmul.mubr.msk.f32.gmra.mrb[30].mxu0 %vm514_vm1, %v5273_v22  ;;  %894 = vmatprep.mubr.f32.mxu1 %v4783_v8 }
  0x51   : > { %4056 = vmatprep.mubr.msk.f32.mxu0 %vm514_vm1, %v4938_v29  ;;  %v1191_v29 = vld [vmem:[%s6897_s3 + $0x208] sm:$0xff] }
  0x52   : > { %v4390_v42 = vpack.c.bf16 %v1191_v29, %v1188_v40  ;;  %4289 = vmatpush1.bf16.msra.mxu1 %v4288_v39  ;;  %v1224_v39 = vld [vmem:[%s6897_s3 + $0x310] sm:$0xff]  ;;  %v1227_v40 = vld [vmem:[%s6897_s3 + $0x328] sm:$0xff] }
  0x53   : > { %3669 = vmatmul.mubr.msk.f32.gmra.mrb[30].mxu1 %vm514_vm1, %v5273_v22 }
  0x54   : > { %4057 = vmatmul.mubr.msk.f32.vlgmr.msra.gmra.mrb[32].mxu0 %vm514_vm1, %v4964_v37  ;;  %v1194_v37 = vld [vmem:[%s6897_s3 + $0x220] sm:$0xff] }
  0x55   : > { %4059 = vmatprep.mubr.msk.f32.mxu0 %vm514_vm1, %v4983_v43  ;;  %4385 = vmatpush3.bf16.msra.mxu0 %v4384_v33  ;;  %v1197_v43 = vld [vmem:[%s6897_s3 + $0x238] sm:$0xff] }
  0x56   : > { %4387 = vmatprep.subr.bf16.mxu0 %v4386_v34  ;;  %v4394_v48 = vpack.c.bf16 %v1197_v43, %v1194_v37  ;;  %v1225_v33 = vld [vmem:[%s6897_s3 + $0x318] sm:$0xff] }
  0x58   : > { %4060 = vmatmul.mubr.msk.f32.gmra.mrb[34].mxu0 %vm514_vm1, %v5013_v52  ;;  %v1203_v52 = vld [vmem:[%s6897_s3 + $0x268] sm:$0xff] }
  0x59   : > { %4062 = vmatprep.mubr.msk.f32.mxu0 %vm514_vm1, %v5039_v61  ;;  %4389 = vmatpush3.bf16.msra.mxu0 %v4388_v41  ;;  %v4396_v61 = vpack.c.bf16 %v1149_v50, %v1146_v49  ;;  %v4398_v54 = vpack.c.bf16 %v1203_v52, %v1200_v51  ;;  %v1232_v41 = vld [vmem:[%s6897_s3 + $0x350] sm:$0xff]  ;;  %v1231_v49 = vld [vmem:[%s6897_s3 + $0x348] sm:$0xff]  ;;  %v4416_v50 = vpack.c.bf16 %v1227_v40, %v1224_v39 }
  0x5a   : > { %4391 = vmatprep.subr.bf16.mxu0 %v4390_v42  ;;  %v1278_v42 = vld [vmem:[%s6897_s3 + $0x4c0] sm:$0xff]  ;;  %v1247_v40 = vld [vmem:[%s6897_s3 + $0x3c8] sm:$0xff] }
  0x5c   : > { %4063 = vmatmul.mubr.msk.f32.gmra.mrb[36].mxu0 %vm514_vm1, %v5063_v6  ;;  %v1209_v6 = vld [vmem:[%s6897_s3 + $0x298] sm:$0xff] }
  0x5d   : > { %4065 = vmatprep.mubr.msk.f32.mxu0 %vm514_vm1, %v5084_v14  ;;  %4393 = vmatpush3.bf16.msra.mxu0 %v4392_v47  ;;  %v4400_v14 = vpack.c.bf16 %v1155_v56, %v1152_v55  ;;  %v4402_v58 = vpack.c.bf16 %v1209_v6, %v1206_v57  ;;  %v4296_v47 = vpack.c.bf16 %v1225_v33, %v1222_v32  ;;  %v1235_v56 = vld [vmem:[%s6897_s3 + $0x368] sm:$0xff]  ;;  %v1230_v6 = vld [vmem:[%s6897_s3 + $0x340] sm:$0xff] }
  0x5e   : > { %4395 = vmatprep.subr.bf16.mxu0 %v4394_v48  ;;  %v1228_v48 = vld [vmem:[%s6897_s3 + $0x330] sm:$0xff]  ;;  %v4298_v55 = vpack.c.bf16 %v1232_v41, %v1229_v38  ;;  %v4418_v57 = vpack.c.bf16 %v1281_v44, %v1278_v42  ;;  %v1242_v41 = vld [vmem:[%s6897_s3 + $0x3a0] sm:$0xff]  ;;  %v1245_v42 = vld [vmem:[%s6897_s3 + $0x3b8] sm:$0xff] }
  0x5f   : > { %v4300_v1 = vpack.c.bf16 %v1231_v49, %v1228_v48 }
  0x60   : > { %4066 = vmatmul.mubr.msk.f32.gmra.mrb[38].mxu0 %vm514_vm1, %v5105_v21  ;;  %v1215_v21 = vld [vmem:[%s6897_s3 + $0x2c8] sm:$0xff] }
  0x61   : > { %4068 = vmatprep.mubr.msk.f32.mxu0 %vm514_vm1, %v5126_v28  ;;  %4397 = vmatpush3.bf16.msra.mxu0 %v4396_v61  ;;  %v4404_v28 = vpack.c.bf16 %v1161_v62, %v1158_v59  ;;  %v4406_v0 = vpack.c.bf16 %v1215_v21, %v1212_v63  ;;  %v1238_v59 = vld [vmem:[%s6897_s3 + $0x380] sm:$0xff]  ;;  %v1284_v62 = vld [vmem:[%s6897_s3 + $0x4f0] sm:$0xff]  ;;  %v1287_v63 = vld [vmem:[%s6897_s3 + $0x508] sm:$0xff] }
  0x62   : > { %4399 = vmatprep.subr.bf16.mxu0 %v4398_v54 }
  0x64   : > { %4069 = vmatmul.mubr.msk.f32.gmra.mrb[40].mxu0 %vm514_vm1, %v5147_v36  ;;  %v1220_v36 = vld [vmem:[%s6897_s3 + $0x2f0] sm:$0xff] }
  0x65   : > { %4071 = vmatprep.mubr.msk.f32.mxu0 %vm514_vm1, %v5168_v45  ;;  %4401 = vmatpush3.bf16.msra.mxu0 %v4400_v14  ;;  %v1218_v45 = vld [vmem:[%s6897_s3 + $0x2e0] sm:$0xff]  ;;  %v4290_v5 = vpack.c.bf16 %v1220_v36, %v1217_v3  ;;  %v1233_v14 = vld [vmem:[%s6897_s3 + $0x358] sm:$0xff] }
  0x66   : > { %4403 = vmatprep.subr.bf16.mxu0 %v4402_v58  ;;  %v1237_v3 = vld [vmem:[%s6897_s3 + $0x378] sm:$0xff]  ;;  %v4420_v36 = vpack.c.bf16 %v1233_v14, %v1230_v6 }
  0x67   : > { %4291 = vmatprep.subr.bf16.mxu1 %v4290_v5 }
  0x68   : > { %4072 = vmatmul.mubr.msk.f32.gmra.mrb[42].mxu0 %vm514_vm1, %v5189_v53  ;;  %v4410_v53 = vpack.c.bf16 %v1221_v10, %v1218_v45  ;;  %4293 = vmatpush1.bf16.msra.mxu1 %v4292_v12  ;;  %v4302_v10 = vpack.c.bf16 %v1238_v59, %v1235_v56  ;;  %v4422_v12 = vpack.c.bf16 %v1287_v63, %v1284_v62  ;;  %v1253_v59 = vld [vmem:[%s6897_s3 + $0x3f8] sm:$0xff]  ;;  %v1248_v63 = vld [vmem:[%s6897_s3 + $0x3d0] sm:$0xff] }
  0x69   : > { %4074 = vmatprep.mubr.msk.f32.mxu0 %vm514_vm1, %v5210_v60  ;;  %4405 = vmatpush3.bf16.msra.mxu0 %v4404_v28  ;;  %v1226_v60 = vld [vmem:[%s6897_s3 + $0x320] sm:$0xff] }
  0x6a   : > { %4407 = vmatprep.subr.bf16.mxu0 %v4406_v0  ;;  %v4294_v18 = vpack.c.bf16 %v1226_v60, %v1223_v17  ;;  %v1244_v17 = vld [vmem:[%s6897_s3 + $0x3b0] sm:$0xff]  ;;  %v1290_v60 = vld [vmem:[%s6897_s3 + $0x520] sm:$0xff] }
  0x6c   : > { %4075 = vmatmul.mubr.msk.f32.gmra.mrb[44].mxu0 %vm514_vm1, %v5231_v4  ;;  %4295 = vmatprep.subr.bf16.mxu1 %v4294_v18  ;;  %v1275_v4 = vld [vmem:[%s6897_s3 + $0x4a8] sm:$0xff]  ;;  %v1293_v18 = vld [vmem:[%s6897_s3 + $0x538] sm:$0xff] }
  0x6d   : > { %4077 = vmatprep.mubr.msk.f32.mxu0 %vm514_vm1, %v5252_v13  ;;  %4409 = vmatpush3.bf16.msra.mxu0 %v4408_v11  ;;  %v4414_v23 = vpack.c.bf16 %v1275_v4, %v1272_v20  ;;  %v5434_v13 = vshrl.u32 %v489_v24, 7  ;;  %v1241_v11 = vld [vmem:[%s6897_s3 + $0x398] sm:$0xff]  ;;  %v1240_v24 = vld [vmem:[%s6897_s3 + $0x390] sm:$0xff] }
  0x6e   : > { %4411 = vmatprep.subr.bf16.mxu0 %v4410_v53  ;;  %v1236_v53 = vld [vmem:[%s6897_s3 + $0x370] sm:$0xff]  ;;  %v4306_v39 = vpack.c.bf16 %v1244_v17, %v1241_v11  ;;  %v1255_v11 = vld [vmem:[%s6897_s3 + $0x408] sm:$0xff] }
  0x6f   : > { %v5437_v25 = vsub.s32 0, %v5434_v13  ;;  %v5445_v26 = vsub.s32 1, %v5434_v13  ;;  %v4424_v32 = vpack.c.bf16 %v1239_v15, %v1236_v53 }
  0x70   : > { %4078 = vmatmul.mubr.msk.f32.gmra.mrb[46].mxu0 %vm514_vm1, %v5273_v22  ;;  %v5442_v22 = vld [vmem:[%s6896_s2] sm:$0x1f] }
  0x71   : > { %4413 = vmatpush3.bf16.msra.mxu0 %v4412_v19  ;;  %v5449_v27 = vrot.slane %v5442_v22, %v5437_v25  ;;  %v5453_v30 = vrot.slane %v5442_v22, %v5445_v26 }
  0x72   : > { %4415 = vmatprep.subr.bf16.mxu0 %v4414_v23  ;;  %v4304_v23 = vpack.c.bf16 %v1237_v3, %v1234_v2  ;;  %v1302_v2 = vld [vmem:[%s6897_s3 + $0x580] sm:$0xff]  ;;  %v1305_v3 = vld [vmem:[%s6897_s3 + $0x598] sm:$0xff] }
  0xe7   : > { %v645_v31 = vpop.f32.mrb[0].mxu0 }
  0xe8   : > { %v646_v34 = vadd.f32 %v645_v31, %v5449_v27  ;;  %v647_v35 = vpop.f32.mrb[1].mxu0  ;;  %v1243_v31 = vld [vmem:[%s6897_s3 + $0x3a8] sm:$0xff] }
  0xe9   : > { %v648_v29 = vadd.f32 %v647_v35, %v5453_v30 }
  0xea   : > { %v5481_v46 = vpop.f32.mrb[0].mxu1  ;;  %v1046_v52 = vmax.f32 %v646_v34, 0.0 }
  0xeb   : > { %v1047_v37 = vmax.f32 %v648_v29, 0.0  ;;  %v651_v43 = vpop.f32.mrb[2].mxu0  ;;  %v5489_v51 = vpop.f32.mrb[1].mxu1  ;;  %v4426_v29 = vpack.c.bf16 %v1293_v18, %v1290_v60  ;;  %v1259_v18 = vld [vmem:[%s6897_s3 + $0x428] sm:$0xff] }
  0xec   : > { %v652_v61 = vadd.f32 %v651_v43, %v5449_v27  ;;  %v653_v54 = vpop.f32.mrb[3].mxu0  ;;  %v1296_v43 = vld [vmem:[%s6897_s3 + $0x550] sm:$0xff] }
  0xed   : > { %v654_v58 = vadd.f32 %v653_v54, %v5453_v30  ;;  %1484 = vmatprep.mubr.f32.mxu1 %v1047_v37  ;;  %1967 = vmatprep.mubr.f32.mxu0 %v1047_v37  ;;  %v1250_v37 = vld [vmem:[%s6897_s3 + $0x3e0] sm:$0xff]  ;;  %v1249_v54 = vld [vmem:[%s6897_s3 + $0x3d8] sm:$0xff] }
  0xee   : > { %1485 = vmatmul.mubr.f32.vlgmr.msra.gmra.mrb[32].mxu1 %v1046_v52  ;;  %1968 = vmatmul.mubr.f32.vlgmr.msra.gmra.mrb[48].mxu0 %v1046_v52  ;;  %v5511_v21 = vpop.f32.mrb[2].mxu1  ;;  %v1051_v5 = vmax.f32 %v652_v61, 0.0  ;;  %v4308_v52 = vpack.c.bf16 %v1243_v31, %v1240_v24  ;;  %v1246_v61 = vld [vmem:[%s6897_s3 + $0x3c0] sm:$0xff] }
  0xef   : > { %v1052_v28 = vmax.f32 %v654_v58, 0.0  ;;  %4297 = vmatpush1.bf16.msra.mxu1 %v4296_v47  ;;  %v657_v0 = vpop.f32.mrb[4].mxu0  ;;  %4417 = vmatpush3.bf16.msra.mxu0 %v4416_v50  ;;  %v5519_v45 = vpop.f32.mrb[3].mxu1  ;;  %v1299_v47 = vld [vmem:[%s6897_s3 + $0x568] sm:$0xff]  ;;  %v4310_v58 = vpack.c.bf16 %v1250_v37, %v1247_v40  ;;  %v1262_v31 = vld [vmem:[%s6897_s3 + $0x440] sm:$0xff] }
  0xf0   : > { %v658_v7 = vadd.f32 %v657_v0, %v5449_v27  ;;  %v659_v9 = vpop.f32.mrb[5].mxu0  ;;  %4299 = vmatprep.subr.bf16.mxu1 %v4298_v55  ;;  %4419 = vmatprep.subr.bf16.mxu0 %v4418_v57  ;;  %v4428_v55 = vpack.c.bf16 %v1245_v42, %v1242_v41  ;;  %v4430_v62 = vpack.c.bf16 %v1299_v47, %v1296_v43  ;;  %v1261_v41 = vld [vmem:[%s6897_s3 + $0x438] sm:$0xff] }
  0xf1   : > { %v660_v16 = vadd.f32 %v659_v9, %v5453_v30  ;;  %1490 = vmatprep.mubr.f32.mxu1 %v1052_v28  ;;  %1972 = vmatprep.mubr.f32.mxu0 %v1052_v28  ;;  %v1251_v28 = vld [vmem:[%s6897_s3 + $0x3e8] sm:$0xff]  ;;  %v4312_v9 = vpack.c.bf16 %v1249_v54, %v1246_v61  ;;  %v1260_v61 = vld [vmem:[%s6897_s3 + $0x430] sm:$0xff] }
  0xf2   : > { %1491 = vmatmul.mubr.f32.gmra.mrb[34].mxu1 %v1051_v5  ;;  %1973 = vmatmul.mubr.f32.gmra.mrb[50].mxu0 %v1051_v5  ;;  %v5541_v19 = vpop.f32.mrb[4].mxu1  ;;  %v1056_v34 = vmax.f32 %v658_v7, 0.0  ;;  %v1263_v54 = vld [vmem:[%s6897_s3 + $0x448] sm:$0xff] }
  0xf3   : > { %v1057_v20 = vmax.f32 %v660_v16, 0.0  ;;  %4301 = vmatpush1.bf16.msra.mxu1 %v4300_v1  ;;  %v663_v4 = vpop.f32.mrb[6].mxu0  ;;  %4421 = vmatpush3.bf16.msra.mxu0 %v4420_v36  ;;  %v5549_v33 = vpop.f32.mrb[5].mxu1  ;;  %v1256_v1 = vld [vmem:[%s6897_s3 + $0x410] sm:$0xff] }
  0xf4   : > { %v664_v35 = vadd.f32 %v663_v4, %v5449_v27  ;;  %v665_v38 = vpop.f32.mrb[7].mxu0  ;;  %4303 = vmatprep.subr.bf16.mxu1 %v4302_v10  ;;  %4423 = vmatprep.subr.bf16.mxu0 %v4422_v12  ;;  %v1252_v10 = vld [vmem:[%s6897_s3 + $0x3f0] sm:$0xff]  ;;  %v4432_v12 = vpack.c.bf16 %v1251_v28, %v1248_v63  ;;  %v4314_v60 = vpack.c.bf16 %v1256_v1, %v1253_v59  ;;  %v1254_v4 = vld [vmem:[%s6897_s3 + $0x400] sm:$0xff] }
  0xf5   : > { %v666_v44 = vadd.f32 %v665_v38, %v5453_v30  ;;  %1496 = vmatprep.mubr.f32.mxu1 %v1057_v20  ;;  %1977 = vmatprep.mubr.f32.mxu0 %v1057_v20  ;;  %v4434_v20 = vpack.c.bf16 %v1305_v3, %v1302_v2  ;;  %v4316_v40 = vpack.c.bf16 %v1255_v11, %v1252_v10  ;;  %v1264_v28 = vld [vmem:[%s6897_s3 + $0x450] sm:$0xff]  ;;  %v1271_v10 = vld [vmem:[%s6897_s3 + $0x488] sm:$0xff] }
  0xf6   : > { %1497 = vmatmul.mubr.f32.gmra.mrb[36].mxu1 %v1056_v34  ;;  %1978 = vmatmul.mubr.f32.gmra.mrb[52].mxu0 %v1056_v34  ;;  %v5571_v48 = vpop.f32.mrb[6].mxu1  ;;  %v1061_v57 = vmax.f32 %v664_v35, 0.0  ;;  %v1311_v34 = vld [vmem:[%s6897_s3 + $0x5c8] sm:$0xff]  ;;  %v4440_v1 = vpack.c.bf16 %v1263_v54, %v1260_v61 }
  0xf7   : > { %v1062_v49 = vmax.f32 %v666_v44, 0.0  ;;  %4305 = vmatpush1.bf16.msra.mxu1 %v4304_v23  ;;  %v669_v50 = vpop.f32.mrb[8].mxu0  ;;  %4425 = vmatpush3.bf16.msra.mxu0 %v4424_v32  ;;  %v5579_v56 = vpop.f32.mrb[7].mxu1  ;;  %v1257_v23 = vld [vmem:[%s6897_s3 + $0x418] sm:$0xff]  ;;  %v1308_v32 = vld [vmem:[%s6897_s3 + $0x5b0] sm:$0xff] }
  0xf8   : > { %v670_v6 = vadd.f32 %v669_v50, %v5449_v27  ;;  %v671_v14 = vpop.f32.mrb[9].mxu0  ;;  %4307 = vmatprep.subr.bf16.mxu1 %v4306_v39  ;;  %4427 = vmatprep.subr.bf16.mxu0 %v4426_v29  ;;  %v1258_v29 = vld [vmem:[%s6897_s3 + $0x420] sm:$0xff]  ;;  %v4436_v42 = vpack.c.bf16 %v1257_v23, %v1254_v4  ;;  %v1265_v50 = vld [vmem:[%s6897_s3 + $0x458] sm:$0xff] }
  0xf9   : > { %v672_v0 = vadd.f32 %v671_v14, %v5453_v30  ;;  %1502 = vmatprep.mubr.f32.mxu1 %v1062_v49  ;;  %1982 = vmatprep.mubr.f32.mxu0 %v1062_v49  ;;  %v4318_v49 = vpack.c.bf16 %v1262_v31, %v1259_v18  ;;  %v1317_v14 = vld [vmem:[%s6897_s3 + $0x5f8] sm:$0xff]  ;;  %v4320_v63 = vpack.c.bf16 %v1261_v41, %v1258_v29  ;;  %v1323_v18 = vld [vmem:[%s6897_s3 + $0x628] sm:$0xff]  ;;  %v1270_v29 = vld [vmem:[%s6897_s3 + $0x480] sm:$0xff] }
  0xfa   : > { %1503 = vmatmul.mubr.f32.gmra.mrb[38].mxu1 %v1061_v57  ;;  %1983 = vmatmul.mubr.f32.gmra.mrb[54].mxu0 %v1061_v57  ;;  %v5601_v36 = vpop.f32.mrb[8].mxu1  ;;  %v1066_v15 = vmax.f32 %v670_v6, 0.0  ;;  %v1268_v57 = vld [vmem:[%s6897_s3 + $0x470] sm:$0xff]  ;;  %v1314_v6 = vld [vmem:[%s6897_s3 + $0x5e0] sm:$0xff]  ;;  %v1273_v41 = vld [vmem:[%s6897_s3 + $0x498] sm:$0xff] }
  0xfb   : > { %v1067_v5 = vmax.f32 %v672_v0, 0.0  ;;  %4309 = vmatpush1.bf16.msra.mxu1 %v4308_v52  ;;  %v675_v7 = vpop.f32.mrb[10].mxu0  ;;  %4429 = vmatpush3.bf16.msra.mxu0 %v4428_v55  ;;  %v5609_v53 = vpop.f32.mrb[9].mxu1  ;;  %v4438_v52 = vpack.c.bf16 %v1311_v34, %v1308_v32  ;;  %v1267_v0 = vld [vmem:[%s6897_s3 + $0x468] sm:$0xff]  ;;  %v4442_v11 = vpack.c.bf16 %v1317_v14, %v1314_v6  ;;  %v4328_v61 = vpack.c.bf16 %v1273_v41, %v1270_v29 }
  0xfc   : > { %v676_v16 = vadd.f32 %v675_v7, %v5449_v27  ;;  %v677_v17 = vpop.f32.mrb[11].mxu0  ;;  %4311 = vmatprep.subr.bf16.mxu1 %v4310_v58  ;;  %4431 = vmatprep.subr.bf16.mxu0 %v4430_v62 }
  0xfd   : > { %v678_v24 = vadd.f32 %v677_v17, %v5453_v30  ;;  %1508 = vmatprep.mubr.f32.mxu1 %v1067_v5  ;;  %1987 = vmatprep.mubr.f32.mxu0 %v1067_v5  ;;  %v1274_v17 = vld [vmem:[%s6897_s3 + $0x4a0] sm:$0xff] }
  0xfe   : > { %1509 = vmatmul.mubr.f32.gmra.mrb[40].mxu1 %v1066_v15  ;;  %1988 = vmatmul.mubr.f32.gmra.mrb[56].mxu0 %v1066_v15  ;;  %v5631_v35 = vpop.f32.mrb[10].mxu1  ;;  %v1071_v37 = vmax.f32 %v676_v16, 0.0  ;;  %v1269_v15 = vld [vmem:[%s6897_s3 + $0x478] sm:$0xff] }
  0xff   : > { %v1072_v38 = vmax.f32 %v678_v24, 0.0  ;;  %4313 = vmatpush1.bf16.msra.mxu1 %v4312_v9  ;;  %v681_v39 = vpop.f32.mrb[12].mxu0  ;;  %4433 = vmatpush3.bf16.msra.mxu0 %v4432_v12  ;;  %v5639_v44 = vpop.f32.mrb[11].mxu1  ;;  %v4322_v9 = vpack.c.bf16 %v1268_v57, %v1265_v50  ;;  %v1266_v12 = vld [vmem:[%s6897_s3 + $0x460] sm:$0xff]  ;;  %v4324_v24 = vpack.c.bf16 %v1267_v0, %v1264_v28  ;;  %v1283_v28 = vld [vmem:[%s6897_s3 + $0x4e8] sm:$0xff] }
 0x100   : > { %v682_v43 = vadd.f32 %v681_v39, %v5449_v27  ;;  %v683_v47 = vpop.f32.mrb[13].mxu0  ;;  %4315 = vmatprep.subr.bf16.mxu1 %v4314_v60  ;;  %4435 = vmatprep.subr.bf16.mxu0 %v4434_v20  ;;  %v1320_v60 = vld [vmem:[%s6897_s3 + $0x610] sm:$0xff]  ;;  %v4444_v31 = vpack.c.bf16 %v1269_v15, %v1266_v12  ;;  %v1286_v0 = vld [vmem:[%s6897_s3 + $0x500] sm:$0xff] }
 0x101   : > { %v684_v55 = vadd.f32 %v683_v47, %v5453_v30  ;;  %1514 = vmatprep.mubr.f32.mxu1 %v1072_v38  ;;  %1992 = vmatprep.mubr.f32.mxu0 %v1072_v38  ;;  %v1280_v47 = vld [vmem:[%s6897_s3 + $0x4d0] sm:$0xff]  ;;  %v4334_v15 = vpack.c.bf16 %v1286_v0, %v1283_v28  ;;  %v1294_v0 = vld [vmem:[%s6897_s3 + $0x540] sm:$0xff] }
 0x102   : > { %1515 = vmatmul.mubr.f32.gmra.mrb[42].mxu1 %v1071_v37  ;;  %1993 = vmatmul.mubr.f32.gmra.mrb[58].mxu0 %v1071_v37  ;;  %v5661_v58 = vpop.f32.mrb[12].mxu1  ;;  %v1076_v3 = vmax.f32 %v682_v43, 0.0  ;;  %v1277_v43 = vld [vmem:[%s6897_s3 + $0x4b8] sm:$0xff] }
 0x103   : > { %v1077_v59 = vmax.f32 %v684_v55, 0.0  ;;  %4317 = vmatpush1.bf16.msra.mxu1 %v4316_v40  ;;  %v687_v62 = vpop.f32.mrb[14].mxu0  ;;  %4437 = vmatpush3.bf16.msra.mxu0 %v4436_v42  ;;  %v5669_v2 = vpop.f32.mrb[13].mxu1  ;;  %v4326_v40 = vpack.c.bf16 %v1274_v17, %v1271_v10  ;;  %v5702_v42 = vpack.c.bf16 %v1323_v18, %v1320_v60  ;;  %v4330_v14 = vpack.c.bf16 %v1280_v47, %v1277_v43  ;;  %v1285_v17 = vld [vmem:[%s6897_s3 + $0x4f8] sm:$0xff]  ;;  %v1291_v43 = vld [vmem:[%s6897_s3 + $0x528] sm:$0xff] }
 0x104   : > { %v688_v5 = vadd.f32 %v687_v62, %v5449_v27  ;;  %v689_v7 = vpop.f32.mrb[15].mxu0  ;;  %4319 = vmatprep.subr.bf16.mxu1 %v4318_v49  ;;  %4439 = vmatprep.subr.bf16.mxu0 %v4438_v52  ;;  %v1279_v62 = vld [vmem:[%s6897_s3 + $0x4c8] sm:$0xff]  ;;  %v1289_v18 = vld [vmem:[%s6897_s3 + $0x518] sm:$0xff] }
 0x105   : > { %v690_v16 = vadd.f32 %v689_v7, %v5453_v30  ;;  %1520 = vmatprep.mubr.f32.mxu1 %v1077_v59  ;;  %1997 = vmatprep.mubr.f32.mxu0 %v1077_v59  ;;  %v1276_v59 = vld [vmem:[%s6897_s3 + $0x4b0] sm:$0xff] }
 0x106   : > { %1521 = vmatmul.mubr.f32.gmra.mrb[44].mxu1 %v1076_v3  ;;  %1998 = vmatmul.mubr.f32.gmra.mrb[60].mxu0 %v1076_v3  ;;  %v5691_v20 = vpop.f32.mrb[14].mxu1  ;;  %v1081_v34 = vmax.f32 %v688_v5, 0.0  ;;  %v4332_v7 = vpack.c.bf16 %v1279_v62, %v1276_v59 }
 0x107   : > { %v1082_v4 = vmax.f32 %v690_v16, 0.0  ;;  %4321 = vmatpush1.bf16.msra.mxu1 %v4320_v63  ;;  %v693_v23 = vpop.f32.mrb[16].mxu0  ;;  %4441 = vmatpush3.bf16.msra.mxu0 %v4440_v1  ;;  %v5693_v32 = vpop.f32.mrb[15].mxu1  ;;  %v1282_v16 = vld [vmem:[%s6897_s3 + $0x4e0] sm:$0xff] }
 0x108   : > { %v694_v38 = vadd.f32 %v693_v23, %v5449_v27  ;;  %v695_v39 = vpop.f32.mrb[17].mxu0  ;;  %4323 = vmatprep.subr.bf16.mxu1 %v4322_v9  ;;  %4443 = vmatprep.subr.bf16.mxu0 %v4442_v11 }
 0x109   : > { %v696_v37 = vadd.f32 %v695_v39, %v5453_v30  ;;  %1526 = vmatprep.mubr.f32.mxu1 %v1082_v4  ;;  %2002 = vmatprep.mubr.f32.mxu0 %v1082_v4  ;;  %v1292_v4 = vld [vmem:[%s6897_s3 + $0x530] sm:$0xff] }
 0x10a   : > { %1527 = vmatmul.mubr.f32.gmra.mrb[46].mxu1 %v1081_v34  ;;  %2003 = vmatmul.mubr.f32.gmra.mrb[62].mxu0 %v1081_v34  ;;  %v5711_v49 = vpop.f32.mrb[16].mxu1  ;;  %v1086_v55 = vmax.f32 %v694_v38, 0.0  ;;  %v4336_v34 = vpack.c.bf16 %v1285_v17, %v1282_v16  ;;  %v4338_v41 = vpack.c.bf16 %v1292_v4, %v1289_v18  ;;  %v503_v17 = vsub.s32 3, %v5434_v13 }
 0x10b   : > { %v1087_v50 = vmax.f32 %v696_v37, 0.0  ;;  %4325 = vmatpush1.bf16.msra.mxu1 %v4324_v24  ;;  %v699_v52 = vpop.f32.mrb[18].mxu0  ;;  %4445 = vmatpush3.bf16.msra.mxu0 %v4444_v31  ;;  %v5713_v54 = vpop.f32.mrb[17].mxu1  ;;  %v1288_v37 = vld [vmem:[%s6897_s3 + $0x510] sm:$0xff] }
 0x10c   : > { %v700_v57 = vadd.f32 %v699_v52, %v5449_v27  ;;  %v701_v6 = vpop.f32.mrb[19].mxu0  ;;  %4327 = vmatprep.subr.bf16.mxu1 %v4326_v40  ;;  %4447 = vmatprep.subr.bf16.mxu0 %v5702_v42  ;;  %v1298_v52 = vld [vmem:[%s6897_s3 + $0x560] sm:$0xff] }
 0x10d   : > { %v702_v63 = vadd.f32 %v701_v6, %v5453_v30  ;;  %1532 = vmatprep.mubr.f32.mxu1 %v1087_v50  ;;  %2007 = vmatprep.mubr.f32.mxu0 %v1087_v50  ;;  %v1295_v50 = vld [vmem:[%s6897_s3 + $0x548] sm:$0xff]  ;;  %v4340_v6 = vpack.c.bf16 %v1291_v43, %v1288_v37 }
 0x10e   : > { %1533 = vmatmul.mubr.f32.gmra.mrb[48].mxu1 %v1086_v55  ;;  %2008 = vmatmul.mubr.f32.gmra.mrb[64].mxu0 %v1086_v55  ;;  %v5730_v1 = vpop.f32.mrb[18].mxu1  ;;  %v1091_v10 = vmax.f32 %v700_v57, 0.0  ;;  %v4342_v28 = vpack.c.bf16 %v1298_v52, %v1295_v50  ;;  %v5806_v52 = vrot.slane %v5442_v22, %v503_v17 }
 0x10f   : > { %v1092_v3 = vmax.f32 %v702_v63, 0.0  ;;  %4329 = vmatpush1.bf16.msra.mxu1 %v4328_v61  ;;  %v705_v5 = vpop.f32.mrb[20].mxu0  ;;  %v5732_v9 = vpop.f32.mrb[19].mxu1 }
 0x110   : > { %v706_v11 = vadd.f32 %v705_v5, %v5449_v27  ;;  %v707_v12 = vpop.f32.mrb[21].mxu0  ;;  %4331 = vmatprep.subr.bf16.mxu1 %v4330_v14  ;;  %v809_v17 = vadd.f32 %v5489_v51, %v5806_v52  ;;  %v1315_v51 = vld [vmem:[%s6897_s3 + $0x5e8] sm:$0xff] }
 0x111   : > { %v708_v60 = vadd.f32 %v707_v12, %v5453_v30  ;;  %1538 = vmatprep.mubr.f32.mxu1 %v1092_v3  ;;  %2012 = vmatprep.mubr.f32.mxu0 %v1092_v3  ;;  %v1297_v3 = vld [vmem:[%s6897_s3 + $0x558] sm:$0xff] }
 0x112   : > { %1539 = vmatmul.mubr.f32.gmra.mrb[50].mxu1 %v1091_v10  ;;  %2013 = vmatmul.mubr.f32.gmra.mrb[66].mxu0 %v1091_v10  ;;  %v5748_v23 = vpop.f32.mrb[20].mxu1  ;;  %v1096_v39 = vmax.f32 %v706_v11, 0.0  ;;  %v1304_v10 = vld [vmem:[%s6897_s3 + $0x590] sm:$0xff]  ;;  %v4344_v16 = vpack.c.bf16 %v1297_v3, %v1294_v0  ;;  %v1309_v0 = vld [vmem:[%s6897_s3 + $0x5b8] sm:$0xff] }
 0x113   : > { %v1097_v24 = vmax.f32 %v708_v60, 0.0  ;;  %4333 = vmatpush1.bf16.msra.mxu1 %v4332_v7  ;;  %v711_v31 = vpop.f32.mrb[22].mxu0  ;;  %v5750_v38 = vpop.f32.mrb[21].mxu1  ;;  %v1301_v7 = vld [vmem:[%s6897_s3 + $0x578] sm:$0xff] }
 0x114   : > { %v712_v40 = vadd.f32 %v711_v31, %v5449_v27  ;;  %v713_v29 = vpop.f32.mrb[23].mxu0  ;;  %4335 = vmatprep.subr.bf16.mxu1 %v4334_v15  ;;  %v4346_v31 = vpack.c.bf16 %v1304_v10, %v1301_v7  ;;  %v1316_v7 = vld [vmem:[%s6897_s3 + $0x5f0] sm:$0xff] }
 0x115   : > { %v714_v47 = vadd.f32 %v713_v29, %v5453_v30  ;;  %1544 = vmatprep.mubr.f32.mxu1 %v1097_v24  ;;  %2017 = vmatprep.mubr.f32.mxu0 %v1097_v24  ;;  %v1307_v29 = vld [vmem:[%s6897_s3 + $0x5a8] sm:$0xff] }
 0x116   : > { %1545 = vmatmul.mubr.f32.gmra.mrb[52].mxu1 %v1096_v39  ;;  %2018 = vmatmul.mubr.f32.gmra.mrb[68].mxu0 %v1096_v39  ;;  %v5766_v61 = vpop.f32.mrb[22].mxu1  ;;  %v1101_v59 = vmax.f32 %v712_v40, 0.0  ;;  %v1303_v39 = vld [vmem:[%s6897_s3 + $0x588] sm:$0xff] }
 0x117   : > { %v1102_v55 = vmax.f32 %v714_v47, 0.0  ;;  %4337 = vmatpush1.bf16.msra.mxu1 %v4336_v34  ;;  %v717_v57 = vpop.f32.mrb[24].mxu0  ;;  %v5768_v14 = vpop.f32.mrb[23].mxu1  ;;  %v1300_v34 = vld [vmem:[%s6897_s3 + $0x570] sm:$0xff] }
 0x118   : > { %v718_v62 = vadd.f32 %v717_v57, %v5449_v27  ;;  %v719_v63 = vpop.f32.mrb[25].mxu0  ;;  %4339 = vmatprep.subr.bf16.mxu1 %v4338_v41  ;;  %v1310_v41 = vld [vmem:[%s6897_s3 + $0x5c0] sm:$0xff]  ;;  %v4348_v50 = vpack.c.bf16 %v1303_v39, %v1300_v34 }
 0x119   : > { %v720_v5 = vadd.f32 %v719_v63, %v5453_v30  ;;  %1550 = vmatprep.mubr.f32.mxu1 %v1102_v55  ;;  %2022 = vmatprep.mubr.f32.mxu0 %v1102_v55  ;;  %v499_v63 = vsub.s32 2, %v5434_v13 }
 0x11a   : > { %1551 = vmatmul.mubr.f32.gmra.mrb[54].mxu1 %v1101_v59  ;;  %2023 = vmatmul.mubr.f32.gmra.mrb[70].mxu0 %v1101_v59  ;;  %v5784_v11 = vpop.f32.mrb[24].mxu1  ;;  %v1106_v18 = vmax.f32 %v718_v62, 0.0  ;;  %v4350_v62 = vpack.c.bf16 %v1310_v41, %v1307_v29 }
 0x11b   : > { %v1107_v12 = vmax.f32 %v720_v5, 0.0  ;;  %4341 = vmatpush1.bf16.msra.mxu1 %v4340_v6  ;;  %v723_v15 = vpop.f32.mrb[26].mxu0  ;;  %v5787_v60 = vpop.f32.mrb[25].mxu1  ;;  %v1313_v5 = vld [vmem:[%s6897_s3 + $0x5d8] sm:$0xff]  ;;  %v5835_v34 = vrot.slane %v5442_v22, %v499_v63  ;;  %v1322_v22 = vld [vmem:[%s6897_s3 + $0x620] sm:$0xff] }
 0x11c   : > { %v724_v4 = vadd.f32 %v723_v15, %v5449_v27  ;;  %v725_v24 = vpop.f32.mrb[27].mxu0  ;;  %4343 = vmatprep.subr.bf16.mxu1 %v4342_v28  ;;  %v1306_v28 = vld [vmem:[%s6897_s3 + $0x5a0] sm:$0xff]  ;;  %v4354_v39 = vpack.c.bf16 %v1316_v7, %v1313_v5 }
 0x11d   : > { %v726_v40 = vadd.f32 %v725_v24, %v5453_v30  ;;  %1556 = vmatprep.mubr.f32.mxu1 %v1107_v12  ;;  %2027 = vmatprep.mubr.f32.mxu0 %v1107_v12 }
 0x11e   : > { %1557 = vmatmul.mubr.f32.gmra.mrb[56].mxu1 %v1106_v18  ;;  %2028 = vmatmul.mubr.f32.gmra.mrb[72].mxu0 %v1106_v18  ;;  %v5803_v37 = vpop.f32.mrb[26].mxu1  ;;  %v1111_v57 = vmax.f32 %v724_v4, 0.0 }
 0x11f   : > { %v1112_v43 = vmax.f32 %v726_v40, 0.0  ;;  %4345 = vmatpush1.bf16.msra.mxu1 %v4344_v16  ;;  %v729_v47 = vpop.f32.mrb[28].mxu0  ;;  %v5808_v55 = vpop.f32.mrb[27].mxu1  ;;  %v4352_v16 = vpack.c.bf16 %v1309_v0, %v1306_v28  ;;  %v1312_v40 = vld [vmem:[%s6897_s3 + $0x5d0] sm:$0xff]  ;;  %v1318_v0 = vld [vmem:[%s6897_s3 + $0x600] sm:$0xff] }
 0x120   : > { %v730_v6 = vadd.f32 %v729_v47, %v5449_v27  ;;  %v731_v59 = vpop.f32.mrb[29].mxu0  ;;  %4347 = vmatprep.subr.bf16.mxu1 %v4346_v31  ;;  %v1049_v47 = vmax.f32 %v809_v17, 0.0 }
 0x121   : > { %v732_v3 = vadd.f32 %v731_v59, %v5453_v30  ;;  %1562 = vmatprep.mubr.f32.mxu1 %v1112_v43  ;;  %2032 = vmatprep.mubr.f32.mxu0 %v1112_v43 }
 0x122   : > { %1563 = vmatmul.mubr.f32.gmra.mrb[58].mxu1 %v1111_v57  ;;  %2033 = vmatmul.mubr.f32.gmra.mrb[74].mxu0 %v1111_v57  ;;  %v5825_v10 = vpop.f32.mrb[28].mxu1  ;;  %v1116_v4 = vmax.f32 %v730_v6, 0.0 }
 0x123   : > { %v1117_v12 = vmax.f32 %v732_v3, 0.0  ;;  %4349 = vmatpush1.bf16.msra.mxu1 %v4348_v50  ;;  %v735_v15 = vpop.f32.mrb[30].mxu0  ;;  %v5829_v18 = vpop.f32.mrb[29].mxu1  ;;  %v4356_v50 = vpack.c.bf16 %v1315_v51, %v1312_v40  ;;  %v1321_v3 = vld [vmem:[%s6897_s3 + $0x618] sm:$0xff]  ;;  %v1327_v40 = vld [vmem:[%s6897_s3 + $0x648] sm:$0xff] }
 0x124   : > { %v736_v24 = vadd.f32 %v735_v15, %v5449_v27  ;;  %v737_v31 = vpop.f32.mrb[31].mxu0  ;;  %4351 = vmatprep.subr.bf16.mxu1 %v4350_v62  ;;  %v1319_v27 = vld [vmem:[%s6897_s3 + $0x608] sm:$0xff]  ;;  %v807_v62 = vadd.f32 %v5481_v46, %v5835_v34  ;;  %v1328_v46 = vld [vmem:[%s6897_s3 + $0x650] sm:$0xff]  ;;  %v821_v15 = vadd.f32 %v5549_v33, %v5806_v52  ;;  %v1326_v33 = vld [vmem:[%s6897_s3 + $0x640] sm:$0xff] }
 0x125   : > { %v738_v29 = vadd.f32 %v737_v31, %v5453_v30  ;;  %1568 = vmatprep.mubr.f32.mxu1 %v1117_v12  ;;  %2037 = vmatprep.mubr.f32.mxu0 %v1117_v12  ;;  %v815_v30 = vadd.f32 %v5519_v45, %v5806_v52  ;;  %v4358_v28 = vpack.c.bf16 %v1322_v22, %v1319_v27  ;;  %v1325_v45 = vld [vmem:[%s6897_s3 + $0x638] sm:$0xff]  ;;  %v1324_v31 = vld [vmem:[%s6897_s3 + $0x630] sm:$0xff]  ;;  %v1331_v51 = vld [vmem:[%s6897_s3 + $0x668] sm:$0xff] }
 0x126   : > { %1569 = vmatmul.mubr.f32.gmra.mrb[60].mxu1 %v1116_v4  ;;  %2038 = vmatmul.mubr.f32.gmra.mrb[76].mxu0 %v1116_v4  ;;  %v5850_v41 = vpop.f32.mrb[30].mxu1  ;;  %v1121_v59 = vmax.f32 %v736_v24, 0.0  ;;  %v4360_v12 = vpack.c.bf16 %v1321_v3, %v1318_v0  ;;  %v1048_v17 = vmax.f32 %v807_v62, 0.0  ;;  %v813_v4 = vadd.f32 %v5511_v21, %v5835_v34  ;;  %v1329_v21 = vld [vmem:[%s6897_s3 + $0x658] sm:$0xff]  ;;  %v1335_v3 = vld [vmem:[%s6897_s3 + $0x688] sm:$0xff] }
 0x127   : > { %v1122_v43 = vmax.f32 %v738_v29, 0.0  ;;  %4353 = vmatpush1.bf16.msra.mxu1 %v4352_v16  ;;  %v5854_v57 = vpop.f32.mrb[31].mxu1  ;;  %v5856_v6 = vpop.f32.mrb[32].mxu0  ;;  %v1054_v7 = vmax.f32 %v815_v30, 0.0  ;;  %v4362_v24 = vpack.c.bf16 %v1328_v46, %v1325_v45  ;;  %v1334_v29 = vld [vmem:[%s6897_s3 + $0x680] sm:$0xff]  ;;  %v1059_v27 = vmax.f32 %v821_v15, 0.0 }
 0x128   : > { %4355 = vmatprep.subr.bf16.mxu1 %v4354_v39  ;;  %v5866_v5 = vpop.f32.mrb[33].mxu0  ;;  %v827_v22 = vadd.f32 %v5579_v56, %v5806_v52  ;;  %v4364_v30 = vpack.c.bf16 %v1327_v40, %v1324_v31  ;;  %v4450_v62 = vpack.c.bf16 %v1329_v21, %v1326_v33  ;;  %v4366_v0 = vpack.c.bf16 %v1334_v29, %v1331_v51  ;;  %v1333_v56 = vld [vmem:[%s6897_s3 + $0x678] sm:$0xff]  ;;  %v1340_v46 = vld [vmem:[%s6897_s3 + $0x6b0] sm:$0xff]  ;;  %v1343_v51 = vld [vmem:[%s6897_s3 + $0x6c8] sm:$0xff] }
 0x129   : > { %1574 = vmatprep.mubr.f32.mxu1 %v1122_v43  ;;  %2042 = vmatprep.mubr.f32.mxu0 %v1122_v43  ;;  %v1337_v45 = vld [vmem:[%s6897_s3 + $0x698] sm:$0xff]  ;;  %v1346_v29 = vld [vmem:[%s6897_s3 + $0x6e0] sm:$0xff] }
 0x12a   : > { %1575 = vmatmul.mubr.f32.gmra.mrb[62].mxu1 %v1121_v59  ;;  %2043 = vmatmul.mubr.f32.gmra.mrb[78].mxu0 %v1121_v59  ;;  %v1330_v59 = vld [vmem:[%s6897_s3 + $0x660] sm:$0xff]  ;;  %v4370_v33 = vpack.c.bf16 %v1340_v46, %v1337_v45  ;;  %v1341_v21 = vld [vmem:[%s6897_s3 + $0x6b8] sm:$0xff]  ;;  %v1352_v46 = vld [vmem:[%s6897_s3 + $0x710] sm:$0xff] }
 0x12b   : > { %4357 = vmatpush1.bf16.msra.mxu1 %v4356_v50  ;;  %1645 = vmatprep.mubr.f32.mxu1 %v1049_v47  ;;  %v5876_v16 = vpop.f32.mrb[34].mxu0  ;;  %v819_v50 = vadd.f32 %v5541_v19, %v5835_v34  ;;  %v1332_v19 = vld [vmem:[%s6897_s3 + $0x670] sm:$0xff]  ;;  %v1349_v45 = vld [vmem:[%s6897_s3 + $0x6f8] sm:$0xff] }
 0x12c   : > { %2112 = vmatprep.mubr.f32.mxu0 %v1049_v47  ;;  %4359 = vmatprep.subr.bf16.mxu1 %v4358_v28  ;;  %v5883_v39 = vpop.f32.mrb[35].mxu0  ;;  %v1053_v47 = vmax.f32 %v813_v4, 0.0  ;;  %v4368_v4 = vpack.c.bf16 %v1333_v56, %v1330_v59  ;;  %v4454_v31 = vpack.c.bf16 %v1335_v3, %v1332_v19  ;;  %v4374_v19 = vpack.c.bf16 %v1346_v29, %v1343_v51  ;;  %v1347_v3 = vld [vmem:[%s6897_s3 + $0x6e8] sm:$0xff] }
 0x12d   : > { %v1058_v15 = vmax.f32 %v819_v50, 0.0  ;;  %v851_v29 = vadd.f32 %v5693_v32, %v5806_v52  ;;  %v857_v32 = vadd.f32 %v5713_v54, %v5806_v52 }
 0x12e   : > { %1646 = vmatmul.mubr.f32.vlgmr.msra.gmra.mrb[32].mxu1 %v1048_v17  ;;  %2113 = vmatmul.mubr.f32.vlgmr.msra.gmra.mrb[80].mxu0 %v1048_v17  ;;  %v825_v17 = vadd.f32 %v5571_v48, %v5835_v34  ;;  %v1338_v48 = vld [vmem:[%s6897_s3 + $0x6a0] sm:$0xff] }
 0x12f   : > { %4361 = vmatpush1.bf16.msra.mxu1 %v4360_v12  ;;  %1651 = vmatprep.mubr.f32.mxu1 %v1054_v7  ;;  %v5902_v43 = vpop.f32.mrb[36].mxu0 }
 0x130   : > { %2117 = vmatprep.mubr.f32.mxu0 %v1054_v7  ;;  %4363 = vmatprep.subr.bf16.mxu1 %v4362_v24  ;;  %v5909_v28 = vpop.f32.mrb[37].mxu0  ;;  %v1064_v7 = vmax.f32 %v827_v22, 0.0  ;;  %v1336_v24 = vld [vmem:[%s6897_s3 + $0x690] sm:$0xff]  ;;  %v839_v22 = vadd.f32 %v5639_v44, %v5806_v52  ;;  %v1063_v50 = vmax.f32 %v825_v17, 0.0  ;;  %v1345_v44 = vld [vmem:[%s6897_s3 + $0x6d8] sm:$0xff] }
 0x131   : > { %4449 = vmatpush3.bf16.msra.mxu0 %v5702_v42  ;;  %v833_v42 = vadd.f32 %v5609_v53, %v5806_v52  ;;  %v1339_v53 = vld [vmem:[%s6897_s3 + $0x6a8] sm:$0xff] }
 0x132   : > { %1652 = vmatmul.mubr.f32.gmra.mrb[34].mxu1 %v1053_v47  ;;  %2118 = vmatmul.mubr.f32.gmra.mrb[82].mxu0 %v1053_v47  ;;  %v4372_v59 = vpack.c.bf16 %v1339_v53, %v1336_v24 }
 0x133   : > { %1657 = vmatprep.mubr.f32.mxu1 %v1059_v27  ;;  %2122 = vmatprep.mubr.f32.mxu0 %v1059_v27  ;;  %v5929_v12 = vpop.f32.mrb[38].mxu0  ;;  %v1069_v27 = vmax.f32 %v833_v42, 0.0  ;;  %v845_v42 = vadd.f32 %v5669_v2, %v5806_v52  ;;  %v1351_v2 = vld [vmem:[%s6897_s3 + $0x708] sm:$0xff] }
 0x134   : > { %4365 = vmatpush1.bf16.msra.mxu1 %v4364_v30  ;;  %4451 = vmatprep.subr.bf16.mxu0 %v4450_v62  ;;  %v5936_v40 = vpop.f32.mrb[39].mxu0  ;;  %v831_v30 = vadd.f32 %v5601_v36, %v5835_v34  ;;  %v1344_v36 = vld [vmem:[%s6897_s3 + $0x6d0] sm:$0xff] }
 0x135   : > { %4367 = vmatprep.subr.bf16.mxu1 %v4366_v0  ;;  %4453 = vmatpush3.bf16.msra.mxu0 %v4450_v62  ;;  %v1342_v62 = vld [vmem:[%s6897_s3 + $0x6c0] sm:$0xff]  ;;  %v4458_v0 = vpack.c.bf16 %v1341_v21, %v1338_v48  ;;  %v4378_v48 = vpack.c.bf16 %v1352_v46, %v1349_v45  ;;  %v1353_v21 = vld [vmem:[%s6897_s3 + $0x718] sm:$0xff]  ;;  %v1079_v51 = vmax.f32 %v845_v42, 0.0  ;;  %v863_v45 = vadd.f32 %v5732_v9, %v5806_v52 }
 0x136   : > { %1658 = vmatmul.mubr.f32.gmra.mrb[36].mxu1 %v1058_v15  ;;  %2123 = vmatmul.mubr.f32.gmra.mrb[84].mxu0 %v1058_v15  ;;  %v1068_v17 = vmax.f32 %v831_v30, 0.0  ;;  %v4376_v24 = vpack.c.bf16 %v1345_v44, %v1342_v62  ;;  %v855_v46 = vadd.f32 %v5711_v49, %v5835_v34  ;;  %v875_v49 = vadd.f32 %v5768_v14, %v5806_v52 }
 0x137   : > { %1663 = vmatprep.mubr.f32.mxu1 %v1064_v7  ;;  %2127 = vmatprep.mubr.f32.mxu0 %v1064_v7  ;;  %v5955_v47 = vpop.f32.mrb[40].mxu0  ;;  %v1074_v7 = vmax.f32 %v839_v22, 0.0 }
 0x138   : > { %4369 = vmatpush1.bf16.msra.mxu1 %v4368_v4  ;;  %4455 = vmatprep.subr.bf16.mxu0 %v4454_v31  ;;  %v5962_v56 = vpop.f32.mrb[41].mxu0  ;;  %v837_v4 = vadd.f32 %v5631_v35, %v5835_v34  ;;  %v1350_v35 = vld [vmem:[%s6897_s3 + $0x700] sm:$0xff]  ;;  %v1088_v42 = vmax.f32 %v855_v46, 0.0 }
 0x139   : > { %4371 = vmatprep.subr.bf16.mxu1 %v4370_v33  ;;  %4457 = vmatpush3.bf16.msra.mxu0 %v4454_v31  ;;  %v1348_v31 = vld [vmem:[%s6897_s3 + $0x6f0] sm:$0xff]  ;;  %v4462_v33 = vpack.c.bf16 %v1347_v3, %v1344_v36  ;;  %v1089_v3 = vmax.f32 %v857_v32, 0.0 }
 0x13a   : > { %1664 = vmatmul.mubr.f32.gmra.mrb[38].mxu1 %v1063_v50  ;;  %2128 = vmatmul.mubr.f32.gmra.mrb[86].mxu0 %v1063_v50  ;;  %v1073_v22 = vmax.f32 %v837_v4, 0.0  ;;  %v843_v50 = vadd.f32 %v5661_v58, %v5835_v34  ;;  %v4380_v30 = vpack.c.bf16 %v1351_v2, %v1348_v31  ;;  %v849_v58 = vadd.f32 %v5691_v20, %v5835_v34 }
 0x13b   : > { %1669 = vmatprep.mubr.f32.mxu1 %v1069_v27  ;;  %2132 = vmatprep.mubr.f32.mxu0 %v1069_v27  ;;  %v5981_v15 = vpop.f32.mrb[42].mxu0  ;;  %v1094_v20 = vmax.f32 %v863_v45, 0.0  ;;  %v1104_v31 = vmax.f32 %v875_v49, 0.0  ;;  %v879_v2 = vadd.f32 %v5784_v11, %v5835_v34  ;;  %v899_v11 = vadd.f32 %v5854_v57, %v5806_v52  ;;  %v2389_v49 = vld [vmem:[%s6899_s5 + $0x18] sm:$0xff] }
 0x13c   : > { %4373 = vmatpush1.bf16.msra.mxu1 %v4372_v59  ;;  %4459 = vmatprep.subr.bf16.mxu0 %v4458_v0  ;;  %v5988_v53 = vpop.f32.mrb[43].mxu0  ;;  %v4466_v59 = vpack.c.bf16 %v1353_v21, %v1350_v35  ;;  %v1078_v44 = vmax.f32 %v843_v50, 0.0  ;;  %v1083_v54 = vmax.f32 %v849_v58, 0.0  ;;  %v891_v50 = vadd.f32 %v5825_v10, %v5835_v34 }
 0x13d   : > { %4375 = vmatprep.subr.bf16.mxu1 %v4374_v19  ;;  %4461 = vmatpush3.bf16.msra.mxu0 %v4458_v0  ;;  %v1084_v0 = vmax.f32 %v851_v29, 0.0  ;;  %v1108_v21 = vmax.f32 %v879_v2, 0.0  ;;  %v4774_v29 = vld [vmem:[%s6896_s2] sm:$0x1f] }
 0x13e   : > { %1670 = vmatmul.mubr.f32.gmra.mrb[40].mxu1 %v1068_v17  ;;  %2133 = vmatmul.mubr.f32.gmra.mrb[88].mxu0 %v1068_v17  ;;  %v861_v17 = vadd.f32 %v5730_v1, %v5835_v34  ;;  %v881_v1 = vadd.f32 %v5787_v60, %v5806_v52  ;;  %v507_v60 = vsub.s32 4, %v5434_v13 }
 0x13f   : > { %1675 = vmatprep.mubr.f32.mxu1 %v1074_v7  ;;  %2137 = vmatprep.mubr.f32.mxu0 %v1074_v7  ;;  %v6001_v27 = vpop.f32.mrb[44].mxu0  ;;  %v869_v7 = vadd.f32 %v5750_v38, %v5806_v52 }
 0x140   : > { %4377 = vmatpush1.bf16.msra.mxu1 %v4376_v24  ;;  %4463 = vmatprep.subr.bf16.mxu0 %v4462_v33  ;;  %v6005_v62 = vpop.f32.mrb[45].mxu0  ;;  %v1093_v9 = vmax.f32 %v861_v17, 0.0  ;;  %v867_v24 = vadd.f32 %v5748_v23, %v5835_v34  ;;  %v887_v23 = vadd.f32 %v5808_v55, %v5806_v52 }
 0x141   : > { %4379 = vmatprep.subr.bf16.mxu1 %v4378_v48  ;;  %4465 = vmatpush3.bf16.msra.mxu0 %v4462_v33  ;;  %v1099_v4 = vmax.f32 %v869_v7, 0.0  ;;  %v873_v33 = vadd.f32 %v5766_v61, %v5835_v34  ;;  %v1109_v48 = vmax.f32 %v881_v1, 0.0  ;;  %v893_v61 = vadd.f32 %v5829_v18, %v5806_v52 }
 0x142   : > { %1676 = vmatmul.mubr.f32.gmra.mrb[42].mxu1 %v1073_v22  ;;  %2138 = vmatmul.mubr.f32.gmra.mrb[90].mxu0 %v1073_v22  ;;  %v1098_v38 = vmax.f32 %v867_v24, 0.0  ;;  %v1114_v35 = vmax.f32 %v887_v23, 0.0  ;;  %v6045_v22 = vrot.slane %v4774_v29, %v507_v60  ;;  %v897_v52 = vadd.f32 %v5850_v41, %v5835_v34  ;;  %v2386_v24 = vld [vmem:[%s6899_s5] sm:$0xff]  ;;  %v2401_v29 = vld [vmem:[%s6899_s5 + $0x78] sm:$0xff] }
 0x143   : > { %1681 = vmatprep.mubr.f32.mxu1 %v1079_v51  ;;  %2142 = vmatprep.mubr.f32.mxu0 %v1079_v51  ;;  %v6009_v19 = vpop.f32.mrb[46].mxu0  ;;  %v1103_v14 = vmax.f32 %v873_v33, 0.0  ;;  %v885_v51 = vadd.f32 %v5803_v37, %v5835_v34  ;;  %v1119_v55 = vmax.f32 %v893_v61, 0.0  ;;  %v1124_v37 = vmax.f32 %v899_v11, 0.0  ;;  %v2393_v33 = vld [vmem:[%s6899_s5 + $0x38] sm:$0xff]  ;;  %v2390_v23 = vld [vmem:[%s6899_s5 + $0x20] sm:$0xff] }
 0x144   : > { %4381 = vmatpush1.bf16.msra.mxu1 %v4380_v30  ;;  %4467 = vmatprep.subr.bf16.mxu0 %v4466_v59  ;;  %v6013_v36 = vpop.f32.mrb[47].mxu0  ;;  %v968_v30 = vadd.f32 %v5866_v5, %v6045_v22  ;;  %v973_v57 = vadd.f32 %v5856_v6, %v6045_v22  ;;  %v978_v10 = vadd.f32 %v5883_v39, %v6045_v22  ;;  %v1123_v32 = vmax.f32 %v897_v52, 0.0  ;;  %v2397_v61 = vld [vmem:[%s6899_s5 + $0x58] sm:$0xff]  ;;  %v2399_v11 = vld [vmem:[%s6899_s5 + $0x68] sm:$0xff] }
 0x145   : > { %4469 = vmatpush3.bf16.msra.mxu0 %v4466_v59  ;;  %v1113_v18 = vmax.f32 %v885_v51, 0.0  ;;  %v1118_v59 = vmax.f32 %v891_v50, 0.0  ;;  %v983_v5 = vadd.f32 %v5876_v16, %v6045_v22  ;;  %v988_v41 = vadd.f32 %v5909_v28, %v6045_v22  ;;  %v2396_v51 = vld [vmem:[%s6899_s5 + $0x50] sm:$0xff] }
 0x146   : > { %1682 = vmatmul.mubr.f32.gmra.mrb[44].mxu1 %v1078_v44  ;;  %2143 = vmatmul.mubr.f32.gmra.mrb[92].mxu0 %v1078_v44  ;;  %v1055_v44 = vmax.f32 %v973_v57, 0.0  ;;  %v1060_v34 = vmax.f32 %v978_v10, 0.0  ;;  %v993_v39 = vadd.f32 %v5902_v43, %v6045_v22  ;;  %v998_v16 = vadd.f32 %v5936_v40, %v6045_v22  ;;  %v2400_v50 = vld [vmem:[%s6899_s5 + $0x70] sm:$0xff]  ;;  %v2402_v57 = vld [vmem:[%s6899_s5 + $0x80] sm:$0xff] }
 0x147   : > { %1687 = vmatprep.mubr.f32.mxu1 %v1084_v0  ;;  %2147 = vmatprep.mubr.f32.mxu0 %v1084_v0  ;;  %v1050_v0 = vmax.f32 %v968_v30, 0.0  ;;  %v1065_v6 = vmax.f32 %v983_v5, 0.0  ;;  %v1070_v58 = vmax.f32 %v988_v41, 0.0  ;;  %v1003_v28 = vadd.f32 %v5929_v12, %v6045_v22  ;;  %v2403_v30 = vld [vmem:[%s6899_s5 + $0x88] sm:$0xff]  ;;  %v2408_v41 = vld [vmem:[%s6899_s5 + $0xb0] sm:$0xff] }
 0x148   : > { %v1080_v45 = vmax.f32 %v998_v16, 0.0  ;;  %v1008_v43 = vadd.f32 %v5962_v56, %v6045_v22  ;;  %v6083_v40 = vadd.f32 %v5955_v47, %v6045_v22  ;;  %v6089_v12 = vadd.f32 %v5988_v53, %v6045_v22 }
 0x149   : > { %v6103_v53 = vadd.f32 %v6005_v62, %v6045_v22  ;;  %v6119_v62 = vadd.f32 %v6013_v36, %v6045_v22  ;;  %v2387_v36 = vld [vmem:[%s6899_s5 + $0x8] sm:$0xff] }
 0x14a   : > { %1688 = vmatmul.mubr.f32.gmra.mrb[46].mxu1 %v1083_v54  ;;  %2148 = vmatmul.mubr.f32.gmra.mrb[94].mxu0 %v1083_v54  ;;  %v1085_v54 = vmax.f32 %v1003_v28, 0.0  ;;  %v1090_v46 = vmax.f32 %v1008_v43, 0.0  ;;  %v1095_v56 = vmax.f32 %v6083_v40, 0.0  ;;  %v1100_v47 = vmax.f32 %v6089_v12, 0.0  ;;  %v2412_v28 = vld [vmem:[%s6899_s5 + $0xd0] sm:$0xff]  ;;  %v2415_v43 = vld [vmem:[%s6899_s5 + $0xe8] sm:$0xff] }
 0x14b   : > { %1693 = vmatprep.mubr.f32.mxu1 %v1089_v3  ;;  %2152 = vmatprep.mubr.f32.mxu0 %v1089_v3  ;;  %v1075_v3 = vmax.f32 %v993_v39, 0.0  ;;  %v2411_v39 = vld [vmem:[%s6899_s5 + $0xc8] sm:$0xff]  ;;  %v2416_v12 = vld [vmem:[%s6899_s5 + $0xf0] sm:$0xff] }
 0x14e   : > { %1694 = vmatmul.mubr.f32.gmra.mrb[48].mxu1 %v1088_v42  ;;  %2153 = vmatmul.mubr.f32.gmra.mrb[96].mxu0 %v1088_v42  ;;  %v1110_v42 = vmax.f32 %v6103_v53, 0.0 }
 0x14f   : > { %1699 = vmatprep.mubr.f32.mxu1 %v1094_v20  ;;  %2157 = vmatprep.mubr.f32.mxu0 %v1094_v20  ;;  %v6096_v20 = vadd.f32 %v5981_v15, %v6045_v22  ;;  %v6110_v15 = vadd.f32 %v6001_v27, %v6045_v22  ;;  %v6128_v27 = vadd.f32 %v6009_v19, %v6045_v22 }
 0x150   : > { %v4470_v19 = vpack.c.bf16 %v2389_v49, %v2387_v36  ;;  %v4482_v22 = vpack.c.bf16 %v2401_v29, %v2399_v11  ;;  %v2422_v36 = vld [vmem:[%s6899_s5 + $0x120] sm:$0xff]  ;;  %v2424_v49 = vld [vmem:[%s6899_s5 + $0x130] sm:$0xff]  ;;  %v2439_v29 = vld [vmem:[%s6899_s5 + $0x1a8] sm:$0xff] }
 0x151   : > { %v1105_v7 = vmax.f32 %v6096_v20, 0.0  ;;  %v1115_v17 = vmax.f32 %v6110_v15, 0.0  ;;  %v2419_v20 = vld [vmem:[%s6899_s5 + $0x108] sm:$0xff]  ;;  %v2420_v15 = vld [vmem:[%s6899_s5 + $0x110] sm:$0xff] }
 0x152   : > { %1700 = vmatmul.mubr.f32.gmra.mrb[50].mxu1 %v1093_v9  ;;  %2158 = vmatmul.mubr.f32.gmra.mrb[98].mxu0 %v1093_v9  ;;  %v1125_v9 = vmax.f32 %v6128_v27, 0.0  ;;  %v2429_v27 = vld [vmem:[%s6899_s5 + $0x158] sm:$0xff] }
 0x153   : > { %1705 = vmatprep.mubr.f32.mxu1 %v1099_v4  ;;  %2162 = vmatprep.mubr.f32.mxu0 %v1099_v4  ;;  %v1120_v4 = vmax.f32 %v6119_v62, 0.0  ;;  %v2423_v62 = vld [vmem:[%s6899_s5 + $0x128] sm:$0xff] }
 0x154   : > { %4471 = vmatprep.subr.bf16.mxu1 %v4470_v19  ;;  %v4508_v19 = vpack.c.bf16 %v2424_v49, %v2422_v36 }
 0x156   : > { %1706 = vmatmul.mubr.f32.gmra.mrb[52].mxu1 %v1098_v38  ;;  %2163 = vmatmul.mubr.f32.gmra.mrb[100].mxu0 %v1098_v38  ;;  %v2391_v38 = vld [vmem:[%s6899_s5 + $0x28] sm:$0xff] }
 0x157   : > { %1711 = vmatprep.mubr.f32.mxu1 %v1104_v31  ;;  %2167 = vmatprep.mubr.f32.mxu0 %v1104_v31  ;;  %v2388_v31 = vld [vmem:[%s6899_s5 + $0x10] sm:$0xff] }
 0x158   : > { %v4472_v1 = vpack.c.bf16 %v2388_v31, %v2386_v24  ;;  %v2427_v24 = vld [vmem:[%s6899_s5 + $0x148] sm:$0xff]  ;;  %v2426_v31 = vld [vmem:[%s6899_s5 + $0x140] sm:$0xff] }
 0x15a   : > { %1712 = vmatmul.mubr.f32.gmra.mrb[54].mxu1 %v1103_v14  ;;  %2168 = vmatmul.mubr.f32.gmra.mrb[102].mxu0 %v1103_v14  ;;  %v2392_v14 = vld [vmem:[%s6899_s5 + $0x30] sm:$0xff] }
 0x15b   : > { %1717 = vmatprep.mubr.f32.mxu1 %v1109_v48  ;;  %2172 = vmatprep.mubr.f32.mxu0 %v1109_v48  ;;  %v4474_v48 = vpack.c.bf16 %v2393_v33, %v2391_v38  ;;  %v4476_v2 = vpack.c.bf16 %v2392_v14, %v2390_v23  ;;  %v2431_v33 = vld [vmem:[%s6899_s5 + $0x168] sm:$0xff]  ;;  %v2430_v14 = vld [vmem:[%s6899_s5 + $0x160] sm:$0xff] }
 0x15e   : > { %1718 = vmatmul.mubr.f32.gmra.mrb[56].mxu1 %v1108_v21  ;;  %2173 = vmatmul.mubr.f32.gmra.mrb[104].mxu0 %v1108_v21  ;;  %v2394_v21 = vld [vmem:[%s6899_s5 + $0x40] sm:$0xff] }
 0x15f   : > { %1723 = vmatprep.mubr.f32.mxu1 %v1114_v35  ;;  %2177 = vmatprep.mubr.f32.mxu0 %v1114_v35  ;;  %v2395_v35 = vld [vmem:[%s6899_s5 + $0x48] sm:$0xff] }
 0x160   : > { %v4478_v60 = vpack.c.bf16 %v2397_v61, %v2395_v35  ;;  %v2435_v61 = vld [vmem:[%s6899_s5 + $0x188] sm:$0xff] }
 0x162   : > { %1724 = vmatmul.mubr.f32.gmra.mrb[58].mxu1 %v1113_v18  ;;  %2178 = vmatmul.mubr.f32.gmra.mrb[106].mxu0 %v1113_v18  ;;  %v2398_v18 = vld [vmem:[%s6899_s5 + $0x60] sm:$0xff] }
 0x163   : > { %1729 = vmatprep.mubr.f32.mxu1 %v1119_v55  ;;  %2182 = vmatprep.mubr.f32.mxu0 %v1119_v55  ;;  %v4480_v55 = vpack.c.bf16 %v2396_v51, %v2394_v21  ;;  %v2434_v51 = vld [vmem:[%s6899_s5 + $0x180] sm:$0xff] }
 0x166   : > { %1730 = vmatmul.mubr.f32.gmra.mrb[60].mxu1 %v1118_v59  ;;  %2183 = vmatmul.mubr.f32.gmra.mrb[108].mxu0 %v1118_v59  ;;  %v2405_v59 = vld [vmem:[%s6899_s5 + $0x98] sm:$0xff] }
 0x167   : > { %1735 = vmatprep.mubr.f32.mxu1 %v1124_v37  ;;  %2187 = vmatprep.mubr.f32.mxu0 %v1124_v37  ;;  %v4484_v37 = vpack.c.bf16 %v2400_v50, %v2398_v18  ;;  %v4486_v52 = vpack.c.bf16 %v2405_v59, %v2403_v30  ;;  %v2438_v50 = vld [vmem:[%s6899_s5 + $0x1a0] sm:$0xff]  ;;  %v2443_v59 = vld [vmem:[%s6899_s5 + $0x1c8] sm:$0xff] }
 0x16a   : > { %1736 = vmatmul.mubr.f32.gmra.mrb[62].mxu1 %v1123_v32  ;;  %2188 = vmatmul.mubr.f32.gmra.mrb[110].mxu0 %v1123_v32  ;;  %v2407_v32 = vld [vmem:[%s6899_s5 + $0xa8] sm:$0xff] }
 0x16b   : > { %1806 = vmatprep.mubr.f32.mxu1 %v4783_v8  ;;  %4104 = vmatprep.mubr.msk.f32.mxu0 %vm1371_vm2, %v1050_v0 }
 0x16e   : > { %3687 = vmatmul.mubr.msk.f32.vlgmr.msra.gmra.mrb[32].mxu1 %vm1371_vm2, %v1050_v0  ;;  %4105 = vmatmul.mubr.msk.f32.vlgmr.msra.gmra.mrb[112].mxu0 %vm1371_vm2, %v1055_v44  ;;  %v2404_v0 = vld [vmem:[%s6899_s5 + $0x90] sm:$0xff] }
 0x16f   : > { %1812 = vmatprep.mubr.f32.mxu1 %v4783_v8  ;;  %4107 = vmatprep.mubr.msk.f32.mxu0 %vm1371_vm2, %v1060_v34  ;;  %v4488_v10 = vpack.c.bf16 %v2404_v0, %v2402_v57  ;;  %v2442_v0 = vld [vmem:[%s6899_s5 + $0x1c0] sm:$0xff] }
 0x170   : > { %4473 = vmatpush1.bf16.msra.mxu1 %v4472_v1  ;;  %v2428_v1 = vld [vmem:[%s6899_s5 + $0x150] sm:$0xff] }
 0x171   : > { %4475 = vmatprep.subr.bf16.mxu1 %v4474_v48  ;;  %v4512_v38 = vpack.c.bf16 %v2428_v1, %v2426_v31  ;;  %v2433_v48 = vld [vmem:[%s6899_s5 + $0x178] sm:$0xff] }
 0x172   : > { %3688 = vmatmul.mubr.msk.f32.gmra.mrb[34].mxu1 %vm1371_vm2, %v1055_v44  ;;  %4108 = vmatmul.mubr.msk.f32.gmra.mrb[114].mxu0 %vm1371_vm2, %v1065_v6  ;;  %v2409_v44 = vld [vmem:[%s6899_s5 + $0xb8] sm:$0xff]  ;;  %v4514_v23 = vpack.c.bf16 %v2433_v48, %v2431_v33 }
 0x173   : > { %1818 = vmatprep.mubr.f32.mxu1 %v4783_v8  ;;  %4110 = vmatprep.mubr.msk.f32.mxu0 %vm1371_vm2, %v1070_v58  ;;  %v4490_v5 = vpack.c.bf16 %v2409_v44, %v2407_v32 }
 0x174   : > { %4477 = vmatpush1.bf16.msra.mxu1 %v4476_v2  ;;  %v2432_v2 = vld [vmem:[%s6899_s5 + $0x170] sm:$0xff] }
 0x175   : > { %4479 = vmatprep.subr.bf16.mxu1 %v4478_v60  ;;  %v4516_v35 = vpack.c.bf16 %v2432_v2, %v2430_v14  ;;  %v2437_v60 = vld [vmem:[%s6899_s5 + $0x198] sm:$0xff] }
 0x176   : > { %3689 = vmatmul.mubr.msk.f32.gmra.mrb[36].mxu1 %vm1371_vm2, %v1060_v34  ;;  %4111 = vmatmul.mubr.msk.f32.gmra.mrb[116].mxu0 %vm1371_vm2, %v1075_v3  ;;  %v2406_v34 = vld [vmem:[%s6899_s5 + $0xa0] sm:$0xff]  ;;  %v4518_v21 = vpack.c.bf16 %v2437_v60, %v2435_v61 }
 0x177   : > { %1824 = vmatprep.mubr.f32.mxu1 %v4783_v8  ;;  %4113 = vmatprep.mubr.msk.f32.mxu0 %vm1371_vm2, %v1080_v45 }
 0x178   : > { %4481 = vmatpush1.bf16.msra.mxu1 %v4480_v55  ;;  %v2436_v55 = vld [vmem:[%s6899_s5 + $0x190] sm:$0xff] }
 0x179   : > { %4483 = vmatprep.subr.bf16.mxu1 %v4482_v22  ;;  %v4520_v11 = vpack.c.bf16 %v2436_v55, %v2434_v51  ;;  %v2441_v22 = vld [vmem:[%s6899_s5 + $0x1b8] sm:$0xff] }
 0x17a   : > { %3690 = vmatmul.mubr.msk.f32.gmra.mrb[38].mxu1 %vm1371_vm2, %v1065_v6  ;;  %4114 = vmatmul.mubr.msk.f32.gmra.mrb[118].mxu0 %vm1371_vm2, %v1085_v54  ;;  %v4492_v6 = vpack.c.bf16 %v2408_v41, %v2406_v34  ;;  %v4522_v18 = vpack.c.bf16 %v2441_v22, %v2439_v29  ;;  %v2449_v34 = vld [vmem:[%s6899_s5 + $0x1f8] sm:$0xff] }
 0x17b   : > { %1830 = vmatprep.mubr.f32.mxu1 %v4783_v8  ;;  %4116 = vmatprep.mubr.msk.f32.mxu0 %vm1371_vm2, %v1090_v46 }
 0x17c   : > { %4485 = vmatpush1.bf16.msra.mxu1 %v4484_v37  ;;  %v2440_v37 = vld [vmem:[%s6899_s5 + $0x1b0] sm:$0xff] }
 0x17d   : > { %4487 = vmatprep.subr.bf16.mxu1 %v4486_v52  ;;  %v4524_v30 = vpack.c.bf16 %v2440_v37, %v2438_v50  ;;  %v2445_v52 = vld [vmem:[%s6899_s5 + $0x1d8] sm:$0xff] }
 0x17e   : > { %3691 = vmatmul.mubr.msk.f32.gmra.mrb[40].mxu1 %vm1371_vm2, %v1070_v58  ;;  %4117 = vmatmul.mubr.msk.f32.gmra.mrb[120].mxu0 %vm1371_vm2, %v1095_v56  ;;  %v2413_v58 = vld [vmem:[%s6899_s5 + $0xd8] sm:$0xff]  ;;  %v4526_v57 = vpack.c.bf16 %v2445_v52, %v2443_v59  ;;  %v6393_v52 = vld [vmem:[%s6898_s4] sm:$0x7] }
 0x17f   : > { %1836 = vmatprep.mubr.f32.mxu1 %v4783_v8  ;;  %4119 = vmatprep.mubr.msk.f32.mxu0 %vm1371_vm2, %v1100_v47  ;;  %v4494_v16 = vpack.c.bf16 %v2413_v58, %v2411_v39  ;;  %v2446_v39 = vld [vmem:[%s6899_s5 + $0x1e0] sm:$0xff]  ;;  %v2448_v58 = vld [vmem:[%s6899_s5 + $0x1f0] sm:$0xff] }
 0x180   : > { %4489 = vmatpush1.bf16.msra.mxu1 %v4488_v10  ;;  %v2444_v10 = vld [vmem:[%s6899_s5 + $0x1d0] sm:$0xff] }
 0x181   : > { %4491 = vmatprep.subr.bf16.mxu1 %v4490_v5  ;;  %v4528_v32 = vpack.c.bf16 %v2444_v10, %v2442_v0  ;;  %v2447_v5 = vld [vmem:[%s6899_s5 + $0x1e8] sm:$0xff]  ;;  %v6398_v10 = vrot.slane %v6393_v52, %v499_v63 }
 0x182   : > { %3692 = vmatmul.mubr.msk.f32.gmra.mrb[42].mxu1 %vm1371_vm2, %v1075_v3  ;;  %4120 = vmatmul.mubr.msk.f32.gmra.mrb[122].mxu0 %vm1371_vm2, %v1105_v7  ;;  %v2410_v3 = vld [vmem:[%s6899_s5 + $0xc0] sm:$0xff] }
 0x183   : > { %1842 = vmatprep.mubr.f32.mxu1 %v4783_v8  ;;  %4122 = vmatprep.mubr.msk.f32.mxu0 %vm1371_vm2, %v1110_v42 }
 0x184   : > { %4493 = vmatpush1.bf16.msra.mxu1 %v4492_v6  ;;  %v4530_v6 = vpack.c.bf16 %v2449_v34, %v2447_v5 }
 0x185   : > { %4495 = vmatprep.subr.bf16.mxu1 %v4494_v16 }
 0x186   : > { %3693 = vmatmul.mubr.msk.f32.gmra.mrb[44].mxu1 %vm1371_vm2, %v1080_v45  ;;  %4123 = vmatmul.mubr.msk.f32.gmra.mrb[124].mxu0 %vm1371_vm2, %v1115_v17  ;;  %v4496_v45 = vpack.c.bf16 %v2412_v28, %v2410_v3  ;;  %v4532_v3 = vpack.c.bf16 %v2448_v58, %v2446_v39 }
 0x187   : > { %1848 = vmatprep.mubr.f32.mxu1 %v4783_v8  ;;  %4125 = vmatprep.mubr.msk.f32.mxu0 %vm1371_vm2, %v1120_v4 }
 0x188   : > { %4497 = vmatpush1.bf16.msra.mxu1 %v4496_v45 }
 0x18a   : > { %3694 = vmatmul.mubr.msk.f32.gmra.mrb[46].mxu1 %vm1371_vm2, %v1085_v54  ;;  %4126 = vmatmul.mubr.msk.f32.gmra.mrb[126].mxu0 %vm1371_vm2, %v1125_v9  ;;  %v2417_v54 = vld [vmem:[%s6899_s5 + $0xf8] sm:$0xff] }
 0x18b   : > { %1854 = vmatprep.mubr.f32.mxu1 %v4783_v8  ;;  %v4498_v40 = vpack.c.bf16 %v2417_v54, %v2415_v43 }
 0x18d   : > { %4499 = vmatprep.subr.bf16.mxu1 %v4498_v40  ;;  %v2451_v40 = vld [vmem:[%s6899_s5 + $0x208] sm:$0xff] }
 0x18e   : > { %3695 = vmatmul.mubr.msk.f32.gmra.mrb[48].mxu1 %vm1371_vm2, %v1090_v46  ;;  %v2414_v46 = vld [vmem:[%s6899_s5 + $0xe0] sm:$0xff] }
 0x18f   : > { %1860 = vmatprep.mubr.f32.mxu1 %v4783_v8 }
 0x192   : > { %3696 = vmatmul.mubr.msk.f32.gmra.mrb[50].mxu1 %vm1371_vm2, %v1095_v56  ;;  %v4500_v56 = vpack.c.bf16 %v2416_v12, %v2414_v46  ;;  %v2453_v46 = vld [vmem:[%s6899_s5 + $0x218] sm:$0xff] }
 0x193   : > { %1866 = vmatprep.mubr.f32.mxu1 %v4783_v8 }
 0x194   : > { %4501 = vmatpush1.bf16.msra.mxu1 %v4500_v56  ;;  %v4534_v56 = vpack.c.bf16 %v2453_v46, %v2451_v40 }
 0x196   : > { %3697 = vmatmul.mubr.msk.f32.gmra.mrb[52].mxu1 %vm1371_vm2, %v1100_v47  ;;  %v2421_v47 = vld [vmem:[%s6899_s5 + $0x118] sm:$0xff] }
 0x197   : > { %1872 = vmatprep.mubr.f32.mxu1 %v4783_v8  ;;  %v4502_v53 = vpack.c.bf16 %v2421_v47, %v2419_v20 }
 0x199   : > { %4503 = vmatprep.subr.bf16.mxu1 %v4502_v53 }
 0x19a   : > { %3698 = vmatmul.mubr.msk.f32.gmra.mrb[54].mxu1 %vm1371_vm2, %v1105_v7  ;;  %v2418_v7 = vld [vmem:[%s6899_s5 + $0x100] sm:$0xff] }
 0x19b   : > { %1878 = vmatprep.mubr.f32.mxu1 %v4783_v8 }
 0x19e   : > { %3699 = vmatmul.mubr.msk.f32.gmra.mrb[56].mxu1 %vm1371_vm2, %v1110_v42  ;;  %v4504_v42 = vpack.c.bf16 %v2420_v15, %v2418_v7 }
 0x19f   : > { %1884 = vmatprep.mubr.f32.mxu1 %v4783_v8 }
 0x1a0   : > { %4505 = vmatpush1.bf16.msra.mxu1 %v4504_v42 }
 0x1a2   : > { %3700 = vmatmul.mubr.msk.f32.gmra.mrb[58].mxu1 %vm1371_vm2, %v1115_v17  ;;  %v2425_v17 = vld [vmem:[%s6899_s5 + $0x138] sm:$0xff] }
 0x1a3   : > { %1890 = vmatprep.mubr.f32.mxu1 %v4783_v8 }
 0x1a6   : > { %3701 = vmatmul.mubr.msk.f32.gmra.mrb[60].mxu1 %vm1371_vm2, %v1120_v4  ;;  %v4506_v4 = vpack.c.bf16 %v2425_v17, %v2423_v62 }
 0x1a7   : > { %1896 = vmatprep.mubr.f32.mxu1 %v4783_v8 }
 0x1a8   : > { %4507 = vmatprep.subr.bf16.mxu1 %v4506_v4 }
 0x1a9   : > { %4509 = vmatpush1.bf16.msra.mxu1 %v4508_v19 }
 0x1aa   : > { %3702 = vmatmul.mubr.msk.f32.gmra.mrb[62].mxu1 %vm1371_vm2, %v1125_v9  ;;  %v4510_v9 = vpack.c.bf16 %v2429_v27, %v2427_v24 }
 0x1ac   : > { %4511 = vmatprep.subr.bf16.mxu1 %v4510_v9 }
 0x1ad   : > { %4513 = vmatpush1.bf16.msra.mxu1 %v4512_v38 }
 0x1ae   : > { %4515 = vmatprep.subr.bf16.mxu1 %v4514_v23 }
 0x1b1   : > { %4517 = vmatpush1.bf16.msra.mxu1 %v4516_v35 }
 0x1b2   : > { %4519 = vmatprep.subr.bf16.mxu1 %v4518_v21 }
 0x1b5   : > { %4521 = vmatpush1.bf16.msra.mxu1 %v4520_v11 }
 0x1b6   : > { %4523 = vmatprep.subr.bf16.mxu1 %v4522_v18 }
 0x1b9   : > { %4525 = vmatpush1.bf16.msra.mxu1 %v4524_v30 }
 0x1ba   : > { %4527 = vmatprep.subr.bf16.mxu1 %v4526_v57 }
 0x1bd   : > { %4529 = vmatpush1.bf16.msra.mxu1 %v4528_v32 }
 0x1be   : > { %4531 = vmatprep.subr.bf16.mxu1 %v4530_v6 }
 0x1c1   : > { %v3843_v44 = vpop.f32.mrb[48].mxu0  ;;  %4533 = vmatpush1.bf16.msra.mxu1 %v4532_v3 }
 0x1c2   : > { %v3844_v41 = vpop.f32.mrb[49].mxu0  ;;  %4535 = vmatprep.subr.bf16.mxu1 %v4534_v56 }
 0x1c3   : > { %v3845_v16 = vadd.f32 %v3844_v41, %v3843_v44 }
 0x1c5   : > { %v3846_v28 = vpop.f32.mrb[50].mxu0  ;;  %v1970_v34 = vadd.f32 %v3845_v16, %v6398_v10 }
 0x1c6   : > { %v3847_v45 = vpop.f32.mrb[51].mxu0 }
 0x1c7   : > { %v3848_v43 = vadd.f32 %v3847_v45, %v3846_v28 }
 0x1c9   : > { %v3849_v54 = vpop.f32.mrb[52].mxu0  ;;  %v1975_v3 = vadd.f32 %v3848_v43, %v6398_v10 }
 0x1ca   : > { %v3850_v12 = vpop.f32.mrb[53].mxu0 }
 0x1cb   : > { %v3851_v20 = vadd.f32 %v3850_v12, %v3849_v54 }
 0x1cd   : > { %v3852_v47 = vpop.f32.mrb[54].mxu0  ;;  %v1980_v63 = vadd.f32 %v3851_v20, %v6398_v10 }
 0x1ce   : > { %v3853_v53 = vpop.f32.mrb[55].mxu0 }
 0x1cf   : > { %v3854_v7 = vadd.f32 %v3853_v53, %v3852_v47 }
 0x1d1   : > { %v3855_v15 = vpop.f32.mrb[56].mxu0  ;;  %v1985_v16 = vadd.f32 %v3854_v7, %v6398_v10 }
 0x1d2   : > { %v3856_v42 = vpop.f32.mrb[57].mxu0 }
 0x1d3   : > { %v3857_v62 = vadd.f32 %v3856_v42, %v3855_v15 }
 0x1d5   : > { %v3858_v17 = vpop.f32.mrb[58].mxu0  ;;  %v1990_v43 = vadd.f32 %v3857_v62, %v6398_v10 }
 0x1d6   : > { %v3859_v4 = vpop.f32.mrb[59].mxu0 }
 0x1d7   : > { %v3860_v36 = vadd.f32 %v3859_v4, %v3858_v17 }
 0x1d9   : > { %v3861_v49 = vpop.f32.mrb[60].mxu0  ;;  %v1995_v20 = vadd.f32 %v3860_v36, %v6398_v10 }
 0x1da   : > { %v3862_v19 = vpop.f32.mrb[61].mxu0 }
 0x1db   : > { %v3863_v24 = vadd.f32 %v3862_v19, %v3861_v49 }
 0x1dd   : > { %v3864_v27 = vpop.f32.mrb[62].mxu0  ;;  %v2000_v7 = vadd.f32 %v3863_v24, %v6398_v10 }
 0x1de   : > { %v3865_v9 = vpop.f32.mrb[63].mxu0 }
 0x1df   : > { %v6374_v31 = vadd.f32 %v3865_v9, %v3864_v27 }
 0x1e1   : > { %v3867_v1 = vpop.f32.mrb[64].mxu0  ;;  %v2005_v62 = vadd.f32 %v6374_v31, %v6398_v10 }
 0x1e2   : > { %v3868_v38 = vpop.f32.mrb[65].mxu0 }
 0x1e3   : > { %v6376_v33 = vadd.f32 %v3868_v38, %v3867_v1 }
 0x1e5   : > { %v3870_v48 = vpop.f32.mrb[66].mxu0 }
 0x1e6   : > { %v3871_v23 = vpop.f32.mrb[67].mxu0 }
 0x1e7   : > { %v6378_v14 = vadd.f32 %v3871_v23, %v3870_v48 }
 0x1e9   : > { %v3873_v2 = vpop.f32.mrb[68].mxu0 }
 0x1ea   : > { %v3874_v35 = vpop.f32.mrb[69].mxu0 }
 0x1eb   : > { %v6380_v61 = vadd.f32 %v3874_v35, %v3873_v2 }
 0x1ed   : > { %v3876_v60 = vpop.f32.mrb[70].mxu0 }
 0x1ee   : > { %v3877_v21 = vpop.f32.mrb[71].mxu0 }
 0x1ef   : > { %v6382_v51 = vadd.f32 %v3877_v21, %v3876_v60 }
 0x1f1   : > { %v3879_v55 = vpop.f32.mrb[72].mxu0 }
 0x1f2   : > { %v3880_v11 = vpop.f32.mrb[73].mxu0 }
 0x1f3   : > { %v6384_v29 = vadd.f32 %v3880_v11, %v3879_v55  ;;  %v2010_v11 = vadd.f32 %v6376_v33, %v6398_v10 }
 0x1f5   : > { %v3882_v22 = vpop.f32.mrb[74].mxu0 }
 0x1f6   : > { %v3883_v18 = vpop.f32.mrb[75].mxu0 }
 0x1f7   : > { %v6386_v50 = vadd.f32 %v3883_v18, %v3882_v22 }
 0x1f9   : > { %v3885_v37 = vpop.f32.mrb[76].mxu0 }
 0x1fa   : > { %v3886_v30 = vpop.f32.mrb[77].mxu0 }
 0x1fb   : > { %v6388_v59 = vadd.f32 %v3886_v30, %v3885_v37  ;;  %v2015_v30 = vadd.f32 %v6378_v14, %v6398_v10 }
 0x1fd   : > { %v3888_v57 = vpop.f32.mrb[78].mxu0 }
 0x1fe   : > { %v3889_v0 = vpop.f32.mrb[79].mxu0 }
 0x1ff   : > { %v6400_v32 = vadd.f32 %v3889_v0, %v3888_v57 }
 0x201   : > { %v3923_v44 = vpop.f32.mrb[80].mxu0 }
 0x202   : > { %v3924_v5 = vpop.f32.mrb[81].mxu0 }
 0x203   : > { %v3925_v41 = vadd.f32 %v3924_v5, %v3923_v44  ;;  %v2020_v5 = vadd.f32 %v6380_v61, %v6398_v10 }
 0x205   : > { %v3926_v6 = vpop.f32.mrb[82].mxu0  ;;  %v6403_v39 = vadd.f32 %v3925_v41, %v1970_v34 }
 0x206   : > { %v3927_v58 = vpop.f32.mrb[83].mxu0 }
 0x207   : > { %v3928_v28 = vadd.f32 %v3927_v58, %v3926_v6  ;;  %v2025_v58 = vadd.f32 %v6382_v51, %v6398_v10 }
 0x209   : > { %v3929_v45 = vpop.f32.mrb[84].mxu0  ;;  %v6406_v54 = vadd.f32 %v3928_v28, %v1975_v3 }
 0x20a   : > { %v3930_v13 = vpop.f32.mrb[85].mxu0 }
 0x20b   : > { %v3931_v40 = vadd.f32 %v3930_v13, %v3929_v45  ;;  %v2030_v13 = vadd.f32 %v6384_v29, %v6398_v10 }
 0x20d   : > { %v3932_v46 = vpop.f32.mrb[86].mxu0  ;;  %v6409_v12 = vadd.f32 %v3931_v40, %v1980_v63 }
 0x20e   : > { %v3933_v56 = vpop.f32.mrb[87].mxu0 }
 0x20f   : > { %v3934_v47 = vadd.f32 %v3933_v56, %v3932_v46  ;;  %v2035_v56 = vadd.f32 %v6386_v50, %v6398_v10  ;;  %v2045_v50 = vadd.f32 %v6400_v32, %v6398_v10 }
 0x211   : > { %v3935_v53 = vpop.f32.mrb[88].mxu0  ;;  %v6412_v15 = vadd.f32 %v3934_v47, %v1985_v16 }
 0x212   : > { %v3936_v42 = vpop.f32.mrb[89].mxu0 }
 0x213   : > { %v3937_v17 = vadd.f32 %v3936_v42, %v3935_v53  ;;  %v2040_v42 = vadd.f32 %v6388_v59, %v6398_v10  ;;  %v2450_v10 = vld [vmem:[%s6899_s5 + $0x200] sm:$0xff] }
 0x215   : > { %v3938_v4 = vpop.f32.mrb[90].mxu0  ;;  %v6415_v49 = vadd.f32 %v3937_v17, %v1990_v43 }
 0x216   : > { %v3939_v19 = vpop.f32.mrb[91].mxu0 }
 0x217   : > { %v3940_v27 = vadd.f32 %v3939_v19, %v3938_v4  ;;  %v6457_v19 = vrot.slane %v6393_v52, %v5437_v25 }
 0x219   : > { %v3941_v9 = vpop.f32.mrb[92].mxu0  ;;  %v6418_v1 = vadd.f32 %v3940_v27, %v1995_v20  ;;  %v6463_v27 = vrot.slane %v6393_v52, %v5445_v26  ;;  %v2452_v52 = vld [vmem:[%s6899_s5 + $0x210] sm:$0xff] }
 0x21a   : > { %v3942_v38 = vpop.f32.mrb[93].mxu0 }
 0x21b   : > { %v3943_v48 = vadd.f32 %v3942_v38, %v3941_v9 }
 0x21d   : > { %v3944_v23 = vpop.f32.mrb[94].mxu0  ;;  %v6421_v2 = vadd.f32 %v3943_v48, %v2000_v7 }
 0x21e   : > { %v3945_v35 = vpop.f32.mrb[95].mxu0 }
 0x21f   : > { %v3946_v60 = vadd.f32 %v3945_v35, %v3944_v23 }
 0x221   : > { %v3947_v21 = vpop.f32.mrb[96].mxu0  ;;  %v6425_v55 = vadd.f32 %v3946_v60, %v2005_v62  ;;  %v2457_v60 = vld [vmem:[%s6899_s5 + $0x238] sm:$0xff] }
 0x222   : > { %v3948_v36 = vpop.f32.mrb[97].mxu0 }
 0x223   : > { %v3949_v22 = vadd.f32 %v3948_v36, %v3947_v21  ;;  %v2877_v21 = vld [vmem:[%s6901_s7] sm:$0xff]  ;;  %v2878_v36 = vld [vmem:[%s6901_s7 + $0x8] sm:$0xff] }
 0x225   : > { %v3950_v18 = vpop.f32.mrb[98].mxu0  ;;  %v6429_v37 = vadd.f32 %v3949_v22, %v2010_v11 }
 0x226   : > { %v3951_v24 = vpop.f32.mrb[99].mxu0 }
 0x227   : > { %v3952_v57 = vadd.f32 %v3951_v24, %v3950_v18  ;;  %v4536_v24 = vpack.c.bf16 %v2452_v52, %v2450_v10  ;;  %v2884_v10 = vld [vmem:[%s6901_s7 + $0x38] sm:$0xff] }
 0x229   : > { %v3953_v0 = vpop.f32.mrb[100].mxu0  ;;  %v6433_v44 = vadd.f32 %v3952_v57, %v2015_v30  ;;  %v4784_v30 = vmov 0.0|0.0   ;;  %v4547_v57 = vpack.c.bf16 %v2878_v36, %v2877_v21 }
 0x22a   : > { %v3954_v31 = vpop.f32.mrb[101].mxu0  ;;  %4546 = vmatprep.subr.bf16.mxu0 %v4784_v30 }
 0x22b   : > { %v3955_v34 = vadd.f32 %v3954_v31, %v3953_v0  ;;  %v2880_v0 = vld [vmem:[%s6901_s7 + $0x18] sm:$0xff]  ;;  %4548 = vmatpush1.bf16.msra.mxu0 %v4547_v57  ;;  %v2885_v57 = vld [vmem:[%s6901_s7 + $0x40] sm:$0xff] }
 0x22c   : > { %4549 = vmatprep.subr.bf16.mxu0 %v4784_v30 }
 0x22d   : > { %v3956_v41 = vpop.f32.mrb[102].mxu0  ;;  %v6437_v6 = vadd.f32 %v3955_v34, %v2020_v5 }
 0x22e   : > { %v3957_v33 = vpop.f32.mrb[103].mxu0 }
 0x22f   : > { %v3958_v3 = vadd.f32 %v3957_v33, %v3956_v41 }
 0x231   : > { %v3959_v28 = vpop.f32.mrb[104].mxu0  ;;  %v6441_v45 = vadd.f32 %v3958_v3, %v2025_v58  ;;  %v2454_v3 = vld [vmem:[%s6899_s5 + $0x220] sm:$0xff] }
 0x232   : > { %v3960_v14 = vpop.f32.mrb[105].mxu0 }
 0x233   : > { %v3961_v63 = vadd.f32 %v3960_v14, %v3959_v28  ;;  %v2456_v28 = vld [vmem:[%s6899_s5 + $0x230] sm:$0xff] }
 0x235   : > { %v3962_v40 = vpop.f32.mrb[106].mxu0  ;;  %v6445_v46 = vadd.f32 %v3961_v63, %v2030_v13  ;;  %v2461_v63 = vld [vmem:[%s6899_s5 + $0x258] sm:$0xff] }
 0x236   : > { %v3963_v61 = vpop.f32.mrb[107].mxu0 }
 0x237   : > { %v3964_v16 = vadd.f32 %v3963_v61, %v3962_v40  ;;  %v2881_v61 = vld [vmem:[%s6901_s7 + $0x20] sm:$0xff] }
 0x239   : > { %v3965_v47 = vpop.f32.mrb[108].mxu0  ;;  %v6449_v53 = vadd.f32 %v3964_v16, %v2035_v56 }
 0x23a   : > { %v3966_v51 = vpop.f32.mrb[109].mxu0 }
 0x23b   : > { %v3967_v43 = vadd.f32 %v3966_v51, %v3965_v47  ;;  %v4540_v51 = vpack.c.bf16 %v2456_v28, %v2454_v3 }
 0x23d   : > { %v3968_v17 = vpop.f32.mrb[110].mxu0  ;;  %v6453_v4 = vadd.f32 %v3967_v43, %v2040_v42 }
 0x23e   : > { %v3969_v29 = vpop.f32.mrb[111].mxu0 }
 0x23f   : > { %v3970_v20 = vadd.f32 %v3969_v29, %v3968_v17 }
 0x241   : > { %v1808_v9 = vpop.f32.mrb[32].mxu1  ;;  %v4106_v38 = vpop.f32.mrb[112].mxu0  ;;  %v6465_v59 = vadd.f32 %v3970_v20, %v2045_v50 }
 0x242   : > { %v4603_v7 = vadd.f32 %v1808_v9, %v6457_v19  ;;  %v6469_v48 = vadd.f32 %v4106_v38, %v6406_v54  ;;  %v1810_v23 = vpop.f32.mrb[33].mxu1  ;;  %v2259_v35 = vpop.f32.mrb[113].mxu0  ;;  %v2455_v54 = vld [vmem:[%s6899_s5 + $0x228] sm:$0xff]  ;;  %v2458_v9 = vld [vmem:[%s6899_s5 + $0x240] sm:$0xff]  ;;  %v2460_v38 = vld [vmem:[%s6899_s5 + $0x250] sm:$0xff] }
 0x243   : > { %v4604_v32 = vadd.f32 %v1810_v23, %v6463_v27  ;;  %v6479_v62 = vadd.f32 %v2259_v35, %v6403_v39  ;;  %v2879_v39 = vld [vmem:[%s6901_s7 + $0x10] sm:$0xff]  ;;  %v4538_v58 = vpack.c.bf16 %v2457_v60, %v2455_v54 }
 0x244   : > { %v2338_v31 = vmax.f32 %v4603_v7, 0.0  ;;  %v4550_v40 = vpack.c.bf16 %v2880_v0, %v2879_v39  ;;  %v2883_v35 = vld [vmem:[%s6901_s7 + $0x30] sm:$0xff] }
 0x245   : > { %v2339_v11 = vmax.f32 %v4604_v32, 0.0  ;;  %v1814_v22 = vpop.f32.mrb[34].mxu1  ;;  %v4109_v18 = vpop.f32.mrb[114].mxu0 }
 0x246   : > { %v4605_v5 = vadd.f32 %v1814_v22, %v6457_v19  ;;  %v6502_v34 = vadd.f32 %v4109_v18, %v6412_v15  ;;  %v1816_v41 = vpop.f32.mrb[35].mxu1  ;;  %v2269_v33 = vpop.f32.mrb[115].mxu0  ;;  %v2459_v15 = vld [vmem:[%s6899_s5 + $0x248] sm:$0xff]  ;;  %4551 = vmatpush1.bf16.msra.mxu0 %v4550_v40 }
 0x247   : > { %v4606_v14 = vadd.f32 %v1816_v41, %v6463_v27  ;;  %v6512_v13 = vadd.f32 %v2269_v33, %v6409_v12  ;;  %2587 = vmatprep.mubr.f32.mxu1 %v2339_v11  ;;  %v2882_v12 = vld [vmem:[%s6901_s7 + $0x28] sm:$0xff]  ;;  %v4542_v20 = vpack.c.bf16 %v2461_v63, %v2459_v15  ;;  %4552 = vmatprep.subr.bf16.mxu0 %v4784_v30  ;;  %v2887_v63 = vld [vmem:[%s6901_s7 + $0x50] sm:$0xff] }
 0x248   : > { %2588 = vmatmul.mubr.f32.vlgmr.msra.gmra.mrb[64].mxu1 %v2338_v31  ;;  %v2341_v42 = vmax.f32 %v4605_v5, 0.0 }
 0x249   : > { %v2342_v56 = vmax.f32 %v4606_v14, 0.0  ;;  %4537 = vmatpush1.bf16.msra.mxu1 %v4536_v24  ;;  %v1820_v16 = vpop.f32.mrb[36].mxu1  ;;  %v4112_v47 = vpop.f32.mrb[116].mxu0  ;;  %v4556_v24 = vpack.c.bf16 %v2884_v10, %v2883_v35 }
 0x24a   : > { %v4607_v43 = vadd.f32 %v1820_v16, %v6457_v19  ;;  %v6529_v17 = vadd.f32 %v4112_v47, %v6418_v1  ;;  %v1822_v29 = vpop.f32.mrb[37].mxu1  ;;  %v2279_v50 = vpop.f32.mrb[117].mxu0  ;;  %4539 = vmatprep.subr.bf16.mxu1 %v4538_v58  ;;  %v4553_v1 = vpack.c.bf16 %v2882_v12, %v2881_v61 }
 0x24b   : > { %v4608_v7 = vadd.f32 %v1822_v29, %v6463_v27  ;;  %v6539_v23 = vadd.f32 %v2279_v50, %v6415_v49  ;;  %2593 = vmatprep.mubr.f32.mxu1 %v2342_v56  ;;  %v4544_v49 = vpack.c.bf16 %v2460_v38, %v2458_v9  ;;  %v2889_v50 = vld [vmem:[%s6901_s7 + $0x60] sm:$0xff] }
 0x24c   : > { %2594 = vmatmul.mubr.f32.gmra.mrb[66].mxu1 %v2341_v42  ;;  %v2344_v60 = vmax.f32 %v4607_v43, 0.0  ;;  %4554 = vmatpush1.bf16.msra.mxu0 %v4553_v1 }
 0x24d   : > { %v2345_v52 = vmax.f32 %v4608_v7, 0.0  ;;  %v1826_v32 = vpop.f32.mrb[38].mxu1  ;;  %v4115_v54 = vpop.f32.mrb[118].mxu0  ;;  %4541 = vmatpush1.bf16.msra.mxu1 %v4540_v51  ;;  %4555 = vmatprep.subr.bf16.mxu0 %v4784_v30 }
 0x24e   : > { %v4609_v21 = vadd.f32 %v1826_v32, %v6457_v19  ;;  %v6550_v36 = vadd.f32 %v4115_v54, %v6425_v55  ;;  %v1828_v39 = vpop.f32.mrb[39].mxu1  ;;  %v2289_v11 = vpop.f32.mrb[119].mxu0  ;;  %4543 = vmatprep.subr.bf16.mxu1 %v4542_v20  ;;  %v2886_v55 = vld [vmem:[%s6901_s7 + $0x48] sm:$0xff] }
 0x24f   : > { %v4610_v22 = vadd.f32 %v1828_v39, %v6463_v27  ;;  %v6554_v18 = vadd.f32 %v2289_v11, %v6421_v2  ;;  %2599 = vmatprep.mubr.f32.mxu1 %v2345_v52  ;;  %v4559_v15 = vpack.c.bf16 %v2886_v55, %v2885_v57 }
 0x250   : > { %2600 = vmatmul.mubr.f32.gmra.mrb[68].mxu1 %v2344_v60  ;;  %v2347_v2 = vmax.f32 %v4609_v21, 0.0  ;;  %4557 = vmatpush1.bf16.msra.mxu0 %v4556_v24 }
 0x251   : > { %v2348_v0 = vmax.f32 %v4610_v22, 0.0  ;;  %v1832_v31 = vpop.f32.mrb[40].mxu1  ;;  %v4118_v5 = vpop.f32.mrb[120].mxu0  ;;  %4545 = vmatpush1.bf16.msra.mxu1 %v4544_v49  ;;  %4558 = vmatprep.subr.bf16.mxu0 %v4784_v30  ;;  %v2891_v49 = vld [vmem:[%s6901_s7 + $0x70] sm:$0xff] }
 0x252   : > { %v4611_v41 = vadd.f32 %v1832_v31, %v6457_v19  ;;  %v6565_v33 = vadd.f32 %v4118_v5, %v6433_v44  ;;  %v1834_v58 = vpop.f32.mrb[41].mxu1  ;;  %v2299_v3 = vpop.f32.mrb[121].mxu0  ;;  %v2888_v44 = vld [vmem:[%s6901_s7 + $0x58] sm:$0xff] }
 0x253   : > { %v4612_v28 = vadd.f32 %v1834_v58, %v6463_v27  ;;  %v6569_v14 = vadd.f32 %v2299_v3, %v6429_v37  ;;  %2605 = vmatprep.mubr.f32.mxu1 %v2348_v0  ;;  %v4562_v29 = vpack.c.bf16 %v2888_v44, %v2887_v63 }
 0x254   : > { %2606 = vmatmul.mubr.f32.gmra.mrb[70].mxu1 %v2347_v2  ;;  %v2350_v56 = vmax.f32 %v4611_v41, 0.0  ;;  %4560 = vmatpush1.bf16.msra.mxu0 %v4559_v15 }
 0x255   : > { %v2351_v40 = vmax.f32 %v4612_v28, 0.0  ;;  %v1838_v61 = vpop.f32.mrb[42].mxu1  ;;  %v4121_v12 = vpop.f32.mrb[122].mxu0  ;;  %4561 = vmatprep.subr.bf16.mxu0 %v4784_v30 }
 0x256   : > { %v4613_v37 = vadd.f32 %v1838_v61, %v6457_v19  ;;  %v6580_v16 = vadd.f32 %v4121_v12, %v6441_v45  ;;  %v1840_v47 = vpop.f32.mrb[43].mxu1  ;;  %v2309_v51 = vpop.f32.mrb[123].mxu0  ;;  %v2890_v45 = vld [vmem:[%s6901_s7 + $0x68] sm:$0xff] }
 0x257   : > { %v4614_v42 = vadd.f32 %v1840_v47, %v6463_v27  ;;  %v6584_v43 = vadd.f32 %v2309_v51, %v6437_v6  ;;  %2611 = vmatprep.mubr.f32.mxu1 %v2351_v40  ;;  %v4565_v54 = vpack.c.bf16 %v2890_v45, %v2889_v50 }
 0x258   : > { %2612 = vmatmul.mubr.f32.gmra.mrb[72].mxu1 %v2350_v56  ;;  %v2353_v7 = vmax.f32 %v4613_v37, 0.0  ;;  %4563 = vmatpush1.bf16.msra.mxu0 %v4562_v29 }
 0x259   : > { %v2354_v20 = vmax.f32 %v4614_v42, 0.0  ;;  %v1844_v9 = vpop.f32.mrb[44].mxu1  ;;  %v4124_v38 = vpop.f32.mrb[124].mxu0  ;;  %4564 = vmatprep.subr.bf16.mxu0 %v4784_v30 }
 0x25a   : > { %v4615_v6 = vadd.f32 %v1844_v9, %v6457_v19  ;;  %v6595_v1 = vadd.f32 %v4124_v38, %v6449_v53  ;;  %v1846_v35 = vpop.f32.mrb[45].mxu1  ;;  %v2319_v10 = vpop.f32.mrb[125].mxu0  ;;  %v2892_v53 = vld [vmem:[%s6901_s7 + $0x78] sm:$0xff] }
 0x25b   : > { %v4616_v52 = vadd.f32 %v1846_v35, %v6463_v27  ;;  %v6599_v32 = vadd.f32 %v2319_v10, %v6445_v46  ;;  %2617 = vmatprep.mubr.f32.mxu1 %v2354_v20  ;;  %v4568_v31 = vpack.c.bf16 %v2892_v53, %v2891_v49 }
 0x25c   : > { %2618 = vmatmul.mubr.f32.gmra.mrb[74].mxu1 %v2353_v7  ;;  %v2356_v11 = vmax.f32 %v4615_v6, 0.0  ;;  %4566 = vmatpush1.bf16.msra.mxu0 %v4565_v54 }
 0x25d   : > { %v2357_v60 = vmax.f32 %v4616_v52, 0.0  ;;  %v1850_v21 = vpop.f32.mrb[46].mxu1  ;;  %v4127_v39 = vpop.f32.mrb[126].mxu0  ;;  %4567 = vmatprep.subr.bf16.mxu0 %v4784_v30 }
 0x25e   : > { %v4617_v46 = vadd.f32 %v1850_v21, %v6457_v19  ;;  %v6610_v22 = vadd.f32 %v4127_v39, %v6465_v59  ;;  %v1852_v24 = vpop.f32.mrb[47].mxu1  ;;  %v2329_v57 = vpop.f32.mrb[127].mxu0 }
 0x25f   : > { %v4618_v55 = vadd.f32 %v1852_v24, %v6463_v27  ;;  %v6614_v0 = vadd.f32 %v2329_v57, %v6453_v4  ;;  %2623 = vmatprep.mubr.f32.mxu1 %v2357_v60 }
 0x260   : > { %2624 = vmatmul.mubr.f32.gmra.mrb[76].mxu1 %v2356_v11  ;;  %v2359_v41 = vmax.f32 %v4617_v46, 0.0  ;;  %4569 = vmatpush1.bf16.msra.mxu0 %v4568_v31 }
 0x261   : > { %v2360_v5 = vmax.f32 %v4618_v55, 0.0  ;;  %v1856_v2 = vpop.f32.mrb[48].mxu1  ;;  %4570 = vmatprep.subr.bf16.mxu0 %v4784_v30 }
 0x262   : > { %v4619_v58 = vadd.f32 %v1856_v2, %v6457_v19  ;;  %v1858_v59 = vpop.f32.mrb[49].mxu1 }
 0x263   : > { %v4620_v3 = vadd.f32 %v1858_v59, %v6463_v27  ;;  %2629 = vmatprep.mubr.f32.mxu1 %v2360_v5 }
 0x264   : > { %2630 = vmatmul.mubr.f32.gmra.mrb[78].mxu1 %v2359_v41  ;;  %v2362_v15 = vmax.f32 %v4619_v58, 0.0 }
 0x265   : > { %v2363_v4 = vmax.f32 %v4620_v3, 0.0  ;;  %v1862_v28 = vpop.f32.mrb[50].mxu1 }
 0x266   : > { %v4621_v63 = vadd.f32 %v1862_v28, %v6457_v19  ;;  %v1864_v44 = vpop.f32.mrb[51].mxu1  ;;  %v2340_v28 = vmax.f32 %v6479_v62, 0.0  ;;  %v2352_v62 = vmax.f32 %v6539_v23, 0.0  ;;  %v2364_v23 = vmax.f32 %v6569_v14, 0.0 }
 0x267   : > { %v4622_v40 = vadd.f32 %v1864_v44, %v6463_v27  ;;  %2635 = vmatprep.mubr.f32.mxu1 %v2363_v4  ;;  %v2376_v14 = vmax.f32 %v6599_v32, 0.0  ;;  %v2893_v32 = vld [vmem:[%s6901_s7 + $0x80] sm:$0xff]  ;;  %v3114_v44 = vld [vmem:[%s6903_s9 + $0x8] sm:$0xff] }
 0x268   : > { %2636 = vmatmul.mubr.f32.gmra.mrb[80].mxu1 %v2362_v15  ;;  %v2365_v56 = vmax.f32 %v4621_v63, 0.0  ;;  %v2349_v15 = vmax.f32 %v6502_v34, 0.0  ;;  %v2361_v34 = vmax.f32 %v6550_v36, 0.0  ;;  %v2373_v36 = vmax.f32 %v6580_v16, 0.0 }
 0x269   : > { %v2366_v61 = vmax.f32 %v4622_v40, 0.0  ;;  %v1868_v12 = vpop.f32.mrb[52].mxu1  ;;  %v2385_v16 = vmax.f32 %v6610_v22, 0.0  ;;  %v3113_v22 = vld [vmem:[%s6903_s9] sm:$0xff] }
 0x26a   : > { %v4623_v37 = vadd.f32 %v1868_v12, %v6457_v19  ;;  %v1870_v47 = vpop.f32.mrb[53].mxu1  ;;  %v4573_v40 = vpack.c.bf16 %v3114_v44, %v3113_v22 }
 0x26b   : > { %v4624_v51 = vadd.f32 %v1870_v47, %v6463_v27  ;;  %2641 = vmatprep.mubr.f32.mxu1 %v2366_v61  ;;  %v2462_v61 = vld [vmem:[%s6900_s6] sm:$0x3] }
 0x26c   : > { %2642 = vmatmul.mubr.f32.gmra.mrb[82].mxu1 %v2365_v56  ;;  %v2368_v29 = vmax.f32 %v4623_v37, 0.0  ;;  %v6705_v12 = vrot.slane %v2462_v61, %v5445_v26 }
 0x26d   : > { %v2369_v30 = vmax.f32 %v4624_v51, 0.0  ;;  %v1874_v42 = vpop.f32.mrb[54].mxu1 }
 0x26e   : > { %v4625_v50 = vadd.f32 %v1874_v42, %v6457_v19  ;;  %v1876_v45 = vpop.f32.mrb[55].mxu1  ;;  %v3116_v42 = vld [vmem:[%s6903_s9 + $0x18] sm:$0xff] }
 0x26f   : > { %v4626_v20 = vadd.f32 %v1876_v45, %v6463_v27  ;;  %2647 = vmatprep.mubr.f32.mxu1 %v2369_v30  ;;  %v3115_v30 = vld [vmem:[%s6903_s9 + $0x10] sm:$0xff] }
 0x270   : > { %2648 = vmatmul.mubr.f32.gmra.mrb[84].mxu1 %v2368_v29  ;;  %v2371_v7 = vmax.f32 %v4625_v50, 0.0 }
 0x271   : > { %v2372_v9 = vmax.f32 %v4626_v20, 0.0  ;;  %v1880_v38 = vpop.f32.mrb[56].mxu1  ;;  %v4577_v20 = vpack.c.bf16 %v3116_v42, %v3115_v30 }
 0x272   : > { %v4627_v6 = vadd.f32 %v1880_v38, %v6457_v19  ;;  %v1882_v35 = vpop.f32.mrb[57].mxu1  ;;  %v3117_v38 = vld [vmem:[%s6903_s9 + $0x20] sm:$0xff] }
 0x273   : > { %v4628_v10 = vadd.f32 %v1882_v35, %v6463_v27  ;;  %2653 = vmatprep.mubr.f32.mxu1 %v2372_v9 }
 0x274   : > { %2654 = vmatmul.mubr.f32.gmra.mrb[86].mxu1 %v2371_v7  ;;  %v2374_v49 = vmax.f32 %v4627_v6, 0.0  ;;  %v3118_v7 = vld [vmem:[%s6903_s9 + $0x28] sm:$0xff] }
 0x275   : > { %v2375_v52 = vmax.f32 %v4628_v10, 0.0  ;;  %v1886_v54 = vpop.f32.mrb[58].mxu1 }
 0x276   : > { %v4629_v53 = vadd.f32 %v1886_v54, %v6457_v19  ;;  %v1888_v60 = vpop.f32.mrb[59].mxu1 }
 0x277   : > { %v4630_v21 = vadd.f32 %v1888_v60, %v6463_v27  ;;  %2659 = vmatprep.mubr.f32.mxu1 %v2375_v52 }
 0x278   : > { %2660 = vmatmul.mubr.f32.gmra.mrb[88].mxu1 %v2374_v49  ;;  %v2377_v46 = vmax.f32 %v4629_v53, 0.0  ;;  %v4581_v49 = vpack.c.bf16 %v3118_v7, %v3117_v38 }
 0x279   : > { %v2378_v39 = vmax.f32 %v4630_v21, 0.0  ;;  %v1892_v11 = vpop.f32.mrb[60].mxu1 }
 0x27a   : > { %v4631_v24 = vadd.f32 %v1892_v11, %v6457_v19  ;;  %v1894_v57 = vpop.f32.mrb[61].mxu1 }
 0x27b   : > { %v4632_v55 = vadd.f32 %v1894_v57, %v6463_v27  ;;  %2665 = vmatprep.mubr.f32.mxu1 %v2378_v39 }
 0x27c   : > { %2666 = vmatmul.mubr.f32.gmra.mrb[90].mxu1 %v2377_v46  ;;  %v2380_v2 = vmax.f32 %v4631_v24, 0.0 }
 0x27d   : > { %v2381_v31 = vmax.f32 %v4632_v55, 0.0  ;;  %v1898_v5 = vpop.f32.mrb[62].mxu1 }
 0x27e   : > { %v4633_v41 = vadd.f32 %v1898_v5, %v6457_v19  ;;  %v1900_v58 = vpop.f32.mrb[63].mxu1  ;;  %v2343_v19 = vmax.f32 %v6469_v48, 0.0  ;;  %v2355_v48 = vmax.f32 %v6529_v17, 0.0  ;;  %v2367_v17 = vmax.f32 %v6565_v33, 0.0 }
 0x27f   : > { %v4634_v59 = vadd.f32 %v1900_v58, %v6463_v27  ;;  %2671 = vmatprep.mubr.f32.mxu1 %v2381_v31  ;;  %v2346_v27 = vmax.f32 %v6512_v13, 0.0  ;;  %v2358_v13 = vmax.f32 %v6554_v18, 0.0  ;;  %v2370_v18 = vmax.f32 %v6584_v43, 0.0 }
 0x280   : > { %2672 = vmatmul.mubr.f32.gmra.mrb[92].mxu1 %v2380_v2  ;;  %v2383_v4 = vmax.f32 %v4633_v41, 0.0  ;;  %v2379_v33 = vmax.f32 %v6595_v1, 0.0  ;;  %v2382_v43 = vmax.f32 %v6614_v0, 0.0  ;;  %v2894_v1 = vld [vmem:[%s6901_s7 + $0x88] sm:$0xff]  ;;  %v2895_v0 = vld [vmem:[%s6901_s7 + $0x90] sm:$0xff] }
 0x281   : > { %v2384_v3 = vmax.f32 %v4634_v59, 0.0  ;;  %v4571_v63 = vpack.c.bf16 %v2894_v1, %v2893_v32 }
 0x283   : > { %2677 = vmatprep.mubr.f32.mxu1 %v2384_v3  ;;  %4572 = vmatpush1.bf16.msra.mxu0 %v4571_v63 }
 0x284   : > { %2678 = vmatmul.mubr.f32.gmra.mrb[94].mxu1 %v2383_v4  ;;  %2988 = vmatprep.subr.mxu0 %v4783_v8 }
 0x285   : > { %2748 = vmatprep.mubr.f32.mxu1 %v4783_v8 }
 0x287   : > { %2989 = vmatpush1.msra.mxu0 %v2895_v0 }
 0x288   : > { %3719 = vmatmul.mubr.msk.f32.vlgmr.msra.gmra.mrb[64].mxu1 %vm2474_vm3, %v2340_v28  ;;  %4574 = vmatprep.subr.bf16.mxu0 %v4573_v40 }
 0x289   : > { %2754 = vmatprep.mubr.f32.mxu1 %v4783_v8 }
 0x28c   : > { %3720 = vmatmul.mubr.msk.f32.gmra.mrb[66].mxu1 %vm2474_vm3, %v2343_v19 }
 0x28d   : > { %2760 = vmatprep.mubr.f32.mxu1 %v4783_v8 }
 0x290   : > { %3721 = vmatmul.mubr.msk.f32.gmra.mrb[68].mxu1 %vm2474_vm3, %v2346_v27 }
 0x291   : > { %2766 = vmatprep.mubr.f32.mxu1 %v4783_v8 }
 0x294   : > { %3722 = vmatmul.mubr.msk.f32.gmra.mrb[70].mxu1 %vm2474_vm3, %v2349_v15 }
 0x295   : > { %2772 = vmatprep.mubr.f32.mxu1 %v4783_v8 }
 0x298   : > { %3723 = vmatmul.mubr.msk.f32.gmra.mrb[72].mxu1 %vm2474_vm3, %v2352_v62 }
 0x299   : > { %2778 = vmatprep.mubr.f32.mxu1 %v4783_v8 }
 0x29c   : > { %3724 = vmatmul.mubr.msk.f32.gmra.mrb[74].mxu1 %vm2474_vm3, %v2355_v48 }
 0x29d   : > { %2784 = vmatprep.mubr.f32.mxu1 %v4783_v8 }
 0x2a0   : > { %3725 = vmatmul.mubr.msk.f32.gmra.mrb[76].mxu1 %vm2474_vm3, %v2358_v13 }
 0x2a1   : > { %2790 = vmatprep.mubr.f32.mxu1 %v4783_v8 }
 0x2a4   : > { %3726 = vmatmul.mubr.msk.f32.gmra.mrb[78].mxu1 %vm2474_vm3, %v2361_v34 }
 0x2a5   : > { %2796 = vmatprep.mubr.f32.mxu1 %v4783_v8 }
 0x2a8   : > { %3727 = vmatmul.mubr.msk.f32.gmra.mrb[80].mxu1 %vm2474_vm3, %v2364_v23 }
 0x2a9   : > { %2802 = vmatprep.mubr.f32.mxu1 %v4783_v8 }
 0x2ac   : > { %3728 = vmatmul.mubr.msk.f32.gmra.mrb[82].mxu1 %vm2474_vm3, %v2367_v17 }
 0x2ad   : > { %2808 = vmatprep.mubr.f32.mxu1 %v4783_v8 }
 0x2b0   : > { %3729 = vmatmul.mubr.msk.f32.gmra.mrb[84].mxu1 %vm2474_vm3, %v2370_v18 }
 0x2b1   : > { %2814 = vmatprep.mubr.f32.mxu1 %v4783_v8 }
 0x2b4   : > { %3730 = vmatmul.mubr.msk.f32.gmra.mrb[86].mxu1 %vm2474_vm3, %v2373_v36 }
 0x2b5   : > { %2820 = vmatprep.mubr.f32.mxu1 %v4783_v8 }
 0x2b8   : > { %3731 = vmatmul.mubr.msk.f32.gmra.mrb[88].mxu1 %vm2474_vm3, %v2376_v14 }
 0x2b9   : > { %2826 = vmatprep.mubr.f32.mxu1 %v4783_v8 }
 0x2bc   : > { %3732 = vmatmul.mubr.msk.f32.gmra.mrb[90].mxu1 %vm2474_vm3, %v2379_v33 }
 0x2bd   : > { %2832 = vmatprep.mubr.f32.mxu1 %v4783_v8 }
 0x2c0   : > { %3733 = vmatmul.mubr.msk.f32.gmra.mrb[92].mxu1 %vm2474_vm3, %v2382_v43 }
 0x2c1   : > { %2838 = vmatprep.mubr.f32.mxu1 %v4783_v8  ;;  %v6702_v8 = vrot.slane %v2462_v61, %v5437_v25 }
 0x2c4   : > { %3734 = vmatmul.mubr.msk.f32.gmra.mrb[94].mxu1 %vm2474_vm3, %v2385_v16 }
 0x35b   : > { %v2750_v56 = vpop.f32.mrb[64].mxu1 }
 0x35c   : > { %v4635_v37 = vadd.f32 %v2750_v56, %v6702_v8  ;;  %v2752_v47 = vpop.f32.mrb[65].mxu1 }
 0x35d   : > { %v4636_v51 = vadd.f32 %v2752_v47, %v6705_v12 }
 0x35e   : > { %v2845_v50 = vmax.f32 %v4635_v37, 0.0 }
 0x35f   : > { %v2846_v25 = vmax.f32 %v4636_v51, 0.0  ;;  %v2756_v29 = vpop.f32.mrb[66].mxu1 }
 0x360   : > { %v4637_v26 = vadd.f32 %v2756_v29, %v6702_v8  ;;  %v2758_v45 = vpop.f32.mrb[67].mxu1 }
 0x361   : > { %v4638_v9 = vadd.f32 %v2758_v45, %v6705_v12  ;;  %3736 = vmatprep.mubr.msk.f32.mxu0 %vm2903_vm4, %v2846_v25 }
 0x362   : > { %3017 = vmatmul.mubr.f32.vlgmr.msra.gmra.mrb[128].mxu0 %v2845_v50  ;;  %v2847_v10 = vmax.f32 %v4637_v26, 0.0 }
 0x363   : > { %v2848_v6 = vmax.f32 %v4638_v9, 0.0  ;;  %v2762_v35 = vpop.f32.mrb[68].mxu1  ;;  %4576 = vmatpush3.bf16.msra.mxu0 %v4573_v40 }
 0x364   : > { %v4639_v52 = vadd.f32 %v2762_v35, %v6702_v8  ;;  %v2764_v54 = vpop.f32.mrb[69].mxu1  ;;  %4578 = vmatprep.subr.bf16.mxu0 %v4577_v20 }
 0x365   : > { %v4640_v53 = vadd.f32 %v2764_v54, %v6705_v12  ;;  %3737 = vmatprep.mubr.msk.f32.mxu0 %vm2903_vm4, %v2848_v6 }
 0x366   : > { %3022 = vmatmul.mubr.f32.gmra.mrb[130].mxu0 %v2847_v10  ;;  %v2849_v39 = vmax.f32 %v4639_v52, 0.0 }
 0x367   : > { %v2850_v60 = vmax.f32 %v4640_v53, 0.0  ;;  %v2768_v21 = vpop.f32.mrb[70].mxu1  ;;  %4580 = vmatpush3.bf16.msra.mxu0 %v4577_v20 }
 0x368   : > { %v4641_v11 = vadd.f32 %v2768_v21, %v6702_v8  ;;  %v2770_v46 = vpop.f32.mrb[71].mxu1  ;;  %4582 = vmatprep.subr.bf16.mxu0 %v4581_v49 }
 0x369   : > { %v4642_v24 = vadd.f32 %v2770_v46, %v6705_v12  ;;  %3738 = vmatprep.mubr.msk.f32.mxu0 %vm2903_vm4, %v2850_v60 }
 0x36a   : > { %3027 = vmatmul.mubr.f32.gmra.mrb[132].mxu0 %v2849_v39  ;;  %v2851_v31 = vmax.f32 %v4641_v11, 0.0 }
 0x36b   : > { %v2852_v57 = vmax.f32 %v4642_v24, 0.0  ;;  %v2774_v55 = vpop.f32.mrb[72].mxu1  ;;  %4584 = vmatpush3.bf16.msra.mxu0 %v4581_v49 }
 0x36c   : > { %v4643_v5 = vadd.f32 %v2774_v55, %v6702_v8  ;;  %v2776_v2 = vpop.f32.mrb[73].mxu1 }
 0x36d   : > { %v4644_v41 = vadd.f32 %v2776_v2, %v6705_v12  ;;  %3739 = vmatprep.mubr.msk.f32.mxu0 %vm2903_vm4, %v2852_v57 }
 0x36e   : > { %3032 = vmatmul.mubr.f32.gmra.mrb[134].mxu0 %v2851_v31  ;;  %v2853_v3 = vmax.f32 %v4643_v5, 0.0 }
 0x36f   : > { %v2854_v58 = vmax.f32 %v4644_v41, 0.0  ;;  %v2780_v59 = vpop.f32.mrb[74].mxu1 }
 0x370   : > { %v4645_v4 = vadd.f32 %v2780_v59, %v6702_v8  ;;  %v2782_v28 = vpop.f32.mrb[75].mxu1 }
 0x371   : > { %v4646_v19 = vadd.f32 %v2782_v28, %v6705_v12  ;;  %3740 = vmatprep.mubr.msk.f32.mxu0 %vm2903_vm4, %v2854_v58 }
 0x372   : > { %3037 = vmatmul.mubr.f32.gmra.mrb[136].mxu0 %v2853_v3  ;;  %v2855_v62 = vmax.f32 %v4645_v4, 0.0 }
 0x373   : > { %v2856_v27 = vmax.f32 %v4646_v19, 0.0  ;;  %v2786_v15 = vpop.f32.mrb[76].mxu1 }
 0x374   : > { %v4647_v48 = vadd.f32 %v2786_v15, %v6702_v8  ;;  %v2788_v13 = vpop.f32.mrb[77].mxu1  ;;  %v3120_v15 = vld [vmem:[%s6903_s9 + $0x38] sm:$0xff] }
 0x375   : > { %v4648_v34 = vadd.f32 %v2788_v13, %v6705_v12  ;;  %3741 = vmatprep.mubr.msk.f32.mxu0 %vm2903_vm4, %v2856_v27  ;;  %v3119_v27 = vld [vmem:[%s6903_s9 + $0x30] sm:$0xff]  ;;  %v3344_v13 = vld [vmem:[%s6905_s11] sm:$0xff] }
 0x376   : > { %3042 = vmatmul.mubr.f32.gmra.mrb[138].mxu0 %v2855_v62  ;;  %v2857_v18 = vmax.f32 %v4647_v48, 0.0  ;;  %v3122_v62 = vld [vmem:[%s6903_s9 + $0x48] sm:$0xf] }
 0x377   : > { %v2858_v23 = vmax.f32 %v4648_v34, 0.0  ;;  %v2792_v17 = vpop.f32.mrb[78].mxu1  ;;  %v3345_v34 = vld [vmem:[%s6905_s11 + $0x8] sm:$0xff] }
 0x378   : > { %v4649_v36 = vadd.f32 %v2792_v17, %v6702_v8  ;;  %v2794_v14 = vpop.f32.mrb[79].mxu1  ;;  %v6788_v17 = vld [vmem:[%s6902_s8] ss:$0 sm:$0xff] }
 0x379   : > { %v4650_v33 = vadd.f32 %v2794_v14, %v6705_v12  ;;  %3742 = vmatprep.mubr.msk.f32.mxu0 %vm2903_vm4, %v2858_v23  ;;  %v4595_v23 = vpack.c.bf16 %v3345_v34, %v3344_v13 }
 0x37a   : > { %3047 = vmatmul.mubr.f32.gmra.mrb[140].mxu0 %v2857_v18  ;;  %v2859_v32 = vmax.f32 %v4649_v36, 0.0 }
 0x37b   : > { %v2860_v43 = vmax.f32 %v4650_v33, 0.0  ;;  %v2798_v16 = vpop.f32.mrb[80].mxu1 }
 0x37c   : > { %v4651_v1 = vadd.f32 %v2798_v16, %v6702_v8  ;;  %v2800_v63 = vpop.f32.mrb[81].mxu1 }
 0x37d   : > { %v4652_v0 = vadd.f32 %v2800_v63, %v6705_v12  ;;  %3743 = vmatprep.mubr.msk.f32.mxu0 %vm2903_vm4, %v2860_v43 }
 0x37e   : > { %3052 = vmatmul.mubr.f32.gmra.mrb[142].mxu0 %v2859_v32  ;;  %v2861_v40 = vmax.f32 %v4651_v1, 0.0 }
 0x37f   : > { %v2862_v22 = vmax.f32 %v4652_v0, 0.0  ;;  %v2804_v44 = vpop.f32.mrb[82].mxu1 }
 0x380   : > { %v4653_v61 = vadd.f32 %v2804_v44, %v6702_v8  ;;  %v2806_v56 = vpop.f32.mrb[83].mxu1 }
 0x381   : > { %v4654_v37 = vadd.f32 %v2806_v56, %v6705_v12  ;;  %3744 = vmatprep.mubr.msk.f32.mxu0 %vm2903_vm4, %v2862_v22 }
 0x382   : > { %3057 = vmatmul.mubr.f32.gmra.mrb[144].mxu0 %v2861_v40  ;;  %v2863_v30 = vmax.f32 %v4653_v61, 0.0 }
 0x383   : > { %v2864_v47 = vmax.f32 %v4654_v37, 0.0  ;;  %v2810_v51 = vpop.f32.mrb[84].mxu1 }
 0x384   : > { %v4655_v42 = vadd.f32 %v2810_v51, %v6702_v8  ;;  %v2812_v25 = vpop.f32.mrb[85].mxu1 }
 0x385   : > { %v4656_v29 = vadd.f32 %v2812_v25, %v6705_v12  ;;  %3745 = vmatprep.mubr.msk.f32.mxu0 %vm2903_vm4, %v2864_v47 }
 0x386   : > { %3062 = vmatmul.mubr.f32.gmra.mrb[146].mxu0 %v2863_v30  ;;  %v2865_v45 = vmax.f32 %v4655_v42, 0.0 }
 0x387   : > { %v2866_v50 = vmax.f32 %v4656_v29, 0.0  ;;  %v2816_v26 = vpop.f32.mrb[86].mxu1 }
 0x388   : > { %v4657_v20 = vadd.f32 %v2816_v26, %v6702_v8  ;;  %v2818_v9 = vpop.f32.mrb[87].mxu1 }
 0x389   : > { %v4658_v38 = vadd.f32 %v2818_v9, %v6705_v12  ;;  %3746 = vmatprep.mubr.msk.f32.mxu0 %vm2903_vm4, %v2866_v50 }
 0x38a   : > { %3067 = vmatmul.mubr.f32.gmra.mrb[148].mxu0 %v2865_v45  ;;  %v2867_v35 = vmax.f32 %v4657_v20, 0.0 }
 0x38b   : > { %v2868_v7 = vmax.f32 %v4658_v38, 0.0  ;;  %v2822_v6 = vpop.f32.mrb[88].mxu1 }
 0x38c   : > { %v4659_v10 = vadd.f32 %v2822_v6, %v6702_v8  ;;  %v2824_v52 = vpop.f32.mrb[89].mxu1 }
 0x38d   : > { %v4660_v54 = vadd.f32 %v2824_v52, %v6705_v12  ;;  %3747 = vmatprep.mubr.msk.f32.mxu0 %vm2903_vm4, %v2868_v7 }
 0x38e   : > { %3072 = vmatmul.mubr.f32.gmra.mrb[150].mxu0 %v2867_v35  ;;  %v2869_v60 = vmax.f32 %v4659_v10, 0.0 }
 0x38f   : > { %v2870_v49 = vmax.f32 %v4660_v54, 0.0  ;;  %v2828_v53 = vpop.f32.mrb[90].mxu1 }
 0x390   : > { %v4661_v21 = vadd.f32 %v2828_v53, %v6702_v8  ;;  %v2830_v39 = vpop.f32.mrb[91].mxu1 }
 0x391   : > { %v4662_v11 = vadd.f32 %v2830_v39, %v6705_v12  ;;  %3748 = vmatprep.mubr.msk.f32.mxu0 %vm2903_vm4, %v2870_v49 }
 0x392   : > { %3077 = vmatmul.mubr.f32.gmra.mrb[152].mxu0 %v2869_v60  ;;  %v2871_v57 = vmax.f32 %v4661_v21, 0.0 }
 0x393   : > { %v2872_v46 = vmax.f32 %v4662_v11, 0.0  ;;  %v2834_v24 = vpop.f32.mrb[92].mxu1 }
 0x394   : > { %v4663_v55 = vadd.f32 %v2834_v24, %v6702_v8  ;;  %v2836_v31 = vpop.f32.mrb[93].mxu1 }
 0x395   : > { %v4664_v5 = vadd.f32 %v2836_v31, %v6705_v12  ;;  %3749 = vmatprep.mubr.msk.f32.mxu0 %vm2903_vm4, %v2872_v46 }
 0x396   : > { %3082 = vmatmul.mubr.f32.gmra.mrb[154].mxu0 %v2871_v57  ;;  %v2873_v58 = vmax.f32 %v4663_v55, 0.0 }
 0x397   : > { %v2874_v2 = vmax.f32 %v4664_v5, 0.0  ;;  %v2840_v41 = vpop.f32.mrb[94].mxu1 }
 0x398   : > { %v4665_v59 = vadd.f32 %v2840_v41, %v6702_v8  ;;  %v2842_v3 = vpop.f32.mrb[95].mxu1  ;;  %v4585_v8 = vpack.c.bf16 %v3120_v15, %v3119_v27 }
 0x399   : > { %v4666_v4 = vadd.f32 %v2842_v3, %v6705_v12  ;;  %3750 = vmatprep.mubr.msk.f32.mxu0 %vm2903_vm4, %v2874_v2  ;;  %v3121_v12 = vld [vmem:[%s6903_s9 + $0x40] sm:$0xff] }
 0x39a   : > { %3087 = vmatmul.mubr.f32.gmra.mrb[156].mxu0 %v2873_v58  ;;  %v2875_v19 = vmax.f32 %v4665_v59, 0.0  ;;  %4586 = vmatprep.subr.bf16.mxu0 %v4585_v8  ;;  %v4589_v48 = vpack.c.bf16 %v3122_v62, %v3121_v12 }
 0x39b   : > { %v2876_v28 = vmax.f32 %v4666_v4, 0.0  ;;  %4588 = vmatpush3.bf16.msra.mxu0 %v4585_v8 }
 0x39c   : > { %4591 = vmatprep.subr.msk.bf16.mxu0 %vm4590_vm7, %v4589_v48 }
 0x39d   : > { %3751 = vmatprep.mubr.msk.f32.mxu0 %vm2903_vm4, %v2876_v28 }
 0x39e   : > { %3092 = vmatmul.mubr.f32.gmra.mrb[158].mxu0 %v2875_v19 }
 0x39f   : > { %4594 = vmatpush3.bf16.msk.msra.mxu0 %vm4590_vm7, %v4589_v48 }
 0x3a0   : > { %4596 = vmatprep.subr.bf16.mxu0 %v4595_v23 }
 0x435   : > { %v3018_v18 = vpop.f32.mrb[128].mxu0 }
 0x436   : > { %v3019_v36 = vadd.f32 %v6788_v17, %v3018_v18  ;;  %v3020_v14 = vpop.f32.mrb[129].mxu0 }
 0x437   : > { %v3347_v14 = vld [vmem:[%s6905_s11 + $0x18] sm:$0xff] }
 0x438   : > { %v3097_v33 = vmax.f32 %v3019_v36, 0.0  ;;  %v3346_v36 = vld [vmem:[%s6905_s11 + $0x10] sm:$0xff] }
 0x439   : > { %v3023_v43 = vpop.f32.mrb[130].mxu0 }
 0x43a   : > { %v3024_v16 = vadd.f32 %v6788_v17, %v3023_v43  ;;  %v3025_v32 = vpop.f32.mrb[131].mxu0  ;;  %4148 = vmatprep.mubr.msk.f32.mxu0 %vm3130_vm8, %v3097_v33  ;;  %v4599_v33 = vpack.c.bf16 %v3347_v14, %v3346_v36  ;;  %v3752_v43 = vld [vmem:[%s6904_s10] ss:$0 sm:$0xff] }
 0x43c   : > { %v3098_v1 = vmax.f32 %v3024_v16, 0.0 }
 0x43d   : > { %v3028_v63 = vpop.f32.mrb[132].mxu0 }
 0x43e   : > { %v3029_v0 = vadd.f32 %v6788_v17, %v3028_v63  ;;  %v3030_v22 = vpop.f32.mrb[133].mxu0  ;;  %4149 = vmatmul.mubr.msk.f32.vlgmr.msra.gmra.mrb[160].mxu0 %vm3130_vm8, %v3098_v1 }
 0x43f   : > { %4598 = vmatpush3.bf16.msra.mxu0 %v4595_v23 }
 0x440   : > { %v3099_v44 = vmax.f32 %v3029_v0, 0.0  ;;  %4600 = vmatprep.subr.bf16.mxu0 %v4599_v33 }
 0x441   : > { %v3033_v40 = vpop.f32.mrb[134].mxu0 }
 0x442   : > { %v3034_v61 = vadd.f32 %v6788_v17, %v3033_v40  ;;  %v3035_v56 = vpop.f32.mrb[135].mxu0  ;;  %4151 = vmatprep.mubr.msk.f32.mxu0 %vm3130_vm8, %v3099_v44 }
 0x443   : > { %4602 = vmatpush3.bf16.msra.mxu0 %v4599_v33 }
 0x444   : > { %v3100_v37 = vmax.f32 %v3034_v61, 0.0 }
 0x445   : > { %v3038_v47 = vpop.f32.mrb[136].mxu0 }
 0x446   : > { %v3039_v51 = vadd.f32 %v6788_v17, %v3038_v47  ;;  %v3040_v30 = vpop.f32.mrb[137].mxu0  ;;  %4152 = vmatmul.mubr.msk.f32.gmra.mrb[162].mxu0 %vm3130_vm8, %v3100_v37 }
 0x448   : > { %v3101_v42 = vmax.f32 %v3039_v51, 0.0 }
 0x449   : > { %v3043_v25 = vpop.f32.mrb[138].mxu0 }
 0x44a   : > { %v3044_v29 = vadd.f32 %v6788_v17, %v3043_v25  ;;  %v3045_v50 = vpop.f32.mrb[139].mxu0  ;;  %4154 = vmatprep.mubr.msk.f32.mxu0 %vm3130_vm8, %v3101_v42 }
 0x44c   : > { %v3102_v26 = vmax.f32 %v3044_v29, 0.0 }
 0x44d   : > { %v3048_v45 = vpop.f32.mrb[140].mxu0 }
 0x44e   : > { %v3049_v20 = vadd.f32 %v6788_v17, %v3048_v45  ;;  %v3050_v9 = vpop.f32.mrb[141].mxu0  ;;  %4155 = vmatmul.mubr.msk.f32.gmra.mrb[164].mxu0 %vm3130_vm8, %v3102_v26 }
 0x450   : > { %v3103_v38 = vmax.f32 %v3049_v20, 0.0 }
 0x451   : > { %v3053_v7 = vpop.f32.mrb[142].mxu0 }
 0x452   : > { %v3054_v6 = vadd.f32 %v6788_v17, %v3053_v7  ;;  %v3055_v35 = vpop.f32.mrb[143].mxu0  ;;  %4157 = vmatprep.mubr.msk.f32.mxu0 %vm3130_vm8, %v3103_v38 }
 0x454   : > { %v3104_v10 = vmax.f32 %v3054_v6, 0.0 }
 0x455   : > { %v3058_v52 = vpop.f32.mrb[144].mxu0 }
 0x456   : > { %v3059_v54 = vadd.f32 %v6788_v17, %v3058_v52  ;;  %v3060_v49 = vpop.f32.mrb[145].mxu0  ;;  %4158 = vmatmul.mubr.msk.f32.gmra.mrb[166].mxu0 %vm3130_vm8, %v3104_v10 }
 0x458   : > { %v3105_v53 = vmax.f32 %v3059_v54, 0.0 }
 0x459   : > { %v3063_v60 = vpop.f32.mrb[146].mxu0 }
 0x45a   : > { %v3064_v21 = vadd.f32 %v6788_v17, %v3063_v60  ;;  %v3065_v39 = vpop.f32.mrb[147].mxu0  ;;  %4160 = vmatprep.mubr.msk.f32.mxu0 %vm3130_vm8, %v3105_v53 }
 0x45c   : > { %v3106_v11 = vmax.f32 %v3064_v21, 0.0 }
 0x45d   : > { %v3068_v46 = vpop.f32.mrb[148].mxu0 }
 0x45e   : > { %v3069_v24 = vadd.f32 %v6788_v17, %v3068_v46  ;;  %v3070_v57 = vpop.f32.mrb[149].mxu0  ;;  %4161 = vmatmul.mubr.msk.f32.gmra.mrb[168].mxu0 %vm3130_vm8, %v3106_v11 }
 0x460   : > { %v3107_v55 = vmax.f32 %v3069_v24, 0.0 }
 0x461   : > { %v3073_v31 = vpop.f32.mrb[150].mxu0 }
 0x462   : > { %v3074_v5 = vadd.f32 %v6788_v17, %v3073_v31  ;;  %v3075_v2 = vpop.f32.mrb[151].mxu0  ;;  %4163 = vmatprep.mubr.msk.f32.mxu0 %vm3130_vm8, %v3107_v55 }
 0x464   : > { %v3108_v41 = vmax.f32 %v3074_v5, 0.0 }
 0x465   : > { %v3078_v58 = vpop.f32.mrb[152].mxu0 }
 0x466   : > { %v3079_v59 = vadd.f32 %v6788_v17, %v3078_v58  ;;  %v3080_v3 = vpop.f32.mrb[153].mxu0  ;;  %4164 = vmatmul.mubr.msk.f32.gmra.mrb[170].mxu0 %vm3130_vm8, %v3108_v41 }
 0x468   : > { %v3109_v4 = vmax.f32 %v3079_v59, 0.0 }
 0x469   : > { %v3083_v28 = vpop.f32.mrb[154].mxu0 }
 0x46a   : > { %v3084_v19 = vadd.f32 %v6788_v17, %v3083_v28  ;;  %v3085_v27 = vpop.f32.mrb[155].mxu0  ;;  %4166 = vmatprep.mubr.msk.f32.mxu0 %vm3130_vm8, %v3109_v4 }
 0x46c   : > { %v3110_v15 = vmax.f32 %v3084_v19, 0.0  ;;  %v3770_v19 = vld [vmem:[#allocation2] ss:$0 sm:$0xff] }
 0x46d   : > { %v3088_v8 = vpop.f32.mrb[156].mxu0 }
 0x46e   : > { %v3089_v12 = vadd.f32 %v6788_v17, %v3088_v8  ;;  %v3090_v62 = vpop.f32.mrb[157].mxu0  ;;  %4167 = vmatmul.mubr.msk.f32.gmra.mrb[172].mxu0 %vm3130_vm8, %v3110_v15 }
 0x470   : > { %v3111_v48 = vmax.f32 %v3089_v12, 0.0 }
 0x471   : > { %v3093_v13 = vpop.f32.mrb[158].mxu0 }
 0x472   : > { %v3094_v34 = vadd.f32 %v6788_v17, %v3093_v13  ;;  %v3095_v23 = vpop.f32.mrb[159].mxu0  ;;  %4169 = vmatprep.mubr.msk.f32.mxu0 %vm3130_vm8, %v3111_v48  ;;  %v3348_v17 = vld [vmem:[%s6905_s11 + $0x20] sm:$0x3f] }
 0x473   : > { %4180 = vmatprep.subr.msk.mxu0 %vm563_vm0, %v3348_v17 }
 0x474   : > { %v3112_v18 = vmax.f32 %v3094_v34, 0.0  ;;  %4181 = vmatpush3.msk.msra.mxu0 %vm563_vm0, %v3348_v17 }
 0x476   : > { %4170 = vmatmul.mubr.msk.f32.gmra.mrb[174].mxu0 %vm3130_vm8, %v3112_v18 }
 0x511   : > { %v4150_v16 = vpop.f32.mrb[160].mxu0 }
 0x512   : > { %v3255_v32 = vadd.f32 %v4150_v16, %v3752_v43  ;;  %v3249_v1 = vpop.f32.mrb[161].mxu0 }
 0x513   : > { %v3250_v63 = vadd.f32 %v3752_v43, %v3249_v1 }
 0x514   : > { %v3329_v22 = vmax.f32 %v3255_v32, 0.0 }
 0x515   : > { %v3328_v0 = vmax.f32 %v3250_v63, 0.0 }
 0x517   : > { %4182 = vmatprep.mubr.msk.f32.mxu0 %vm514_vm1, %v3328_v0 }
 0x518   : > { %4183 = vmatmul.mubr.msk.f32.vlgmr.msra.gmra.mrb[176].mxu0 %vm514_vm1, %v3329_v22 }
 0x519   : > { %v4153_v44 = vpop.f32.mrb[162].mxu0 }
 0x51a   : > { %v3265_v40 = vadd.f32 %v4153_v44, %v3752_v43  ;;  %v3259_v61 = vpop.f32.mrb[163].mxu0 }
 0x51b   : > { %v3260_v56 = vadd.f32 %v3752_v43, %v3259_v61 }
 0x51c   : > { %v3331_v47 = vmax.f32 %v3265_v40, 0.0 }
 0x51d   : > { %v3330_v37 = vmax.f32 %v3260_v56, 0.0 }
 0x51f   : > { %4185 = vmatprep.mubr.msk.f32.mxu0 %vm514_vm1, %v3330_v37 }
 0x520   : > { %4186 = vmatmul.mubr.msk.f32.gmra.mrb[178].mxu0 %vm514_vm1, %v3331_v47 }
 0x521   : > { %v4156_v51 = vpop.f32.mrb[164].mxu0 }
 0x522   : > { %v3275_v30 = vadd.f32 %v4156_v51, %v3752_v43  ;;  %v3269_v42 = vpop.f32.mrb[165].mxu0 }
 0x523   : > { %v3270_v25 = vadd.f32 %v3752_v43, %v3269_v42 }
 0x524   : > { %v3333_v50 = vmax.f32 %v3275_v30, 0.0 }
 0x525   : > { %v3332_v29 = vmax.f32 %v3270_v25, 0.0 }
 0x527   : > { %4188 = vmatprep.mubr.msk.f32.mxu0 %vm514_vm1, %v3332_v29 }
 0x528   : > { %4189 = vmatmul.mubr.msk.f32.gmra.mrb[180].mxu0 %vm514_vm1, %v3333_v50 }
 0x529   : > { %v4159_v26 = vpop.f32.mrb[166].mxu0 }
 0x52a   : > { %v3285_v45 = vadd.f32 %v4159_v26, %v3752_v43  ;;  %v3279_v20 = vpop.f32.mrb[167].mxu0 }
 0x52b   : > { %v3280_v9 = vadd.f32 %v3752_v43, %v3279_v20 }
 0x52c   : > { %v3335_v7 = vmax.f32 %v3285_v45, 0.0 }
 0x52d   : > { %v3334_v38 = vmax.f32 %v3280_v9, 0.0 }
 0x52f   : > { %4191 = vmatprep.mubr.msk.f32.mxu0 %vm514_vm1, %v3334_v38 }
 0x530   : > { %4192 = vmatmul.mubr.msk.f32.gmra.mrb[182].mxu0 %vm514_vm1, %v3335_v7 }
 0x531   : > { %v4162_v6 = vpop.f32.mrb[168].mxu0 }
 0x532   : > { %v3295_v35 = vadd.f32 %v4162_v6, %v3752_v43  ;;  %v3289_v10 = vpop.f32.mrb[169].mxu0 }
 0x533   : > { %v3290_v52 = vadd.f32 %v3752_v43, %v3289_v10 }
 0x534   : > { %v3337_v49 = vmax.f32 %v3295_v35, 0.0 }
 0x535   : > { %v3336_v54 = vmax.f32 %v3290_v52, 0.0 }
 0x537   : > { %4194 = vmatprep.mubr.msk.f32.mxu0 %vm514_vm1, %v3336_v54 }
 0x538   : > { %4195 = vmatmul.mubr.msk.f32.gmra.mrb[184].mxu0 %vm514_vm1, %v3337_v49 }
 0x539   : > { %v4165_v53 = vpop.f32.mrb[170].mxu0 }
 0x53a   : > { %v3305_v60 = vadd.f32 %v4165_v53, %v3752_v43  ;;  %v3299_v21 = vpop.f32.mrb[171].mxu0 }
 0x53b   : > { %v3300_v39 = vadd.f32 %v3752_v43, %v3299_v21 }
 0x53c   : > { %v3339_v46 = vmax.f32 %v3305_v60, 0.0 }
 0x53d   : > { %v3338_v11 = vmax.f32 %v3300_v39, 0.0 }
 0x53f   : > { %4197 = vmatprep.mubr.msk.f32.mxu0 %vm514_vm1, %v3338_v11 }
 0x540   : > { %4198 = vmatmul.mubr.msk.f32.gmra.mrb[186].mxu0 %vm514_vm1, %v3339_v46 }
 0x541   : > { %v4168_v24 = vpop.f32.mrb[172].mxu0 }
 0x542   : > { %v3315_v57 = vadd.f32 %v4168_v24, %v3752_v43  ;;  %v3309_v55 = vpop.f32.mrb[173].mxu0 }
 0x543   : > { %v3310_v31 = vadd.f32 %v3752_v43, %v3309_v55 }
 0x544   : > { %v3341_v2 = vmax.f32 %v3315_v57, 0.0 }
 0x545   : > { %v3340_v5 = vmax.f32 %v3310_v31, 0.0 }
 0x547   : > { %4200 = vmatprep.mubr.msk.f32.mxu0 %vm514_vm1, %v3340_v5 }
 0x548   : > { %4201 = vmatmul.mubr.msk.f32.gmra.mrb[188].mxu0 %vm514_vm1, %v3341_v2 }
 0x549   : > { %v4171_v41 = vpop.f32.mrb[174].mxu0 }
 0x54a   : > { %v3325_v58 = vadd.f32 %v4171_v41, %v3752_v43  ;;  %v3319_v59 = vpop.f32.mrb[175].mxu0 }
 0x54b   : > { %v3320_v3 = vadd.f32 %v3752_v43, %v3319_v59 }
 0x54c   : > { %v3343_v28 = vmax.f32 %v3325_v58, 0.0 }
 0x54d   : > { %v3342_v4 = vmax.f32 %v3320_v3, 0.0 }
 0x54f   : > { %4203 = vmatprep.mubr.msk.f32.mxu0 %vm514_vm1, %v3342_v4 }
 0x550   : > { %4204 = vmatmul.mubr.msk.f32.gmra.mrb[190].mxu0 %vm514_vm1, %v3343_v28 }
 0x5eb   : > { %v4184_v27 = vpop.f32.mrb[176].mxu0 }
 0x5ec   : > { %v3479_v15 = vadd.f32 %v4184_v27, %v3770_v19  ;;  %v3473_v8 = vpop.f32.mrb[177].mxu0 }
 0x5ed   : > { %v3474_v12 = vadd.f32 %v3770_v19, %v3473_v8 }
 0x5ee   : > { %3554 = vst.msk [vmem:[%s6857_s30 + $0x8] sm:$0xff] %vm3552_vm9, %v3479_v15 }
 0x5ef   : > { %3553 = vst.msk [vmem:[%s6857_s30] sm:$0xff] %vm3552_vm9, %v3474_v12 }
 0x5f3   : > { %v4187_v62 = vpop.f32.mrb[178].mxu0 }
 0x5f4   : > { %v3489_v48 = vadd.f32 %v4187_v62, %v3770_v19  ;;  %v3483_v13 = vpop.f32.mrb[179].mxu0 }
 0x5f5   : > { %v3484_v34 = vadd.f32 %v3770_v19, %v3483_v13 }
 0x5f6   : > { %3556 = vst.msk [vmem:[%s6857_s30 + $0x18] sm:$0xff] %vm3552_vm9, %v3489_v48 }
 0x5f7   : > { %3555 = vst.msk [vmem:[%s6857_s30 + $0x10] sm:$0xff] %vm3552_vm9, %v3484_v34 }
 0x5fb   : > { %v4190_v23 = vpop.f32.mrb[180].mxu0 }
 0x5fc   : > { %v3499_v18 = vadd.f32 %v4190_v23, %v3770_v19  ;;  %v3493_v36 = vpop.f32.mrb[181].mxu0 }
 0x5fd   : > { %v3494_v14 = vadd.f32 %v3770_v19, %v3493_v36 }
 0x5fe   : > { %3558 = vst.msk [vmem:[%s6857_s30 + $0x28] sm:$0xff] %vm3552_vm9, %v3499_v18 }
 0x5ff   : > { %3557 = vst.msk [vmem:[%s6857_s30 + $0x20] sm:$0xff] %vm3552_vm9, %v3494_v14 }
 0x603   : > { %v4193_v33 = vpop.f32.mrb[182].mxu0 }
 0x604   : > { %v3509_v17 = vadd.f32 %v4193_v33, %v3770_v19  ;;  %v3503_v43 = vpop.f32.mrb[183].mxu0 }
 0x605   : > { %v3504_v16 = vadd.f32 %v3770_v19, %v3503_v43 }
 0x606   : > { %3560 = vst.msk [vmem:[%s6857_s30 + $0x38] sm:$0xff] %vm3552_vm9, %v3509_v17 }
 0x607   : > { %3559 = vst.msk [vmem:[%s6857_s30 + $0x30] sm:$0xff] %vm3552_vm9, %v3504_v16 }
 0x60b   : > { %v4196_v32 = vpop.f32.mrb[184].mxu0 }
 0x60c   : > { %v3519_v1 = vadd.f32 %v4196_v32, %v3770_v19  ;;  %v3513_v63 = vpop.f32.mrb[185].mxu0 }
 0x60d   : > { %v3514_v0 = vadd.f32 %v3770_v19, %v3513_v63 }
 0x60e   : > { %3562 = vst.msk [vmem:[%s6857_s30 + $0x48] sm:$0xff] %vm3552_vm9, %v3519_v1 }
 0x60f   : > { %3561 = vst.msk [vmem:[%s6857_s30 + $0x40] sm:$0xff] %vm3552_vm9, %v3514_v0 }
 0x613   : > { %v4199_v22 = vpop.f32.mrb[186].mxu0 }
 0x614   : > { %v3529_v44 = vadd.f32 %v4199_v22, %v3770_v19  ;;  %v3523_v40 = vpop.f32.mrb[187].mxu0 }
 0x615   : > { %v3524_v61 = vadd.f32 %v3770_v19, %v3523_v40 }
 0x616   : > { %3564 = vst.msk [vmem:[%s6857_s30 + $0x58] sm:$0xff] %vm3552_vm9, %v3529_v44 }
 0x617   : > { %3563 = vst.msk [vmem:[%s6857_s30 + $0x50] sm:$0xff] %vm3552_vm9, %v3524_v61 }
 0x61b   : > { %v4202_v56 = vpop.f32.mrb[188].mxu0 }
 0x61c   : > { %v3539_v37 = vadd.f32 %v4202_v56, %v3770_v19  ;;  %v3533_v47 = vpop.f32.mrb[189].mxu0 }
 0x61d   : > { %v3534_v51 = vadd.f32 %v3770_v19, %v3533_v47 }
 0x61e   : > { %3566 = vst.msk [vmem:[%s6857_s30 + $0x68] sm:$0xff] %vm3552_vm9, %v3539_v37 }
 0x61f   : > { %3565 = vst.msk [vmem:[%s6857_s30 + $0x60] sm:$0xff] %vm3552_vm9, %v3534_v51 }
 0x623   : > { %v4205_v30 = vpop.f32.mrb[190].mxu0 }
 0x624   : > { %v3549_v42 = vadd.f32 %v4205_v30, %v3770_v19  ;;  %v3543_v25 = vpop.f32.mrb[191].mxu0 }
 0x625   : > { %v3544_v29 = vadd.f32 %v3770_v19, %v3543_v25 }
 0x626   : > { %3568 = vst.msk [vmem:[%s6857_s30 + $0x78] sm:$0xff] %vm3552_vm9, %v3549_v42 }
 0x627   : > { %3567 = vst.msk [vmem:[%s6857_s30 + $0x70] sm:$0xff] %vm3552_vm9, %v3544_v29 }
 0x628 PF: > { %s25_s27 = sadd.s32 1, %s4781_s27  }
 0x629   : > { %p22_p4 = scmp.ge.s32.totalorder %s25_s27, 4  }
 0x62b   :  { %24 = sbr.rel (!%p22_p4) target bundleno = 3 (0x3), region = 102 }

</bundles_post_ra>
